<compile_context>
chip_gen: v7x
topology: tpu7x:2x2x1
jax: 0.10.0
libtpu: 0.0.40
codegen_flags: <defaults>
</compile_context>

<pallas_src>
import functools

import numpy as np
import jax
import jax.numpy as jnp
from jax.experimental import pallas as pl
from jax.experimental.pallas import tpu as pltpu


# ----------------------------------------------------------------------------- kernel
def _ra16_kernel(
    # inputs
    pq_ref,                    # (1, B, mb*D)   prev queries, lane-packed across the step's modules (bf16)
    prev_ref,                  # (mb, B, 4D)    packed prev (query | key | value | state) (f32)
    key_ref, val_ref,          # (B*S, D) each, shared by all modules (bf16)
    selbd_ref,                 # (mb*D, mb*H)   block-diag head selector (bf16)
    selTbd_ref,                # (mb*H, mb*D)
    hmean_ref,                 # (mb*H, mb)     block-diag head-mean selector (bf16)
    gsel_ref,                  # (4, 4D)        gate -> 4D lane expansion (f32)
    wq_ref, bq_ref,            # (1, mb*D, mb*D) block-diag Wq^T*scale (bf16), (1, 1, mb*D) bias (f32)
    wk_ref, bk_ref,            # (1, D, mb*D) N-concat Wk^T (bf16), (1, 1, mb*D)
    wv_ref, bv_ref,            # (1, D, mb*D), (1, 1, mb*D)
    wo_ref, bo_ref,            # (1, mb*D, mb*D) block-diag Wo^T, (1, 1, mb*D)
    w1_ref, b1_ref,            # (mb, 2D, 8F) (bf16), (mb, 1, 8F)
    w2m_ref, b2m_ref,          # (mb, 4F, 4D) block-diag main second layers (bf16), (mb, 1, 4D)
    w2g_ref, b2g_ref,          # (mb, 4F, 4)  block-diag gate second layers (bf16), (mb, 1, 4)
    # outputs
    out_ref,                   # (mb, B, 4D)    gated (query | key | value | state)  (f32)
    aux_ref,                   # (mb, B, AUXW)  lane-dense [attn_out | attn_w | gates | pad]
    *, num_heads,
):
    f32 = jnp.float32
    bf16 = jnp.bfloat16
    mb, B, D4 = prev_ref.shape
    D = D4 // 4
    BS = key_ref.shape[0]
    S = BS // B
    H = num_heads
    F4 = w2m_ref.shape[1]
    aux_w = aux_ref.shape[-1]
    mbD = mb * D

    # ---------------- attention, batched over the step's mb modules ----------------
    q_all = jnp.dot(pq_ref[0], wq_ref[0], preferred_element_type=f32) + bq_ref[0]     # [B, mbD] (pre-scaled)
    k_all = jnp.dot(key_ref[...], wk_ref[0], preferred_element_type=f32) + bk_ref[0]  # [BS, mbD]
    v_all = jnp.dot(val_ref[...], wv_ref[0], preferred_element_type=f32) + bv_ref[0]  # [BS, mbD]
    k3 = k_all.reshape(B, S, mbD)
    v3 = v_all.reshape(B, S, mbD)

    prod = q_all[:, None, :] * k3                                                       # [B, S, mbD]
    scores = jnp.dot(prod.reshape(BS, mbD).astype(bf16), selbd_ref[...],
                     preferred_element_type=f32).reshape(B, S, mb * H)                  # [B, S, mbH]
    smax = jnp.max(scores, axis=1, keepdims=True)
    e = jnp.exp(scores - smax)
    w = e * pl.reciprocal(jnp.sum(e, axis=1, keepdims=True), approx=True)               # [B, S, mbH]
    w_bf = w.reshape(BS, mb * H).astype(bf16)
    attn_w = jnp.dot(w_bf, hmean_ref[...],
                     preferred_element_type=f32).reshape(B, S, mb)                      # [B, S, mb]
    w_full = jnp.dot(w_bf, selTbd_ref[...],
                     preferred_element_type=f32).reshape(B, S, mbD)                     # [B, S, mbD]
    ctx = jnp.sum(w_full * v3, axis=1)                                                  # [B, mbD]
    attn_out_all = (jnp.dot(ctx.astype(bf16), wo_ref[0], preferred_element_type=f32)
                    + bo_ref[0])                                                        # [B, mbD]

    # ---------------- per-module fused MLPs + gating ----------------
    gsel = gsel_ref[...]
    pad_w = aux_w - (D + S + 4)
    zpad = jnp.zeros((B, pad_w), f32) if pad_w > 0 else None                            # hoisted out of loop

    for mi in range(mb):                                   # static unroll (mb <= M, small)
        ao = attn_out_all[:, mi * D:(mi + 1) * D]                                       # [B, D]
        prev_mi = prev_ref[mi]                                                          # [B, 4D]
        ps = prev_mi[:, 3 * D:4 * D]                                                    # [B, D]
        x0 = jnp.concatenate([jnp.maximum(ao, 0.0), jnp.maximum(ps, 0.0)], axis=-1)     # [B, 2D]
        h = jnp.maximum(
            jnp.dot(x0.astype(bf16), w1_ref[mi], preferred_element_type=f32)
            + b1_ref[mi], 0.0)                                                          # [B, 8F]
        y = jnp.tanh(jnp.maximum(
            jnp.dot(h[:, :F4].astype(bf16), w2m_ref[mi], preferred_element_type=f32)
            + b2m_ref[mi], 0.0))                                                        # [B, 4D] (q|k|v|s)
        g = jax.nn.sigmoid(
            jnp.dot(h[:, F4:].astype(bf16), w2g_ref[mi], preferred_element_type=f32)
            + b2g_ref[mi])                                                              # [B, 4]
        gf = jnp.dot(g, gsel, preferred_element_type=f32)                               # [B, 4D]

        out_ref[mi] = gf * y + (1.0 - gf) * prev_mi                                     # packed gated states
        parts = [ao, attn_w[:, :, mi], g]
        if zpad is not None:
            parts.append(zpad)
        aux_ref[mi] = jnp.concatenate(parts, axis=-1)                                   # lane-dense 128-wide row


# ----------------------------------------------------------------------------- config
def _default_modules_per_step(num_modules):
    """mb = M (one grid step) on single-TC chips (v5e/v6e); M//2 on 2-TC chips."""
    try:
        kind = jax.devices()[0].device_kind.lower()
    except Exception:
        kind = ""
    two_tc = any(t in kind for t in ("v4", "v5p", "v7"))
    if two_tc and num_modules % 2 == 0:
        return num_modules // 2
    return num_modules


# ----------------------------------------------------------------------------- wrapper
def recurrent_attention_16_forward(packed, state, key, value):
    prev_state, prev_query, prev_key, prev_value = state
    M, B, D = prev_state.shape
    S = key.shape[0]
    H = packed['num_heads']
    mb = packed['mb']
    nsteps = M // mb
    aux_w = max(128, ((D + S + 4 + 127) // 128) * 128)   # lane-dense aux row width

    bf16 = jnp.bfloat16
    # layout plumbing outside the kernel (tiny at these shapes)
    prev_pack = jnp.concatenate([prev_query, prev_key, prev_value, prev_state], axis=-1)  # [M, B, 4D] f32
    pq_steps = (prev_query.reshape(nsteps, mb, B, D)
                .transpose(0, 2, 1, 3).reshape(nsteps, B, mb * D).astype(bf16))           # [ns, B, mb*D]
    key_flat = jnp.transpose(key, (1, 0, 2)).reshape(B * S, D).astype(bf16)               # [B*S, D]
    value_flat = jnp.transpose(value, (1, 0, 2)).reshape(B * S, D).astype(bf16)

    kernel = functools.partial(_ra16_kernel, num_heads=H)

    def step3(shape):
        return pl.BlockSpec((1,) + shape, lambda m: (m, 0, 0))

    def mod3(shape):
        return pl.BlockSpec((mb,) + shape, lambda m: (m, 0, 0))

    def const2(shape):
        return pl.BlockSpec(shape, lambda m: (0, 0))

    F = packed['ff_size']
    in_specs = [
        step3((B, mb * D)),                              # pq_steps
        mod3((B, 4 * D)),                                # prev_pack
        const2((B * S, D)),                              # key_flat
        const2((B * S, D)),                              # value_flat
        const2((mb * D, mb * H)),                        # sel_bd
        const2((mb * H, mb * D)),                        # selT_bd
        const2((mb * H, mb)),                            # hmean
        const2((4, 4 * D)),                              # gsel
        step3((mb * D, mb * D)), step3((1, mb * D)),     # wq_bd, bq
        step3((D, mb * D)), step3((1, mb * D)),          # wk_cat, bk
        step3((D, mb * D)), step3((1, mb * D)),          # wv_cat, bv
        step3((mb * D, mb * D)), step3((1, mb * D)),     # wo_bd, bo
        mod3((2 * D, 8 * F)), mod3((1, 8 * F)),          # w1T, b1
        mod3((4 * F, 4 * D)), mod3((1, 4 * D)),          # w2m_bd, b2m
        mod3((4 * F, 4)), mod3((1, 4)),                  # w2g_bd, b2g
    ]
    out_specs = [
        mod3((B, 4 * D)),                                # packed gated states (128-lane rows)
        mod3((B, aux_w)),                                # aux (128-lane rows)
    ]
    out_shapes = [
        jax.ShapeDtypeStruct((M, B, 4 * D), jnp.float32),
        jax.ShapeDtypeStruct((M, B, aux_w), jnp.float32),
    ]

    # TODO(synk): on v7x, verify the 'parallel' grid axis actually shards across both
    # TensorCores; if not, switch to pltpu.CORE_PARALLEL / pl.core_map.
    slab, aux = pl.pallas_call(
        kernel,
        out_shape=out_shapes,
        grid_spec=pltpu.PrefetchScalarGridSpec(
            num_scalar_prefetch=0,
            grid=(nsteps,),
            in_specs=in_specs,
            out_specs=out_specs,
        ),
        compiler_params=pltpu.CompilerParams(dimension_semantics=("parallel",)),
    )(
        pq_steps, prev_pack, key_flat, value_flat,
        packed['sel_bd'], packed['selT_bd'], packed['hmean'], packed['gsel'],
        packed['wq_bd'], packed['bq'], packed['wk_cat'], packed['bk'],
        packed['wv_cat'], packed['bv'], packed['wo_bd'], packed['bo'],
        packed['w1T'], packed['b1'], packed['w2m_bd'], packed['b2m'],
        packed['w2g_bd'], packed['b2g'],
    )

    g_query = slab[..., 0 * D:1 * D]
    g_key = slab[..., 1 * D:2 * D]
    g_value = slab[..., 2 * D:3 * D]
    g_state = slab[..., 3 * D:4 * D]
    attn_output = aux[..., :D]
    attn_weights = aux[..., D:D + S]
    gates = aux[..., D + S:D + S + 4]
    return {
        'attn_output': attn_output,
        'attn_output_weights': attn_weights,
        'gates': {
            'query': gates[..., 0:1],
            'key': gates[..., 1:2],
            'value': gates[..., 2:3],
            'state': gates[..., 3:4],
        },
        'key': g_key,
        'value': g_value,
        'state': (g_state, g_query, g_key, g_value),
    }


# ----------------------------------------------------------------------------- params
def init_params(rng, num_modules, input_size, key_size, value_size, num_heads, ff_size):
    assert input_size == key_size == value_size, \
        "RecurrentAttention16 implicitly requires input_size == key_size == value_size"
    D, F, M = input_size, ff_size, num_modules
    keys = jax.random.split(rng, 14)

    def unif(k, shape, fan_in):
        bound = 1.0 / float(np.sqrt(fan_in))
        return jax.random.uniform(k, shape, jnp.float32, -bound, bound)

    # raw weights, PyTorch Linear layout (out_features x in_features)
    return {
        'num_heads': num_heads, 'ff_size': F,
        'wq': unif(keys[0], (M, D, D), D), 'bq': unif(keys[1], (M, D), D),
        'wk': unif(keys[2], (M, D, D), D), 'bk': unif(keys[3], (M, D), D),
        'wv': unif(keys[4], (M, D, D), D), 'bv': unif(keys[5], (M, D), D),
        'wo': unif(keys[6], (M, D, D), D), 'bo': unif(keys[7], (M, D), D),
        # 8 MLPs: fc_query, fc_key, fc_value, fc_state, then their 4 gate MLPs
        'w1': unif(keys[8], (M, 8, F, 2 * D), 2 * D), 'b1': unif(keys[9], (M, 8, F), 2 * D),
        'w2m': unif(keys[10], (M, 4, D, F), F), 'b2m': unif(keys[11], (M, 4, D), F),
        'w2g': unif(keys[12], (M, 4, 1, F), F), 'b2g': unif(keys[13], (M, 4, 1), F),
    }


def pack_params(raw, modules_per_step=None):
    """Fuse raw weights into kernel-ready (bf16) slabs; done once, outside the kernel."""
    M, D, _ = raw['wq'].shape
    F = raw['ff_size']
    H = raw['num_heads']
    hd = D // H
    scale = 1.0 / float(np.sqrt(hd))
    mb = modules_per_step if modules_per_step is not None else _default_modules_per_step(M)
    assert M % mb == 0
    ns = M // mb
    f32, bf16 = jnp.float32, jnp.bfloat16

    wqT = jnp.transpose(raw['wq'], (0, 2, 1)) * scale       # softmax scale folded into Wq/bq
    wkT = jnp.transpose(raw['wk'], (0, 2, 1))
    wvT = jnp.transpose(raw['wv'], (0, 2, 1))
    woT = jnp.transpose(raw['wo'], (0, 2, 1))

    def blockdiag_steps(wT):     # [M, D, D] -> [ns, mb*D, mb*D] per-step block diagonal
        w4 = wT.reshape(ns, mb, D, D)
        out = jnp.zeros((ns, mb * D, mb * D), f32)
        for i in range(mb):
            out = out.at[:, i * D:(i + 1) * D, i * D:(i + 1) * D].set(w4[:, i])
        return out

    def ncat_steps(wT):          # [M, D, D] -> [ns, D, mb*D] per-step N-concatenation
        return jnp.transpose(wT.reshape(ns, mb, D, D), (0, 2, 1, 3)).reshape(ns, D, mb * D)

    def bias_steps(b):           # [M, D] -> [ns, 1, mb*D]
        return b.reshape(ns, 1, mb * D)

    wq_bd = blockdiag_steps(wqT).astype(bf16)
    wo_bd = blockdiag_steps(woT).astype(bf16)
    wk_cat = ncat_steps(wkT).astype(bf16)
    wv_cat = ncat_steps(wvT).astype(bf16)
    bq = bias_steps(raw['bq'] * scale)
    bk = bias_steps(raw['bk'])
    bv = bias_steps(raw['bv'])
    bo = bias_steps(raw['bo'])

    # fc_input MLP first layer: x0 = [relu(attn_out) | relu(prev_state)] -> one [2D, 8F] matmul
    w1T = jnp.transpose(raw['w1'], (0, 3, 1, 2)).reshape(M, 2 * D, 8 * F).astype(bf16)
    b1 = raw['b1'].reshape(M, 1, 8 * F)

    # second layers: 4 main MLPs fused into one block-diag [4F, 4D]; 4 gate MLPs into [4F, 4]
    w2mT = jnp.transpose(raw['w2m'], (0, 1, 3, 2))           # [M, 4, F, D]
    w2m_bd = jnp.zeros((M, 4 * F, 4 * D), f32)
    w2g_bd = jnp.zeros((M, 4 * F, 4), f32)
    for g in range(4):                                        # block order: query, key, value, state
        w2m_bd = w2m_bd.at[:, g * F:(g + 1) * F, g * D:(g + 1) * D].set(w2mT[:, g])
        w2g_bd = w2g_bd.at[:, g * F:(g + 1) * F, g].set(raw['w2g'][:, g, 0, :])
    w2m_bd = w2m_bd.astype(bf16)
    w2g_bd = w2g_bd.astype(bf16)
    b2m = raw['b2m'].reshape(M, 1, 4 * D)
    b2g = raw['b2g'].reshape(M, 1, 4)

    # selector constants (exact 0/1/0.25 values, safe in bf16)
    sel = np.repeat(np.eye(H, dtype=np.float32), hd, axis=0)              # [D, H]
    sel_bd = np.kron(np.eye(mb, dtype=np.float32), sel)                   # [mb*D, mb*H]
    selT_bd = sel_bd.T
    hmean = np.kron(np.eye(mb, dtype=np.float32),
                    np.full((H, 1), 1.0 / H, dtype=np.float32))           # [mb*H, mb]
    gsel = np.repeat(np.eye(4, dtype=np.float32), D, axis=1)              # [4, 4D]

    return {
        'num_heads': H, 'ff_size': F, 'mb': mb,
        'wq_bd': wq_bd, 'bq': bq, 'wk_cat': wk_cat, 'bk': bk,
        'wv_cat': wv_cat, 'bv': bv, 'wo_bd': wo_bd, 'bo': bo,
        'w1T': w1T, 'b1': b1, 'w2m_bd': w2m_bd, 'b2m': b2m,
        'w2g_bd': w2g_bd, 'b2g': b2g,
        'sel_bd': jnp.asarray(sel_bd, dtype=bf16),
        'selT_bd': jnp.asarray(selT_bd, dtype=bf16),
        'hmean': jnp.asarray(hmean, dtype=bf16),
        'gsel': jnp.asarray(gsel, dtype=f32),
    }


# ------------------------------------------------------------------- pure-JAX reference
def reference_forward(raw, state, key, value):
    prev_state, prev_query, prev_key, prev_value = state
    M, B, D = prev_state.shape
    S = key.shape[0]
    H = raw['num_heads']
    hd = D // H

    q = jnp.einsum('mbd,mod->mbo', prev_query, raw['wq']) + raw['bq'][:, None, :]
    k = jnp.einsum('sbd,mod->msbo', key, raw['wk']) + raw['bk'][:, None, None, :]
    v = jnp.einsum('sbd,mod->msbo', value, raw['wv']) + raw['bv'][:, None, None, :]
    qh = q.reshape(M, B, H, hd)
    kh = k.reshape(M, S, B, H, hd)
    vh = v.reshape(M, S, B, H, hd)
    sc = jnp.einsum('mbhd,msbhd->mbhs', qh, kh) / np.sqrt(hd)
    w = jax.nn.softmax(sc, axis=-1)
    ctx = jnp.einsum('mbhs,msbhd->mbhd', w, vh).reshape(M, B, D)
    attn_out = jnp.einsum('mbd,mod->mbo', ctx, raw['wo']) + raw['bo'][:, None, :]
    attn_w = jnp.mean(w, axis=2)

    fc_in = jnp.concatenate([attn_out, prev_state], axis=-1)
    x0 = jax.nn.relu(fc_in)
    h = [jax.nn.relu(jnp.einsum('mbc,mfc->mbf', x0, raw['w1'][:, i]) + raw['b1'][:, i][:, None, :])
         for i in range(8)]
    mains = [jnp.tanh(jax.nn.relu(
                 jnp.einsum('mbf,mdf->mbd', h[g], raw['w2m'][:, g]) + raw['b2m'][:, g][:, None, :]))
             for g in range(4)]
    gates = [jax.nn.sigmoid(
                 jnp.einsum('mbf,mof->mbo', h[4 + g], raw['w2g'][:, g]) + raw['b2g'][:, g][:, None, :])
             for g in range(4)]
    y_q, y_k, y_v, y_s = mains
    g_q, g_k, g_v, g_s = gates
    gq = g_q * y_q + (1 - g_q) * prev_query
    gk = g_k * y_k + (1 - g_k) * prev_key
    gv = g_v * y_v + (1 - g_v) * prev_value
    gs = g_s * y_s + (1 - g_s) * prev_state
    return {
        'attn_output': attn_out,
        'attn_output_weights': attn_w,
        'gates': {'query': g_q, 'key': g_k, 'value': g_v, 'state': g_s},
        'key': gk, 'value': gv,
        'state': (gs, gq, gk, gv),
    }


# ----------------------------------------------------------------------------- main
if __name__ == "__main__":
    # small shapes: num_modules=4, batch=4, seq=8, input=key=value=32, heads=4, ff=32
    M, B, S, D, H, F = 4, 4, 8, 32, 4, 32

    rng = jax.random.PRNGKey(0)
    k_param, k_s0, k_s1, k_s2, k_s3, k_key, k_val = jax.random.split(rng, 7)

    raw = init_params(k_param, num_modules=M, input_size=D, key_size=D,
                      value_size=D, num_heads=H, ff_size=F)
    packed = pack_params(raw)

    state = (
        jax.random.normal(k_s0, (M, B, D), jnp.float32),   # prev internal state
        jax.random.normal(k_s1, (M, B, D), jnp.float32),   # prev query
        jax.random.normal(k_s2, (M, B, D), jnp.float32),   # prev key
        jax.random.normal(k_s3, (M, B, D), jnp.float32),   # prev value
    )
    key = jax.random.normal(k_key, (S, B, D), jnp.float32)
    value = jax.random.normal(k_val, (S, B, D), jnp.float32)

    out = recurrent_attention_16_forward(packed, state, key, value)
    out = jax.block_until_ready(out)

    # sanity check against a pure-JAX f32 reference; tolerances widened for
    # bf16 weights/activations on the MXU + approx EUP reciprocal (per perf review).
    ref = reference_forward(raw, state, key, value)
    np.testing.assert_allclose(out['attn_output'], ref['attn_output'], atol=5e-2, rtol=0)
    np.testing.assert_allclose(out['attn_output_weights'], ref['attn_output_weights'],
                               atol=2e-2, rtol=0)
    for name in ('query', 'key', 'value', 'state'):
        np.testing.assert_allclose(out['gates'][name], ref['gates'][name], atol=2e-2, rtol=0)
    np.testing.assert_allclose(out['key'], ref['key'], atol=1e-1, rtol=0)
    np.testing.assert_allclose(out['value'], ref['value'], atol=1e-1, rtol=0)
    for a, b in zip(out['state'], ref['state']):
        np.testing.assert_allclose(a, b, atol=1e-1, rtol=0)

    print("KERNEL_OK")
</pallas_src>

<mosaic_0001>
module attributes {stable_mosaic.version = 11 : i64} {
  func.func @_ra16_kernel(%arg0: i32, %arg1: memref<1x4x128xbf16, #tpu.memory_space<vmem>>, %arg2: memref<4x4x128xf32, #tpu.memory_space<vmem>>, %arg3: memref<32x32xbf16, #tpu.memory_space<vmem>>, %arg4: memref<32x32xbf16, #tpu.memory_space<vmem>>, %arg5: memref<128x16xbf16, #tpu.memory_space<vmem>>, %arg6: memref<16x128xbf16, #tpu.memory_space<vmem>>, %arg7: memref<16x4xbf16, #tpu.memory_space<vmem>>, %arg8: memref<4x128xf32, #tpu.memory_space<vmem>>, %arg9: memref<1x128x128xbf16, #tpu.memory_space<vmem>>, %arg10: memref<1x1x128xf32, #tpu.memory_space<vmem>>, %arg11: memref<1x32x128xbf16, #tpu.memory_space<vmem>>, %arg12: memref<1x1x128xf32, #tpu.memory_space<vmem>>, %arg13: memref<1x32x128xbf16, #tpu.memory_space<vmem>>, %arg14: memref<1x1x128xf32, #tpu.memory_space<vmem>>, %arg15: memref<1x128x128xbf16, #tpu.memory_space<vmem>>, %arg16: memref<1x1x128xf32, #tpu.memory_space<vmem>>, %arg17: memref<4x64x256xbf16, #tpu.memory_space<vmem>>, %arg18: memref<4x1x256xf32, #tpu.memory_space<vmem>>, %arg19: memref<4x128x128xbf16, #tpu.memory_space<vmem>>, %arg20: memref<4x1x128xf32, #tpu.memory_space<vmem>>, %arg21: memref<4x128x4xbf16, #tpu.memory_space<vmem>>, %arg22: memref<4x1x4xf32, #tpu.memory_space<vmem>>, %arg23: memref<4x4x128xf32, #tpu.memory_space<vmem>>, %arg24: memref<4x4x128xf32, #tpu.memory_space<vmem>>) attributes {dimension_semantics = [#tpu.dimension_semantics<parallel>], iteration_bounds = array<i64: 1>, scalar_prefetch = 0 : i64, scratch_operands = 0 : i64, tpu.core_type = #tpu.core_type<tc>, window_params = [{transform_indices = @transform_0, window_bounds = array<i64: 1, 4, 128>}, {transform_indices = @transform_1, window_bounds = array<i64: 4, 4, 128>}, {pipeline_mode = #tpu.pipeline_mode<synchronous>, transform_indices = @transform_2, window_bounds = array<i64: 32, 32>}, {pipeline_mode = #tpu.pipeline_mode<synchronous>, transform_indices = @transform_3, window_bounds = array<i64: 32, 32>}, {pipeline_mode = #tpu.pipeline_mode<synchronous>, transform_indices = @transform_4, window_bounds = array<i64: 128, 16>}, {pipeline_mode = #tpu.pipeline_mode<synchronous>, transform_indices = @transform_5, window_bounds = array<i64: 16, 128>}, {pipeline_mode = #tpu.pipeline_mode<synchronous>, transform_indices = @transform_6, window_bounds = array<i64: 16, 4>}, {pipeline_mode = #tpu.pipeline_mode<synchronous>, transform_indices = @transform_7, window_bounds = array<i64: 4, 128>}, {transform_indices = @transform_8, window_bounds = array<i64: 1, 128, 128>}, {transform_indices = @transform_9, window_bounds = array<i64: 1, 1, 128>}, {transform_indices = @transform_10, window_bounds = array<i64: 1, 32, 128>}, {transform_indices = @transform_11, window_bounds = array<i64: 1, 1, 128>}, {transform_indices = @transform_12, window_bounds = array<i64: 1, 32, 128>}, {transform_indices = @transform_13, window_bounds = array<i64: 1, 1, 128>}, {transform_indices = @transform_14, window_bounds = array<i64: 1, 128, 128>}, {transform_indices = @transform_15, window_bounds = array<i64: 1, 1, 128>}, {transform_indices = @transform_16, window_bounds = array<i64: 4, 64, 256>}, {transform_indices = @transform_17, window_bounds = array<i64: 4, 1, 256>}, {transform_indices = @transform_18, window_bounds = array<i64: 4, 128, 128>}, {transform_indices = @transform_19, window_bounds = array<i64: 4, 1, 128>}, {transform_indices = @transform_20, window_bounds = array<i64: 4, 128, 4>}, {transform_indices = @transform_21, window_bounds = array<i64: 4, 1, 4>}, {transform_indices = @transform_22, window_bounds = array<i64: 4, 4, 128>}, {transform_indices = @transform_23, window_bounds = array<i64: 4, 4, 128>}]} {
    %c0 = arith.constant 0 : index
    %c0_0 = arith.constant 0 : index
    %c0_1 = arith.constant 0 : index
    %0 = vector.load %arg1[%c0, %c0_0, %c0_1] : memref<1x4x128xbf16, #tpu.memory_space<vmem>>, vector<1x4x128xbf16>
    %1 = vector.shape_cast %0 : vector<1x4x128xbf16> to vector<4x128xbf16>
    %c0_2 = arith.constant 0 : index
    %c0_3 = arith.constant 0 : index
    %c0_4 = arith.constant 0 : index
    %2 = vector.load %arg9[%c0_2, %c0_3, %c0_4] : memref<1x128x128xbf16, #tpu.memory_space<vmem>>, vector<1x128x128xbf16>
    %3 = vector.shape_cast %2 : vector<1x128x128xbf16> to vector<128x128xbf16>
    %cst = arith.constant dense<0.000000e+00> : vector<4x128xf32>
    %4 = tpu.matmul %1, %3, %cst {dimension_numbers = #tpu.dot_dimension_numbers<[1], [0], [0], [1], [0, 0, 1, 1], [], []>} : vector<4x128xbf16>, vector<128x128xbf16>, vector<4x128xf32> -> vector<4x128xf32>
    %c0_5 = arith.constant 0 : index
    %c0_6 = arith.constant 0 : index
    %c0_7 = arith.constant 0 : index
    %5 = vector.load %arg10[%c0_5, %c0_6, %c0_7] : memref<1x1x128xf32, #tpu.memory_space<vmem>>, vector<1x1x128xf32>
    %6 = vector.shape_cast %5 : vector<1x1x128xf32> to vector<1x128xf32>
    %7 = vector.broadcast %6 : vector<1x128xf32> to vector<4x128xf32>
    %8 = arith.addf %4, %7 : vector<4x128xf32>
    %c0_8 = arith.constant 0 : index
    %c0_9 = arith.constant 0 : index
    %9 = vector.load %arg3[%c0_8, %c0_9] : memref<32x32xbf16, #tpu.memory_space<vmem>>, vector<32x32xbf16>
    %c0_10 = arith.constant 0 : index
    %c0_11 = arith.constant 0 : index
    %c0_12 = arith.constant 0 : index
    %10 = vector.load %arg11[%c0_10, %c0_11, %c0_12] : memref<1x32x128xbf16, #tpu.memory_space<vmem>>, vector<1x32x128xbf16>
    %11 = vector.shape_cast %10 : vector<1x32x128xbf16> to vector<32x128xbf16>
    %cst_13 = arith.constant dense<0.000000e+00> : vector<32x128xf32>
    %12 = tpu.matmul %9, %11, %cst_13 {dimension_numbers = #tpu.dot_dimension_numbers<[1], [0], [0], [1], [0, 0, 1, 1], [], []>} : vector<32x32xbf16>, vector<32x128xbf16>, vector<32x128xf32> -> vector<32x128xf32>
    %c0_14 = arith.constant 0 : index
    %c0_15 = arith.constant 0 : index
    %c0_16 = arith.constant 0 : index
    %13 = vector.load %arg12[%c0_14, %c0_15, %c0_16] : memref<1x1x128xf32, #tpu.memory_space<vmem>>, vector<1x1x128xf32>
    %14 = vector.shape_cast %13 : vector<1x1x128xf32> to vector<1x128xf32>
    %15 = vector.broadcast %14 : vector<1x128xf32> to vector<32x128xf32>
    %16 = arith.addf %12, %15 : vector<32x128xf32>
    %c0_17 = arith.constant 0 : index
    %c0_18 = arith.constant 0 : index
    %17 = vector.load %arg4[%c0_17, %c0_18] : memref<32x32xbf16, #tpu.memory_space<vmem>>, vector<32x32xbf16>
    %c0_19 = arith.constant 0 : index
    %c0_20 = arith.constant 0 : index
    %c0_21 = arith.constant 0 : index
    %18 = vector.load %arg13[%c0_19, %c0_20, %c0_21] : memref<1x32x128xbf16, #tpu.memory_space<vmem>>, vector<1x32x128xbf16>
    %19 = vector.shape_cast %18 : vector<1x32x128xbf16> to vector<32x128xbf16>
    %cst_22 = arith.constant dense<0.000000e+00> : vector<32x128xf32>
    %20 = tpu.matmul %17, %19, %cst_22 {dimension_numbers = #tpu.dot_dimension_numbers<[1], [0], [0], [1], [0, 0, 1, 1], [], []>} : vector<32x32xbf16>, vector<32x128xbf16>, vector<32x128xf32> -> vector<32x128xf32>
    %c0_23 = arith.constant 0 : index
    %c0_24 = arith.constant 0 : index
    %c0_25 = arith.constant 0 : index
    %21 = vector.load %arg14[%c0_23, %c0_24, %c0_25] : memref<1x1x128xf32, #tpu.memory_space<vmem>>, vector<1x1x128xf32>
    %22 = vector.shape_cast %21 : vector<1x1x128xf32> to vector<1x128xf32>
    %23 = vector.broadcast %22 : vector<1x128xf32> to vector<32x128xf32>
    %24 = arith.addf %20, %23 : vector<32x128xf32>
    %25 = vector.shape_cast %16 : vector<32x128xf32> to vector<4x8x128xf32>
    %26 = vector.shape_cast %24 : vector<32x128xf32> to vector<4x8x128xf32>
    %27 = vector.shape_cast %8 : vector<4x128xf32> to vector<4x1x128xf32>
    %28 = vector.broadcast %27 : vector<4x1x128xf32> to vector<4x8x128xf32>
    %29 = arith.mulf %28, %25 : vector<4x8x128xf32>
    %30 = vector.shape_cast %29 : vector<4x8x128xf32> to vector<32x128xf32>
    %31 = arith.truncf %30 : vector<32x128xf32> to vector<32x128xbf16>
    %c0_26 = arith.constant 0 : index
    %c0_27 = arith.constant 0 : index
    %32 = vector.load %arg5[%c0_26, %c0_27] : memref<128x16xbf16, #tpu.memory_space<vmem>>, vector<128x16xbf16>
    %cst_28 = arith.constant dense<0.000000e+00> : vector<32x16xf32>
    %33 = tpu.matmul %31, %32, %cst_28 {dimension_numbers = #tpu.dot_dimension_numbers<[1], [0], [0], [1], [0, 0, 1, 1], [], []>} : vector<32x128xbf16>, vector<128x16xbf16>, vector<32x16xf32> -> vector<32x16xf32>
    %34 = vector.shape_cast %33 : vector<32x16xf32> to vector<4x8x16xf32>
    %cst_29 = arith.constant dense<0xFF800000> : vector<4x16xf32>
    %35 = vector.multi_reduction <maximumf>, %34, %cst_29 [1] : vector<4x8x16xf32> to vector<4x16xf32>
    %36 = vector.shape_cast %35 : vector<4x16xf32> to vector<4x1x16xf32>
    %37 = vector.broadcast %36 : vector<4x1x16xf32> to vector<4x8x16xf32>
    %38 = arith.subf %34, %37 : vector<4x8x16xf32>
    %39 = math.exp %38 : vector<4x8x16xf32>
    %cst_30 = arith.constant dense<0.000000e+00> : vector<4x16xf32>
    %40 = vector.multi_reduction <add>, %39, %cst_30 [1] : vector<4x8x16xf32> to vector<4x16xf32>
    %41 = vector.shape_cast %40 : vector<4x16xf32> to vector<4x1x16xf32>
    %42 = tpu.reciprocal %41 {approx = true} : vector<4x1x16xf32> -> vector<4x1x16xf32>
    %43 = vector.broadcast %42 : vector<4x1x16xf32> to vector<4x8x16xf32>
    %44 = arith.mulf %39, %43 : vector<4x8x16xf32>
    %45 = vector.shape_cast %44 : vector<4x8x16xf32> to vector<32x16xf32>
    %46 = arith.truncf %45 : vector<32x16xf32> to vector<32x16xbf16>
    %c0_31 = arith.constant 0 : index
    %c0_32 = arith.constant 0 : index
    %47 = vector.load %arg7[%c0_31, %c0_32] : memref<16x4xbf16, #tpu.memory_space<vmem>>, vector<16x4xbf16>
    %cst_33 = arith.constant dense<0.000000e+00> : vector<32x4xf32>
    %48 = tpu.matmul %46, %47, %cst_33 {dimension_numbers = #tpu.dot_dimension_numbers<[1], [0], [0], [1], [0, 0, 1, 1], [], []>} : vector<32x16xbf16>, vector<16x4xbf16>, vector<32x4xf32> -> vector<32x4xf32>
    %49 = vector.shape_cast %48 : vector<32x4xf32> to vector<4x8x4xf32>
    %c0_34 = arith.constant 0 : index
    %c0_35 = arith.constant 0 : index
    %50 = vector.load %arg6[%c0_34, %c0_35] : memref<16x128xbf16, #tpu.memory_space<vmem>>, vector<16x128xbf16>
    %cst_36 = arith.constant dense<0.000000e+00> : vector<32x128xf32>
    %51 = tpu.matmul %46, %50, %cst_36 {dimension_numbers = #tpu.dot_dimension_numbers<[1], [0], [0], [1], [0, 0, 1, 1], [], []>} : vector<32x16xbf16>, vector<16x128xbf16>, vector<32x128xf32> -> vector<32x128xf32>
    %52 = vector.shape_cast %51 : vector<32x128xf32> to vector<4x8x128xf32>
    %53 = arith.mulf %52, %26 : vector<4x8x128xf32>
    %cst_37 = arith.constant dense<0.000000e+00> : vector<4x128xf32>
    %54 = vector.multi_reduction <add>, %53, %cst_37 [1] : vector<4x8x128xf32> to vector<4x128xf32>
    %55 = arith.truncf %54 : vector<4x128xf32> to vector<4x128xbf16>
    %c0_38 = arith.constant 0 : index
    %c0_39 = arith.constant 0 : index
    %c0_40 = arith.constant 0 : index
    %56 = vector.load %arg15[%c0_38, %c0_39, %c0_40] : memref<1x128x128xbf16, #tpu.memory_space<vmem>>, vector<1x128x128xbf16>
    %57 = vector.shape_cast %56 : vector<1x128x128xbf16> to vector<128x128xbf16>
    %cst_41 = arith.constant dense<0.000000e+00> : vector<4x128xf32>
    %58 = tpu.matmul %55, %57, %cst_41 {dimension_numbers = #tpu.dot_dimension_numbers<[1], [0], [0], [1], [0, 0, 1, 1], [], []>} : vector<4x128xbf16>, vector<128x128xbf16>, vector<4x128xf32> -> vector<4x128xf32>
    %c0_42 = arith.constant 0 : index
    %c0_43 = arith.constant 0 : index
    %c0_44 = arith.constant 0 : index
    %59 = vector.load %arg16[%c0_42, %c0_43, %c0_44] : memref<1x1x128xf32, #tpu.memory_space<vmem>>, vector<1x1x128xf32>
    %60 = vector.shape_cast %59 : vector<1x1x128xf32> to vector<1x128xf32>
    %61 = vector.broadcast %60 : vector<1x128xf32> to vector<4x128xf32>
    %62 = arith.addf %58, %61 : vector<4x128xf32>
    %c0_45 = arith.constant 0 : index
    %c0_46 = arith.constant 0 : index
    %63 = vector.load %arg8[%c0_45, %c0_46] : memref<4x128xf32, #tpu.memory_space<vmem>>, vector<4x128xf32>
    %cst_47 = arith.constant 0.000000e+00 : f32
    %64 = vector.broadcast %cst_47 : f32 to vector<4x84xf32>
    %65 = vector.extract_strided_slice %62 {offsets = [0, 0], sizes = [4, 32], strides = [1, 1]} : vector<4x128xf32> to vector<4x32xf32>
    %c0_48 = arith.constant 0 : index
    %c0_49 = arith.constant 0 : index
    %c0_50 = arith.constant 0 : index
    %66 = vector.load %arg2[%c0_48, %c0_49, %c0_50] : memref<4x4x128xf32, #tpu.memory_space<vmem>>, vector<1x4x128xf32>
    %67 = vector.shape_cast %66 : vector<1x4x128xf32> to vector<4x128xf32>
    %68 = vector.extract_strided_slice %67 {offsets = [0, 96], sizes = [4, 32], strides = [1, 1]} : vector<4x128xf32> to vector<4x32xf32>
    %cst_51 = arith.constant 0.000000e+00 : f32
    %69 = vector.broadcast %cst_51 : f32 to vector<4x32xf32>
    %70 = arith.maximumf %65, %69 : vector<4x32xf32>
    %cst_52 = arith.constant 0.000000e+00 : f32
    %71 = vector.broadcast %cst_52 : f32 to vector<4x32xf32>
    %72 = arith.maximumf %68, %71 : vector<4x32xf32>
    %73 = tpu.concatenate %70, %72 in 1 : vector<4x32xf32>, vector<4x32xf32> -> vector<4x64xf32>
    %74 = arith.truncf %73 : vector<4x64xf32> to vector<4x64xbf16>
    %c0_53 = arith.constant 0 : index
    %c0_54 = arith.constant 0 : index
    %c0_55 = arith.constant 0 : index
    %75 = vector.load %arg17[%c0_53, %c0_54, %c0_55] : memref<4x64x256xbf16, #tpu.memory_space<vmem>>, vector<1x64x256xbf16>
    %76 = vector.shape_cast %75 : vector<1x64x256xbf16> to vector<64x256xbf16>
    %cst_56 = arith.constant dense<0.000000e+00> : vector<4x256xf32>
    %77 = tpu.matmul %74, %76, %cst_56 {dimension_numbers = #tpu.dot_dimension_numbers<[1], [0], [0], [1], [0, 0, 1, 1], [], []>} : vector<4x64xbf16>, vector<64x256xbf16>, vector<4x256xf32> -> vector<4x256xf32>
    %c0_57 = arith.constant 0 : index
    %c0_58 = arith.constant 0 : index
    %c0_59 = arith.constant 0 : index
    %78 = vector.load %arg18[%c0_57, %c0_58, %c0_59] : memref<4x1x256xf32, #tpu.memory_space<vmem>>, vector<1x1x256xf32>
    %79 = vector.shape_cast %78 : vector<1x1x256xf32> to vector<1x256xf32>
    %80 = vector.broadcast %79 : vector<1x256xf32> to vector<4x256xf32>
    %81 = arith.addf %77, %80 : vector<4x256xf32>
    %cst_60 = arith.constant 0.000000e+00 : f32
    %82 = vector.broadcast %cst_60 : f32 to vector<4x256xf32>
    %83 = arith.maximumf %81, %82 : vector<4x256xf32>
    %84 = vector.extract_strided_slice %83 {offsets = [0, 0], sizes = [4, 128], strides = [1, 1]} : vector<4x256xf32> to vector<4x128xf32>
    %85 = arith.truncf %84 : vector<4x128xf32> to vector<4x128xbf16>
    %c0_61 = arith.constant 0 : index
    %c0_62 = arith.constant 0 : index
    %c0_63 = arith.constant 0 : index
    %86 = vector.load %arg19[%c0_61, %c0_62, %c0_63] : memref<4x128x128xbf16, #tpu.memory_space<vmem>>, vector<1x128x128xbf16>
    %87 = vector.shape_cast %86 : vector<1x128x128xbf16> to vector<128x128xbf16>
    %cst_64 = arith.constant dense<0.000000e+00> : vector<4x128xf32>
    %88 = tpu.matmul %85, %87, %cst_64 {dimension_numbers = #tpu.dot_dimension_numbers<[1], [0], [0], [1], [0, 0, 1, 1], [], []>} : vector<4x128xbf16>, vector<128x128xbf16>, vector<4x128xf32> -> vector<4x128xf32>
    %c0_65 = arith.constant 0 : index
    %c0_66 = arith.constant 0 : index
    %c0_67 = arith.constant 0 : index
    %89 = vector.load %arg20[%c0_65, %c0_66, %c0_67] : memref<4x1x128xf32, #tpu.memory_space<vmem>>, vector<1x1x128xf32>
    %90 = vector.shape_cast %89 : vector<1x1x128xf32> to vector<1x128xf32>
    %91 = vector.broadcast %90 : vector<1x128xf32> to vector<4x128xf32>
    %92 = arith.addf %88, %91 : vector<4x128xf32>
    %cst_68 = arith.constant 0.000000e+00 : f32
    %93 = vector.broadcast %cst_68 : f32 to vector<4x128xf32>
    %94 = arith.maximumf %92, %93 : vector<4x128xf32>
    %95 = math.tanh %94 : vector<4x128xf32>
    %96 = vector.extract_strided_slice %83 {offsets = [0, 128], sizes = [4, 128], strides = [1, 1]} : vector<4x256xf32> to vector<4x128xf32>
    %97 = arith.truncf %96 : vector<4x128xf32> to vector<4x128xbf16>
    %c0_69 = arith.constant 0 : index
    %c0_70 = arith.constant 0 : index
    %c0_71 = arith.constant 0 : index
    %98 = vector.load %arg21[%c0_69, %c0_70, %c0_71] : memref<4x128x4xbf16, #tpu.memory_space<vmem>>, vector<1x128x4xbf16>
    %99 = vector.shape_cast %98 : vector<1x128x4xbf16> to vector<128x4xbf16>
    %cst_72 = arith.constant dense<0.000000e+00> : vector<4x4xf32>
    %100 = tpu.matmul %97, %99, %cst_72 {dimension_numbers = #tpu.dot_dimension_numbers<[1], [0], [0], [1], [0, 0, 1, 1], [], []>} : vector<4x128xbf16>, vector<128x4xbf16>, vector<4x4xf32> -> vector<4x4xf32>
    %c0_73 = arith.constant 0 : index
    %c0_74 = arith.constant 0 : index
    %c0_75 = arith.constant 0 : index
    %101 = vector.load %arg22[%c0_73, %c0_74, %c0_75] : memref<4x1x4xf32, #tpu.memory_space<vmem>>, vector<1x1x4xf32>
    %102 = vector.shape_cast %101 : vector<1x1x4xf32> to vector<1x4xf32>
    %103 = vector.broadcast %102 : vector<1x4xf32> to vector<4x4xf32>
    %104 = arith.addf %100, %103 : vector<4x4xf32>
    %105 = arith.negf %104 : vector<4x4xf32>
    %106 = math.exp %105 : vector<4x4xf32>
    %cst_76 = arith.constant 1.000000e+00 : f32
    %107 = vector.broadcast %cst_76 : f32 to vector<4x4xf32>
    %108 = arith.addf %107, %106 : vector<4x4xf32>
    %109 = arith.divf %107, %108 : vector<4x4xf32>
    %cst_77 = arith.constant dense<0.000000e+00> : vector<4x128xf32>
    %110 = tpu.matmul %109, %63, %cst_77 {dimension_numbers = #tpu.dot_dimension_numbers<[1], [0], [0], [1], [0, 0, 1, 1], [], []>} : vector<4x4xf32>, vector<4x128xf32>, vector<4x128xf32> -> vector<4x128xf32>
    %111 = arith.mulf %110, %95 : vector<4x128xf32>
    %cst_78 = arith.constant 1.000000e+00 : f32
    %112 = vector.broadcast %cst_78 : f32 to vector<4x128xf32>
    %113 = arith.subf %112, %110 : vector<4x128xf32>
    %114 = arith.mulf %113, %67 : vector<4x128xf32>
    %115 = arith.addf %111, %114 : vector<4x128xf32>
    %c0_79 = arith.constant 0 : index
    %c0_80 = arith.constant 0 : index
    %c0_81 = arith.constant 0 : index
    %116 = vector.load %arg23[%c0_79, %c0_80, %c0_81] : memref<4x4x128xf32, #tpu.memory_space<vmem>>, vector<1x4x128xf32>
    %117 = vector.shape_cast %116 : vector<1x4x128xf32> to vector<4x128xf32>
    %118 = vector.shape_cast %115 : vector<4x128xf32> to vector<1x4x128xf32>
    tpu.vector_store %arg23[%c0_79, %c0_80, %c0_81], %118 {strides = array<i32>} : memref<4x4x128xf32, #tpu.memory_space<vmem>>, vector<1x4x128xf32>,
    %119 = vector.extract_strided_slice %49 {offsets = [0, 0, 0], sizes = [4, 8, 1], strides = [1, 1, 1]} : vector<4x8x4xf32> to vector<4x8x1xf32>
    %120 = vector.shape_cast %119 : vector<4x8x1xf32> to vector<4x8xf32>
    %121 = tpu.concatenate %65, %120, %109, %64 in 1 : vector<4x32xf32>, vector<4x8xf32>, vector<4x4xf32>, vector<4x84xf32> -> vector<4x128xf32>
    %c0_82 = arith.constant 0 : index
    %c0_83 = arith.constant 0 : index
    %c0_84 = arith.constant 0 : index
    %122 = vector.load %arg24[%c0_82, %c0_83, %c0_84] : memref<4x4x128xf32, #tpu.memory_space<vmem>>, vector<1x4x128xf32>
    %123 = vector.shape_cast %122 : vector<1x4x128xf32> to vector<4x128xf32>
    %124 = vector.shape_cast %121 : vector<4x128xf32> to vector<1x4x128xf32>
    tpu.vector_store %arg24[%c0_82, %c0_83, %c0_84], %124 {strides = array<i32>} : memref<4x4x128xf32, #tpu.memory_space<vmem>>, vector<1x4x128xf32>,
    %125 = vector.extract_strided_slice %62 {offsets = [0, 32], sizes = [4, 32], strides = [1, 1]} : vector<4x128xf32> to vector<4x32xf32>
    %c1 = arith.constant 1 : index
    %c0_85 = arith.constant 0 : index
    %c0_86 = arith.constant 0 : index
    %126 = vector.load %arg2[%c1, %c0_85, %c0_86] : memref<4x4x128xf32, #tpu.memory_space<vmem>>, vector<1x4x128xf32>
    %127 = vector.shape_cast %126 : vector<1x4x128xf32> to vector<4x128xf32>
    %128 = vector.extract_strided_slice %127 {offsets = [0, 96], sizes = [4, 32], strides = [1, 1]} : vector<4x128xf32> to vector<4x32xf32>
    %cst_87 = arith.constant 0.000000e+00 : f32
    %129 = vector.broadcast %cst_87 : f32 to vector<4x32xf32>
    %130 = arith.maximumf %125, %129 : vector<4x32xf32>
    %cst_88 = arith.constant 0.000000e+00 : f32
    %131 = vector.broadcast %cst_88 : f32 to vector<4x32xf32>
    %132 = arith.maximumf %128, %131 : vector<4x32xf32>
    %133 = tpu.concatenate %130, %132 in 1 : vector<4x32xf32>, vector<4x32xf32> -> vector<4x64xf32>
    %134 = arith.truncf %133 : vector<4x64xf32> to vector<4x64xbf16>
    %c1_89 = arith.constant 1 : index
    %c0_90 = arith.constant 0 : index
    %c0_91 = arith.constant 0 : index
    %135 = vector.load %arg17[%c1_89, %c0_90, %c0_91] : memref<4x64x256xbf16, #tpu.memory_space<vmem>>, vector<1x64x256xbf16>
    %136 = vector.shape_cast %135 : vector<1x64x256xbf16> to vector<64x256xbf16>
    %cst_92 = arith.constant dense<0.000000e+00> : vector<4x256xf32>
    %137 = tpu.matmul %134, %136, %cst_92 {dimension_numbers = #tpu.dot_dimension_numbers<[1], [0], [0], [1], [0, 0, 1, 1], [], []>} : vector<4x64xbf16>, vector<64x256xbf16>, vector<4x256xf32> -> vector<4x256xf32>
    %c1_93 = arith.constant 1 : index
    %c0_94 = arith.constant 0 : index
    %c0_95 = arith.constant 0 : index
    %138 = vector.load %arg18[%c1_93, %c0_94, %c0_95] : memref<4x1x256xf32, #tpu.memory_space<vmem>>, vector<1x1x256xf32>
    %139 = vector.shape_cast %138 : vector<1x1x256xf32> to vector<1x256xf32>
    %140 = vector.broadcast %139 : vector<1x256xf32> to vector<4x256xf32>
    %141 = arith.addf %137, %140 : vector<4x256xf32>
    %cst_96 = arith.constant 0.000000e+00 : f32
    %142 = vector.broadcast %cst_96 : f32 to vector<4x256xf32>
    %143 = arith.maximumf %141, %142 : vector<4x256xf32>
    %144 = vector.extract_strided_slice %143 {offsets = [0, 0], sizes = [4, 128], strides = [1, 1]} : vector<4x256xf32> to vector<4x128xf32>
    %145 = arith.truncf %144 : vector<4x128xf32> to vector<4x128xbf16>
    %c1_97 = arith.constant 1 : index
    %c0_98 = arith.constant 0 : index
    %c0_99 = arith.constant 0 : index
    %146 = vector.load %arg19[%c1_97, %c0_98, %c0_99] : memref<4x128x128xbf16, #tpu.memory_space<vmem>>, vector<1x128x128xbf16>
    %147 = vector.shape_cast %146 : vector<1x128x128xbf16> to vector<128x128xbf16>
    %cst_100 = arith.constant dense<0.000000e+00> : vector<4x128xf32>
    %148 = tpu.matmul %145, %147, %cst_100 {dimension_numbers = #tpu.dot_dimension_numbers<[1], [0], [0], [1], [0, 0, 1, 1], [], []>} : vector<4x128xbf16>, vector<128x128xbf16>, vector<4x128xf32> -> vector<4x128xf32>
    %c1_101 = arith.constant 1 : index
    %c0_102 = arith.constant 0 : index
    %c0_103 = arith.constant 0 : index
    %149 = vector.load %arg20[%c1_101, %c0_102, %c0_103] : memref<4x1x128xf32, #tpu.memory_space<vmem>>, vector<1x1x128xf32>
    %150 = vector.shape_cast %149 : vector<1x1x128xf32> to vector<1x128xf32>
    %151 = vector.broadcast %150 : vector<1x128xf32> to vector<4x128xf32>
    %152 = arith.addf %148, %151 : vector<4x128xf32>
    %cst_104 = arith.constant 0.000000e+00 : f32
    %153 = vector.broadcast %cst_104 : f32 to vector<4x128xf32>
    %154 = arith.maximumf %152, %153 : vector<4x128xf32>
    %155 = math.tanh %154 : vector<4x128xf32>
    %156 = vector.extract_strided_slice %143 {offsets = [0, 128], sizes = [4, 128], strides = [1, 1]} : vector<4x256xf32> to vector<4x128xf32>
    %157 = arith.truncf %156 : vector<4x128xf32> to vector<4x128xbf16>
    %c1_105 = arith.constant 1 : index
    %c0_106 = arith.constant 0 : index
    %c0_107 = arith.constant 0 : index
    %158 = vector.load %arg21[%c1_105, %c0_106, %c0_107] : memref<4x128x4xbf16, #tpu.memory_space<vmem>>, vector<1x128x4xbf16>
    %159 = vector.shape_cast %158 : vector<1x128x4xbf16> to vector<128x4xbf16>
    %cst_108 = arith.constant dense<0.000000e+00> : vector<4x4xf32>
    %160 = tpu.matmul %157, %159, %cst_108 {dimension_numbers = #tpu.dot_dimension_numbers<[1], [0], [0], [1], [0, 0, 1, 1], [], []>} : vector<4x128xbf16>, vector<128x4xbf16>, vector<4x4xf32> -> vector<4x4xf32>
    %c1_109 = arith.constant 1 : index
    %c0_110 = arith.constant 0 : index
    %c0_111 = arith.constant 0 : index
    %161 = vector.load %arg22[%c1_109, %c0_110, %c0_111] : memref<4x1x4xf32, #tpu.memory_space<vmem>>, vector<1x1x4xf32>
    %162 = vector.shape_cast %161 : vector<1x1x4xf32> to vector<1x4xf32>
    %163 = vector.broadcast %162 : vector<1x4xf32> to vector<4x4xf32>
    %164 = arith.addf %160, %163 : vector<4x4xf32>
    %165 = arith.negf %164 : vector<4x4xf32>
    %166 = math.exp %165 : vector<4x4xf32>
    %cst_112 = arith.constant 1.000000e+00 : f32
    %167 = vector.broadcast %cst_112 : f32 to vector<4x4xf32>
    %168 = arith.addf %167, %166 : vector<4x4xf32>
    %169 = arith.divf %167, %168 : vector<4x4xf32>
    %cst_113 = arith.constant dense<0.000000e+00> : vector<4x128xf32>
    %170 = tpu.matmul %169, %63, %cst_113 {dimension_numbers = #tpu.dot_dimension_numbers<[1], [0], [0], [1], [0, 0, 1, 1], [], []>} : vector<4x4xf32>, vector<4x128xf32>, vector<4x128xf32> -> vector<4x128xf32>
    %171 = arith.mulf %170, %155 : vector<4x128xf32>
    %cst_114 = arith.constant 1.000000e+00 : f32
    %172 = vector.broadcast %cst_114 : f32 to vector<4x128xf32>
    %173 = arith.subf %172, %170 : vector<4x128xf32>
    %174 = arith.mulf %173, %127 : vector<4x128xf32>
    %175 = arith.addf %171, %174 : vector<4x128xf32>
    %c1_115 = arith.constant 1 : index
    %c0_116 = arith.constant 0 : index
    %c0_117 = arith.constant 0 : index
    %176 = vector.load %arg23[%c1_115, %c0_116, %c0_117] : memref<4x4x128xf32, #tpu.memory_space<vmem>>, vector<1x4x128xf32>
    %177 = vector.shape_cast %176 : vector<1x4x128xf32> to vector<4x128xf32>
    %178 = vector.shape_cast %175 : vector<4x128xf32> to vector<1x4x128xf32>
    tpu.vector_store %arg23[%c1_115, %c0_116, %c0_117], %178 {strides = array<i32>} : memref<4x4x128xf32, #tpu.memory_space<vmem>>, vector<1x4x128xf32>,
    %179 = vector.extract_strided_slice %49 {offsets = [0, 0, 1], sizes = [4, 8, 1], strides = [1, 1, 1]} : vector<4x8x4xf32> to vector<4x8x1xf32>
    %180 = vector.shape_cast %179 : vector<4x8x1xf32> to vector<4x8xf32>
    %181 = tpu.concatenate %125, %180, %169, %64 in 1 : vector<4x32xf32>, vector<4x8xf32>, vector<4x4xf32>, vector<4x84xf32> -> vector<4x128xf32>
    %c1_118 = arith.constant 1 : index
    %c0_119 = arith.constant 0 : index
    %c0_120 = arith.constant 0 : index
    %182 = vector.load %arg24[%c1_118, %c0_119, %c0_120] : memref<4x4x128xf32, #tpu.memory_space<vmem>>, vector<1x4x128xf32>
    %183 = vector.shape_cast %182 : vector<1x4x128xf32> to vector<4x128xf32>
    %184 = vector.shape_cast %181 : vector<4x128xf32> to vector<1x4x128xf32>
    tpu.vector_store %arg24[%c1_118, %c0_119, %c0_120], %184 {strides = array<i32>} : memref<4x4x128xf32, #tpu.memory_space<vmem>>, vector<1x4x128xf32>,
    %185 = vector.extract_strided_slice %62 {offsets = [0, 64], sizes = [4, 32], strides = [1, 1]} : vector<4x128xf32> to vector<4x32xf32>
    %c2 = arith.constant 2 : index
    %c0_121 = arith.constant 0 : index
    %c0_122 = arith.constant 0 : index
    %186 = vector.load %arg2[%c2, %c0_121, %c0_122] : memref<4x4x128xf32, #tpu.memory_space<vmem>>, vector<1x4x128xf32>
    %187 = vector.shape_cast %186 : vector<1x4x128xf32> to vector<4x128xf32>
    %188 = vector.extract_strided_slice %187 {offsets = [0, 96], sizes = [4, 32], strides = [1, 1]} : vector<4x128xf32> to vector<4x32xf32>
    %cst_123 = arith.constant 0.000000e+00 : f32
    %189 = vector.broadcast %cst_123 : f32 to vector<4x32xf32>
    %190 = arith.maximumf %185, %189 : vector<4x32xf32>
    %cst_124 = arith.constant 0.000000e+00 : f32
    %191 = vector.broadcast %cst_124 : f32 to vector<4x32xf32>
    %192 = arith.maximumf %188, %191 : vector<4x32xf32>
    %193 = tpu.concatenate %190, %192 in 1 : vector<4x32xf32>, vector<4x32xf32> -> vector<4x64xf32>
    %194 = arith.truncf %193 : vector<4x64xf32> to vector<4x64xbf16>
    %c2_125 = arith.constant 2 : index
    %c0_126 = arith.constant 0 : index
    %c0_127 = arith.constant 0 : index
    %195 = vector.load %arg17[%c2_125, %c0_126, %c0_127] : memref<4x64x256xbf16, #tpu.memory_space<vmem>>, vector<1x64x256xbf16>
    %196 = vector.shape_cast %195 : vector<1x64x256xbf16> to vector<64x256xbf16>
    %cst_128 = arith.constant dense<0.000000e+00> : vector<4x256xf32>
    %197 = tpu.matmul %194, %196, %cst_128 {dimension_numbers = #tpu.dot_dimension_numbers<[1], [0], [0], [1], [0, 0, 1, 1], [], []>} : vector<4x64xbf16>, vector<64x256xbf16>, vector<4x256xf32> -> vector<4x256xf32>
    %c2_129 = arith.constant 2 : index
    %c0_130 = arith.constant 0 : index
    %c0_131 = arith.constant 0 : index
    %198 = vector.load %arg18[%c2_129, %c0_130, %c0_131] : memref<4x1x256xf32, #tpu.memory_space<vmem>>, vector<1x1x256xf32>
    %199 = vector.shape_cast %198 : vector<1x1x256xf32> to vector<1x256xf32>
    %200 = vector.broadcast %199 : vector<1x256xf32> to vector<4x256xf32>
    %201 = arith.addf %197, %200 : vector<4x256xf32>
    %cst_132 = arith.constant 0.000000e+00 : f32
    %202 = vector.broadcast %cst_132 : f32 to vector<4x256xf32>
    %203 = arith.maximumf %201, %202 : vector<4x256xf32>
    %204 = vector.extract_strided_slice %203 {offsets = [0, 0], sizes = [4, 128], strides = [1, 1]} : vector<4x256xf32> to vector<4x128xf32>
    %205 = arith.truncf %204 : vector<4x128xf32> to vector<4x128xbf16>
    %c2_133 = arith.constant 2 : index
    %c0_134 = arith.constant 0 : index
    %c0_135 = arith.constant 0 : index
    %206 = vector.load %arg19[%c2_133, %c0_134, %c0_135] : memref<4x128x128xbf16, #tpu.memory_space<vmem>>, vector<1x128x128xbf16>
    %207 = vector.shape_cast %206 : vector<1x128x128xbf16> to vector<128x128xbf16>
    %cst_136 = arith.constant dense<0.000000e+00> : vector<4x128xf32>
    %208 = tpu.matmul %205, %207, %cst_136 {dimension_numbers = #tpu.dot_dimension_numbers<[1], [0], [0], [1], [0, 0, 1, 1], [], []>} : vector<4x128xbf16>, vector<128x128xbf16>, vector<4x128xf32> -> vector<4x128xf32>
    %c2_137 = arith.constant 2 : index
    %c0_138 = arith.constant 0 : index
    %c0_139 = arith.constant 0 : index
    %209 = vector.load %arg20[%c2_137, %c0_138, %c0_139] : memref<4x1x128xf32, #tpu.memory_space<vmem>>, vector<1x1x128xf32>
    %210 = vector.shape_cast %209 : vector<1x1x128xf32> to vector<1x128xf32>
    %211 = vector.broadcast %210 : vector<1x128xf32> to vector<4x128xf32>
    %212 = arith.addf %208, %211 : vector<4x128xf32>
    %cst_140 = arith.constant 0.000000e+00 : f32
    %213 = vector.broadcast %cst_140 : f32 to vector<4x128xf32>
    %214 = arith.maximumf %212, %213 : vector<4x128xf32>
    %215 = math.tanh %214 : vector<4x128xf32>
    %216 = vector.extract_strided_slice %203 {offsets = [0, 128], sizes = [4, 128], strides = [1, 1]} : vector<4x256xf32> to vector<4x128xf32>
    %217 = arith.truncf %216 : vector<4x128xf32> to vector<4x128xbf16>
    %c2_141 = arith.constant 2 : index
    %c0_142 = arith.constant 0 : index
    %c0_143 = arith.constant 0 : index
    %218 = vector.load %arg21[%c2_141, %c0_142, %c0_143] : memref<4x128x4xbf16, #tpu.memory_space<vmem>>, vector<1x128x4xbf16>
    %219 = vector.shape_cast %218 : vector<1x128x4xbf16> to vector<128x4xbf16>
    %cst_144 = arith.constant dense<0.000000e+00> : vector<4x4xf32>
    %220 = tpu.matmul %217, %219, %cst_144 {dimension_numbers = #tpu.dot_dimension_numbers<[1], [0], [0], [1], [0, 0, 1, 1], [], []>} : vector<4x128xbf16>, vector<128x4xbf16>, vector<4x4xf32> -> vector<4x4xf32>
    %c2_145 = arith.constant 2 : index
    %c0_146 = arith.constant 0 : index
    %c0_147 = arith.constant 0 : index
    %221 = vector.load %arg22[%c2_145, %c0_146, %c0_147] : memref<4x1x4xf32, #tpu.memory_space<vmem>>, vector<1x1x4xf32>
    %222 = vector.shape_cast %221 : vector<1x1x4xf32> to vector<1x4xf32>
    %223 = vector.broadcast %222 : vector<1x4xf32> to vector<4x4xf32>
    %224 = arith.addf %220, %223 : vector<4x4xf32>
    %225 = arith.negf %224 : vector<4x4xf32>
    %226 = math.exp %225 : vector<4x4xf32>
    %cst_148 = arith.constant 1.000000e+00 : f32
    %227 = vector.broadcast %cst_148 : f32 to vector<4x4xf32>
    %228 = arith.addf %227, %226 : vector<4x4xf32>
    %229 = arith.divf %227, %228 : vector<4x4xf32>
    %cst_149 = arith.constant dense<0.000000e+00> : vector<4x128xf32>
    %230 = tpu.matmul %229, %63, %cst_149 {dimension_numbers = #tpu.dot_dimension_numbers<[1], [0], [0], [1], [0, 0, 1, 1], [], []>} : vector<4x4xf32>, vector<4x128xf32>, vector<4x128xf32> -> vector<4x128xf32>
    %231 = arith.mulf %230, %215 : vector<4x128xf32>
    %cst_150 = arith.constant 1.000000e+00 : f32
    %232 = vector.broadcast %cst_150 : f32 to vector<4x128xf32>
    %233 = arith.subf %232, %230 : vector<4x128xf32>
    %234 = arith.mulf %233, %187 : vector<4x128xf32>
    %235 = arith.addf %231, %234 : vector<4x128xf32>
    %c2_151 = arith.constant 2 : index
    %c0_152 = arith.constant 0 : index
    %c0_153 = arith.constant 0 : index
    %236 = vector.load %arg23[%c2_151, %c0_152, %c0_153] : memref<4x4x128xf32, #tpu.memory_space<vmem>>, vector<1x4x128xf32>
    %237 = vector.shape_cast %236 : vector<1x4x128xf32> to vector<4x128xf32>
    %238 = vector.shape_cast %235 : vector<4x128xf32> to vector<1x4x128xf32>
    tpu.vector_store %arg23[%c2_151, %c0_152, %c0_153], %238 {strides = array<i32>} : memref<4x4x128xf32, #tpu.memory_space<vmem>>, vector<1x4x128xf32>,
    %239 = vector.extract_strided_slice %49 {offsets = [0, 0, 2], sizes = [4, 8, 1], strides = [1, 1, 1]} : vector<4x8x4xf32> to vector<4x8x1xf32>
    %240 = vector.shape_cast %239 : vector<4x8x1xf32> to vector<4x8xf32>
    %241 = tpu.concatenate %185, %240, %229, %64 in 1 : vector<4x32xf32>, vector<4x8xf32>, vector<4x4xf32>, vector<4x84xf32> -> vector<4x128xf32>
    %c2_154 = arith.constant 2 : index
    %c0_155 = arith.constant 0 : index
    %c0_156 = arith.constant 0 : index
    %242 = vector.load %arg24[%c2_154, %c0_155, %c0_156] : memref<4x4x128xf32, #tpu.memory_space<vmem>>, vector<1x4x128xf32>
    %243 = vector.shape_cast %242 : vector<1x4x128xf32> to vector<4x128xf32>
    %244 = vector.shape_cast %241 : vector<4x128xf32> to vector<1x4x128xf32>
    tpu.vector_store %arg24[%c2_154, %c0_155, %c0_156], %244 {strides = array<i32>} : memref<4x4x128xf32, #tpu.memory_space<vmem>>, vector<1x4x128xf32>,
    %245 = vector.extract_strided_slice %62 {offsets = [0, 96], sizes = [4, 32], strides = [1, 1]} : vector<4x128xf32> to vector<4x32xf32>
    %c3 = arith.constant 3 : index
    %c0_157 = arith.constant 0 : index
    %c0_158 = arith.constant 0 : index
    %246 = vector.load %arg2[%c3, %c0_157, %c0_158] : memref<4x4x128xf32, #tpu.memory_space<vmem>>, vector<1x4x128xf32>
    %247 = vector.shape_cast %246 : vector<1x4x128xf32> to vector<4x128xf32>
    %248 = vector.extract_strided_slice %247 {offsets = [0, 96], sizes = [4, 32], strides = [1, 1]} : vector<4x128xf32> to vector<4x32xf32>
    %cst_159 = arith.constant 0.000000e+00 : f32
    %249 = vector.broadcast %cst_159 : f32 to vector<4x32xf32>
    %250 = arith.maximumf %245, %249 : vector<4x32xf32>
    %cst_160 = arith.constant 0.000000e+00 : f32
    %251 = vector.broadcast %cst_160 : f32 to vector<4x32xf32>
    %252 = arith.maximumf %248, %251 : vector<4x32xf32>
    %253 = tpu.concatenate %250, %252 in 1 : vector<4x32xf32>, vector<4x32xf32> -> vector<4x64xf32>
    %254 = arith.truncf %253 : vector<4x64xf32> to vector<4x64xbf16>
    %c3_161 = arith.constant 3 : index
    %c0_162 = arith.constant 0 : index
    %c0_163 = arith.constant 0 : index
    %255 = vector.load %arg17[%c3_161, %c0_162, %c0_163] : memref<4x64x256xbf16, #tpu.memory_space<vmem>>, vector<1x64x256xbf16>
    %256 = vector.shape_cast %255 : vector<1x64x256xbf16> to vector<64x256xbf16>
    %cst_164 = arith.constant dense<0.000000e+00> : vector<4x256xf32>
    %257 = tpu.matmul %254, %256, %cst_164 {dimension_numbers = #tpu.dot_dimension_numbers<[1], [0], [0], [1], [0, 0, 1, 1], [], []>} : vector<4x64xbf16>, vector<64x256xbf16>, vector<4x256xf32> -> vector<4x256xf32>
    %c3_165 = arith.constant 3 : index
    %c0_166 = arith.constant 0 : index
    %c0_167 = arith.constant 0 : index
    %258 = vector.load %arg18[%c3_165, %c0_166, %c0_167] : memref<4x1x256xf32, #tpu.memory_space<vmem>>, vector<1x1x256xf32>
    %259 = vector.shape_cast %258 : vector<1x1x256xf32> to vector<1x256xf32>
    %260 = vector.broadcast %259 : vector<1x256xf32> to vector<4x256xf32>
    %261 = arith.addf %257, %260 : vector<4x256xf32>
    %cst_168 = arith.constant 0.000000e+00 : f32
    %262 = vector.broadcast %cst_168 : f32 to vector<4x256xf32>
    %263 = arith.maximumf %261, %262 : vector<4x256xf32>
    %264 = vector.extract_strided_slice %263 {offsets = [0, 0], sizes = [4, 128], strides = [1, 1]} : vector<4x256xf32> to vector<4x128xf32>
    %265 = arith.truncf %264 : vector<4x128xf32> to vector<4x128xbf16>
    %c3_169 = arith.constant 3 : index
    %c0_170 = arith.constant 0 : index
    %c0_171 = arith.constant 0 : index
    %266 = vector.load %arg19[%c3_169, %c0_170, %c0_171] : memref<4x128x128xbf16, #tpu.memory_space<vmem>>, vector<1x128x128xbf16>
    %267 = vector.shape_cast %266 : vector<1x128x128xbf16> to vector<128x128xbf16>
    %cst_172 = arith.constant dense<0.000000e+00> : vector<4x128xf32>
    %268 = tpu.matmul %265, %267, %cst_172 {dimension_numbers = #tpu.dot_dimension_numbers<[1], [0], [0], [1], [0, 0, 1, 1], [], []>} : vector<4x128xbf16>, vector<128x128xbf16>, vector<4x128xf32> -> vector<4x128xf32>
    %c3_173 = arith.constant 3 : index
    %c0_174 = arith.constant 0 : index
    %c0_175 = arith.constant 0 : index
    %269 = vector.load %arg20[%c3_173, %c0_174, %c0_175] : memref<4x1x128xf32, #tpu.memory_space<vmem>>, vector<1x1x128xf32>
    %270 = vector.shape_cast %269 : vector<1x1x128xf32> to vector<1x128xf32>
    %271 = vector.broadcast %270 : vector<1x128xf32> to vector<4x128xf32>
    %272 = arith.addf %268, %271 : vector<4x128xf32>
    %cst_176 = arith.constant 0.000000e+00 : f32
    %273 = vector.broadcast %cst_176 : f32 to vector<4x128xf32>
    %274 = arith.maximumf %272, %273 : vector<4x128xf32>
    %275 = math.tanh %274 : vector<4x128xf32>
    %276 = vector.extract_strided_slice %263 {offsets = [0, 128], sizes = [4, 128], strides = [1, 1]} : vector<4x256xf32> to vector<4x128xf32>
    %277 = arith.truncf %276 : vector<4x128xf32> to vector<4x128xbf16>
    %c3_177 = arith.constant 3 : index
    %c0_178 = arith.constant 0 : index
    %c0_179 = arith.constant 0 : index
    %278 = vector.load %arg21[%c3_177, %c0_178, %c0_179] : memref<4x128x4xbf16, #tpu.memory_space<vmem>>, vector<1x128x4xbf16>
    %279 = vector.shape_cast %278 : vector<1x128x4xbf16> to vector<128x4xbf16>
    %cst_180 = arith.constant dense<0.000000e+00> : vector<4x4xf32>
    %280 = tpu.matmul %277, %279, %cst_180 {dimension_numbers = #tpu.dot_dimension_numbers<[1], [0], [0], [1], [0, 0, 1, 1], [], []>} : vector<4x128xbf16>, vector<128x4xbf16>, vector<4x4xf32> -> vector<4x4xf32>
    %c3_181 = arith.constant 3 : index
    %c0_182 = arith.constant 0 : index
    %c0_183 = arith.constant 0 : index
    %281 = vector.load %arg22[%c3_181, %c0_182, %c0_183] : memref<4x1x4xf32, #tpu.memory_space<vmem>>, vector<1x1x4xf32>
    %282 = vector.shape_cast %281 : vector<1x1x4xf32> to vector<1x4xf32>
    %283 = vector.broadcast %282 : vector<1x4xf32> to vector<4x4xf32>
    %284 = arith.addf %280, %283 : vector<4x4xf32>
    %285 = arith.negf %284 : vector<4x4xf32>
    %286 = math.exp %285 : vector<4x4xf32>
    %cst_184 = arith.constant 1.000000e+00 : f32
    %287 = vector.broadcast %cst_184 : f32 to vector<4x4xf32>
    %288 = arith.addf %287, %286 : vector<4x4xf32>
    %289 = arith.divf %287, %288 : vector<4x4xf32>
    %cst_185 = arith.constant dense<0.000000e+00> : vector<4x128xf32>
    %290 = tpu.matmul %289, %63, %cst_185 {dimension_numbers = #tpu.dot_dimension_numbers<[1], [0], [0], [1], [0, 0, 1, 1], [], []>} : vector<4x4xf32>, vector<4x128xf32>, vector<4x128xf32> -> vector<4x128xf32>
    %291 = arith.mulf %290, %275 : vector<4x128xf32>
    %cst_186 = arith.constant 1.000000e+00 : f32
    %292 = vector.broadcast %cst_186 : f32 to vector<4x128xf32>
    %293 = arith.subf %292, %290 : vector<4x128xf32>
    %294 = arith.mulf %293, %247 : vector<4x128xf32>
    %295 = arith.addf %291, %294 : vector<4x128xf32>
    %c3_187 = arith.constant 3 : index
    %c0_188 = arith.constant 0 : index
    %c0_189 = arith.constant 0 : index
    %296 = vector.load %arg23[%c3_187, %c0_188, %c0_189] : memref<4x4x128xf32, #tpu.memory_space<vmem>>, vector<1x4x128xf32>
    %297 = vector.shape_cast %296 : vector<1x4x128xf32> to vector<4x128xf32>
    %298 = vector.shape_cast %295 : vector<4x128xf32> to vector<1x4x128xf32>
    tpu.vector_store %arg23[%c3_187, %c0_188, %c0_189], %298 {strides = array<i32>} : memref<4x4x128xf32, #tpu.memory_space<vmem>>, vector<1x4x128xf32>,
    %299 = vector.extract_strided_slice %49 {offsets = [0, 0, 3], sizes = [4, 8, 1], strides = [1, 1, 1]} : vector<4x8x4xf32> to vector<4x8x1xf32>
    %300 = vector.shape_cast %299 : vector<4x8x1xf32> to vector<4x8xf32>
    %301 = tpu.concatenate %245, %300, %289, %64 in 1 : vector<4x32xf32>, vector<4x8xf32>, vector<4x4xf32>, vector<4x84xf32> -> vector<4x128xf32>
    %c3_190 = arith.constant 3 : index
    %c0_191 = arith.constant 0 : index
    %c0_192 = arith.constant 0 : index
    %302 = vector.load %arg24[%c3_190, %c0_191, %c0_192] : memref<4x4x128xf32, #tpu.memory_space<vmem>>, vector<1x4x128xf32>
    %303 = vector.shape_cast %302 : vector<1x4x128xf32> to vector<4x128xf32>
    %304 = vector.shape_cast %301 : vector<4x128xf32> to vector<1x4x128xf32>
    tpu.vector_store %arg24[%c3_190, %c0_191, %c0_192], %304 {strides = array<i32>} : memref<4x4x128xf32, #tpu.memory_space<vmem>>, vector<1x4x128xf32>,
    return
  }
  func.func @transform_0(%arg0: i32) -> (i32, i32, i32) {
    %c0_i32 = arith.constant 0 : i32
    %c0_i32_0 = arith.constant 0 : i32
    %c0_i32_1 = arith.constant 0 : i32
    return %arg0, %c0_i32, %c0_i32_0 : i32, i32, i32
  }
  func.func @transform_1(%arg0: i32) -> (i32, i32, i32) {
    %c0_i32 = arith.constant 0 : i32
    %c0_i32_0 = arith.constant 0 : i32
    %c0_i32_1 = arith.constant 0 : i32
    return %arg0, %c0_i32, %c0_i32_0 : i32, i32, i32
  }
  func.func @transform_2(%arg0: i32) -> (i32, i32) {
    %c0_i32 = arith.constant 0 : i32
    %c0_i32_0 = arith.constant 0 : i32
    %c0_i32_1 = arith.constant 0 : i32
    return %c0_i32, %c0_i32_0 : i32, i32
  }
  func.func @transform_3(%arg0: i32) -> (i32, i32) {
    %c0_i32 = arith.constant 0 : i32
    %c0_i32_0 = arith.constant 0 : i32
    %c0_i32_1 = arith.constant 0 : i32
    return %c0_i32, %c0_i32_0 : i32, i32
  }
  func.func @transform_4(%arg0: i32) -> (i32, i32) {
    %c0_i32 = arith.constant 0 : i32
    %c0_i32_0 = arith.constant 0 : i32
    %c0_i32_1 = arith.constant 0 : i32
    return %c0_i32, %c0_i32_0 : i32, i32
  }
  func.func @transform_5(%arg0: i32) -> (i32, i32) {
    %c0_i32 = arith.constant 0 : i32
    %c0_i32_0 = arith.constant 0 : i32
    %c0_i32_1 = arith.constant 0 : i32
    return %c0_i32, %c0_i32_0 : i32, i32
  }
  func.func @transform_6(%arg0: i32) -> (i32, i32) {
    %c0_i32 = arith.constant 0 : i32
    %c0_i32_0 = arith.constant 0 : i32
    %c0_i32_1 = arith.constant 0 : i32
    return %c0_i32, %c0_i32_0 : i32, i32
  }
  func.func @transform_7(%arg0: i32) -> (i32, i32) {
    %c0_i32 = arith.constant 0 : i32
    %c0_i32_0 = arith.constant 0 : i32
    %c0_i32_1 = arith.constant 0 : i32
    return %c0_i32, %c0_i32_0 : i32, i32
  }
  func.func @transform_8(%arg0: i32) -> (i32, i32, i32) {
    %c0_i32 = arith.constant 0 : i32
    %c0_i32_0 = arith.constant 0 : i32
    %c0_i32_1 = arith.constant 0 : i32
    return %arg0, %c0_i32, %c0_i32_0 : i32, i32, i32
  }
  func.func @transform_9(%arg0: i32) -> (i32, i32, i32) {
    %c0_i32 = arith.constant 0 : i32
    %c0_i32_0 = arith.constant 0 : i32
    %c0_i32_1 = arith.constant 0 : i32
    return %arg0, %c0_i32, %c0_i32_0 : i32, i32, i32
  }
  func.func @transform_10(%arg0: i32) -> (i32, i32, i32) {
    %c0_i32 = arith.constant 0 : i32
    %c0_i32_0 = arith.constant 0 : i32
    %c0_i32_1 = arith.constant 0 : i32
    return %arg0, %c0_i32, %c0_i32_0 : i32, i32, i32
  }
  func.func @transform_11(%arg0: i32) -> (i32, i32, i32) {
    %c0_i32 = arith.constant 0 : i32
    %c0_i32_0 = arith.constant 0 : i32
    %c0_i32_1 = arith.constant 0 : i32
    return %arg0, %c0_i32, %c0_i32_0 : i32, i32, i32
  }
  func.func @transform_12(%arg0: i32) -> (i32, i32, i32) {
    %c0_i32 = arith.constant 0 : i32
    %c0_i32_0 = arith.constant 0 : i32
    %c0_i32_1 = arith.constant 0 : i32
    return %arg0, %c0_i32, %c0_i32_0 : i32, i32, i32
  }
  func.func @transform_13(%arg0: i32) -> (i32, i32, i32) {
    %c0_i32 = arith.constant 0 : i32
    %c0_i32_0 = arith.constant 0 : i32
    %c0_i32_1 = arith.constant 0 : i32
    return %arg0, %c0_i32, %c0_i32_0 : i32, i32, i32
  }
  func.func @transform_14(%arg0: i32) -> (i32, i32, i32) {
    %c0_i32 = arith.constant 0 : i32
    %c0_i32_0 = arith.constant 0 : i32
    %c0_i32_1 = arith.constant 0 : i32
    return %arg0, %c0_i32, %c0_i32_0 : i32, i32, i32
  }
  func.func @transform_15(%arg0: i32) -> (i32, i32, i32) {
    %c0_i32 = arith.constant 0 : i32
    %c0_i32_0 = arith.constant 0 : i32
    %c0_i32_1 = arith.constant 0 : i32
    return %arg0, %c0_i32, %c0_i32_0 : i32, i32, i32
  }
  func.func @transform_16(%arg0: i32) -> (i32, i32, i32) {
    %c0_i32 = arith.constant 0 : i32
    %c0_i32_0 = arith.constant 0 : i32
    %c0_i32_1 = arith.constant 0 : i32
    return %arg0, %c0_i32, %c0_i32_0 : i32, i32, i32
  }
  func.func @transform_17(%arg0: i32) -> (i32, i32, i32) {
    %c0_i32 = arith.constant 0 : i32
    %c0_i32_0 = arith.constant 0 : i32
    %c0_i32_1 = arith.constant 0 : i32
    return %arg0, %c0_i32, %c0_i32_0 : i32, i32, i32
  }
  func.func @transform_18(%arg0: i32) -> (i32, i32, i32) {
    %c0_i32 = arith.constant 0 : i32
    %c0_i32_0 = arith.constant 0 : i32
    %c0_i32_1 = arith.constant 0 : i32
    return %arg0, %c0_i32, %c0_i32_0 : i32, i32, i32
  }
  func.func @transform_19(%arg0: i32) -> (i32, i32, i32) {
    %c0_i32 = arith.constant 0 : i32
    %c0_i32_0 = arith.constant 0 : i32
    %c0_i32_1 = arith.constant 0 : i32
    return %arg0, %c0_i32, %c0_i32_0 : i32, i32, i32
  }
  func.func @transform_20(%arg0: i32) -> (i32, i32, i32) {
    %c0_i32 = arith.constant 0 : i32
    %c0_i32_0 = arith.constant 0 : i32
    %c0_i32_1 = arith.constant 0 : i32
    return %arg0, %c0_i32, %c0_i32_0 : i32, i32, i32
  }
  func.func @transform_21(%arg0: i32) -> (i32, i32, i32) {
    %c0_i32 = arith.constant 0 : i32
    %c0_i32_0 = arith.constant 0 : i32
    %c0_i32_1 = arith.constant 0 : i32
    return %arg0, %c0_i32, %c0_i32_0 : i32, i32, i32
  }
  func.func @transform_22(%arg0: i32) -> (i32, i32, i32) {
    %c0_i32 = arith.constant 0 : i32
    %c0_i32_0 = arith.constant 0 : i32
    %c0_i32_1 = arith.constant 0 : i32
    return %arg0, %c0_i32, %c0_i32_0 : i32, i32, i32
  }
  func.func @transform_23(%arg0: i32) -> (i32, i32, i32) {
    %c0_i32 = arith.constant 0 : i32
    %c0_i32_0 = arith.constant 0 : i32
    %c0_i32_1 = arith.constant 0 : i32
    return %arg0, %c0_i32, %c0_i32_0 : i32, i32, i32
  }
}

</mosaic_0001>

<bundles_post_ra>
// kernel: tpu_custom_call.1
= control target key start
LH: loop header
LB: loop body
LE: loop exit
PB: predicated region body
PF: predicated region fallthrough
CT: control target
= control target key end

     0   :  { %s5209_s0 = inlined_call_operand.vmem [shape: bf16[1,4,128], index: 0, kind: input, shape index: {}]   ;;  %s5210_s1 = inlined_call_operand.vmem [shape: f32[4,4,128], index: 1, kind: input, shape index: {}]   ;;  %s5211_s2 = inlined_call_operand.hbm [shape: bf16[32,32], index: 2, kind: input, shape index: {}]   ;;  %s5212_s3 = inlined_call_operand.hbm [shape: bf16[32,32], index: 3, kind: input, shape index: {}]   ;;  %s5213_s4 = inlined_call_operand.vmem [shape: bf16[128,16], index: 4, kind: input, shape index: {}]   ;;  %s5214_s5 = inlined_call_operand.hbm [shape: bf16[16,128], index: 5, kind: input, shape index: {}]   ;;  %s5215_s6 = inlined_call_operand.vmem [shape: bf16[16,4], index: 6, kind: input, shape index: {}]   ;;  %s5216_s7 = inlined_call_operand.hbm [shape: f32[4,128], index: 7, kind: input, shape index: {}]   ;;  %s5217_s8 = inlined_call_operand.vmem [shape: bf16[1,128,128], index: 8, kind: input, shape index: {}]   ;;  %s5218_s9 = inlined_call_operand.hbm [shape: f32[1,1,128], index: 9, kind: input, shape index: {}]   ;;  %s5219_s10 = inlined_call_operand.hbm [shape: bf16[1,32,128], index: 10, kind: input, shape index: {}]   ;;  %s5220_s11 = inlined_call_operand.hbm [shape: f32[1,1,128], index: 11, kind: input, shape index: {}]   ;;  %s5221_s12 = inlined_call_operand.hbm [shape: bf16[1,32,128], index: 12, kind: input, shape index: {}]   ;;  %s5222_s13 = inlined_call_operand.hbm [shape: f32[1,1,128], index: 13, kind: input, shape index: {}]   ;;  %s5223_s14 = inlined_call_operand.vmem [shape: bf16[1,128,128], index: 14, kind: input, shape index: {}]   ;;  %s5224_s15 = inlined_call_operand.hbm [shape: f32[1,1,128], index: 15, kind: input, shape index: {}]   ;;  %s5225_s16 = inlined_call_operand.vmem [shape: bf16[4,64,256], index: 16, kind: input, shape index: {}]   ;;  %s5226_s17 = inlined_call_operand.hbm [shape: f32[4,1,256], index: 17, kind: input, shape index: {}]   ;;  %s5227_s18 = inlined_call_operand.hbm [shape: bf16[4,128,128], index: 18, kind: input, shape index: {}]   ;;  %s5228_s19 = inlined_call_operand.vmem [shape: f32[4,1,128], index: 19, kind: input, shape index: {}]   ;;  %s5229_s20 = inlined_call_operand.vmem [shape: bf16[4,128,4], index: 20, kind: input, shape index: {}]   ;;  %s5230_s21 = inlined_call_operand.vmem [shape: f32[4,1,4], index: 21, kind: input, shape index: {}]   ;;  %s5231_s22 = inlined_call_operand.hbm [shape: f32[4,4,128], index: 22, kind: output, shape index: {0}]   ;;  %s5232_s23 = inlined_call_operand.hbm [shape: f32[4,4,128], index: 23, kind: output, shape index: {1}]  }
   0x1   :  { %5242 = sst [smem:[#allocation34_spill]] %s5209_s0 }
   0x2   :  { %5243 = sst [smem:[#allocation35_spill]] %s5210_s1 }
   0x3   :  { %5244 = sst [smem:[#allocation36_spill]] %s5211_s2 }
   0x4   :  { %5245 = sst [smem:[#allocation37_spill]] %s5212_s3 }
   0x5   :  { %5246 = sst [smem:[#allocation38_spill]] %s5213_s4 }
   0x6   :  { %5247 = sst [smem:[#allocation39_spill]] %s5214_s5 }
   0x7   :  { %5248 = sst [smem:[#allocation40_spill]] %s5215_s6 }
   0x8   :  { %5249 = sst [smem:[#allocation41_spill]] %s5216_s7 }
   0x9   :  { %5250 = sst [smem:[#allocation42_spill]] %s5231_s22 }
   0xa   :  { %29 = vsyncpa [#allocation3], 0 }
   0xb   :  { %30 = vsyncpa [#allocation6], 0 }
   0xc   :  { %31 = vsyncpa [#allocation9], 0 }
   0xd   :  { %32 = vsyncpa [#allocation12], 0 }
   0xe   :  { %33 = vsyncpa [#allocation15], 0 }
   0xf   :  { %34 = vsyncpa [#allocation18], 0 }
  0x10   :  { %35 = vsyncpa [#allocation21], 0 }
  0x11   :  { %36 = vsyncpa [#allocation4], 0 }
  0x12   :  { %37 = vsyncpa [#allocation24], 0  ;;  %s4198_s4 = smov [#allocation5]   ;;  %s4199_s24 = smov [#allocation8]  }
  0x13   :  { %s59_s30 = sshll.u32 %s4198_s4, 4  ;;  %s88_s25 = sshll.u32 %s4199_s24, 4  ;;  %s60_s30 = int_to_ptr.vmem [resolvable:$true] %s59_s30  ;;  %s89_s25 = int_to_ptr.vmem [resolvable:$true] %s88_s25 }
  0x14   :  { %s5251_s26 = sld [smem:[#allocation37_spill]] }
  0x1a   :  { %s3872_s2 = scalar_lea.hbm %s5251_s26, 256 }
  0x1b   :  { %p3873_p0 = scmp.ne.s32.totalorder %s5251_s26, %s3872_s2  ;;  %p3876_p1 = scmp.lt.u32.totalorder %s3872_s2, %s5251_s26 }
  0x1d   :  { %p3878_p2 = pnand %p3876_p1, %p3873_p0 }
  0x1f   :  { %3881 = shalt.err (!%p3878_p2)
}
  0x20   :  { %s3882_s29 = scalar_lea.vmem %s60_s30, 256  ;;  %p3887_p4 = scmp.lt.s32.totalorder %s60_s30, %s60_s30 }
  0x21   :  { %p3883_p3 = scmp.ne.s32.totalorder %s60_s30, %s3882_s29  ;;  %p3888_p5 = scmp.lt.s32.totalorder %s3882_s29, %s3882_s29 }
  0x23   :  { %p3889_p6 = por %p3888_p5, %p3887_p4 }
  0x25   :  { %p3890_p7 = pnand %p3889_p6, %p3883_p3 }
  0x27   :  { %3893 = shalt.err (!%p3890_p7)
}
  0x28   :  { %s5240_s3 = smov 64   ;;  %s4201_s0 = smov 4  }
  0x29   :  { %65 = dma.hbm_to_vmem [thread:$0]  %s5251_s26, 256, %s60_s30, [#allocation6], %s5240_s3, %s5240_s3, %s4201_s0  }
  0x2a   :  { %s5252_s2 = sld [smem:[#allocation41_spill]] }
  0x30   :  { %s3894_s6 = scalar_lea.hbm %s5252_s2, 64 }
  0x31   :  { %p3895_p8 = scmp.ne.s32.totalorder %s5252_s2, %s3894_s6  ;;  %p3898_p9 = scmp.lt.u32.totalorder %s3894_s6, %s5252_s2 }
  0x33   :  { %p3900_p10 = pnand %p3898_p9, %p3895_p8 }
  0x35   :  { %3903 = shalt.err (!%p3900_p10)
}
  0x36   :  { %s3904_s22 = scalar_lea.vmem %s89_s25, 64  ;;  %p3909_p12 = scmp.lt.s32.totalorder %s89_s25, %s89_s25 }
  0x37   :  { %p3905_p11 = scmp.ne.s32.totalorder %s89_s25, %s3904_s22  ;;  %p3910_p13 = scmp.lt.s32.totalorder %s3904_s22, %s3904_s22 }
  0x39   :  { %p3911_p0 = por %p3910_p13, %p3909_p12 }
  0x3b   :  { %p3912_p1 = pnand %p3911_p0, %p3905_p11 }
  0x3d   :  { %3915 = shalt.err (!%p3912_p1)
}
  0x3e   :  { %91 = dma.hbm_to_vmem [thread:$0]  %s5252_s2, 64, %s89_s25, [#allocation9]  }
  0x3f   :  { %s4202_s4 = smov [#allocation11]   ;;  %s4203_s5 = smov [#allocation14]  }
  0x40   :  { %s109_s24 = sshll.u32 %s4202_s4, 4  ;;  %s131_s1 = sshll.u32 %s4203_s5, 4  ;;  %s110_s24 = int_to_ptr.vmem [resolvable:$true] %s109_s24  ;;  %s4372_s1 = int_to_ptr.vmem [resolvable:$true] %s131_s1 }
  0x41   :  { %s3916_s7 = scalar_lea.hbm %s5219_s10, 256 }
  0x42   :  { %p3917_p2 = scmp.ne.s32.totalorder %s5219_s10, %s3916_s7  ;;  %p3920_p3 = scmp.lt.u32.totalorder %s3916_s7, %s5219_s10 }
  0x44   :  { %p3922_p4 = pnand %p3920_p3, %p3917_p2 }
  0x46   :  { %3925 = shalt.err (!%p3922_p4)
}
  0x47   :  { %s3926_s25 = scalar_lea.vmem %s110_s24, 256  ;;  %p3931_p6 = scmp.lt.s32.totalorder %s110_s24, %s110_s24 }
  0x48   :  { %p3927_p5 = scmp.ne.s32.totalorder %s110_s24, %s3926_s25  ;;  %p3932_p7 = scmp.lt.s32.totalorder %s3926_s25, %s3926_s25 }
  0x4a   :  { %p3933_p8 = por %p3932_p7, %p3931_p6 }
  0x4c   :  { %p3934_p9 = pnand %p3933_p8, %p3927_p5 }
  0x4e   :  { %3937 = shalt.err (!%p3934_p9)
}
  0x4f   :  { %s5253_s2 = smov 64   ;;  %s3938_s3 = scalar_lea.hbm %s5221_s12, 256 }
  0x50   :  { %115 = dma.hbm_to_vmem [thread:$0]  %s5219_s10, 256, %s110_s24, [#allocation12], %s5253_s2, %s5253_s2, %s4201_s0  }
  0x51   :  { %p3939_p10 = scmp.ne.s32.totalorder %s5221_s12, %s3938_s3  ;;  %p3942_p11 = scmp.lt.u32.totalorder %s3938_s3, %s5221_s12 }
  0x53   :  { %p3944_p12 = pnand %p3942_p11, %p3939_p10 }
  0x55   :  { %3947 = shalt.err (!%p3944_p12)
}
  0x56   :  { %s3948_s22 = scalar_lea.vmem %s4372_s1, 256  ;;  %p3953_p0 = scmp.lt.s32.totalorder %s4372_s1, %s4372_s1 }
  0x57   :  { %p3949_p13 = scmp.ne.s32.totalorder %s4372_s1, %s3948_s22  ;;  %p3954_p1 = scmp.lt.s32.totalorder %s3948_s22, %s3948_s22 }
  0x59   :  { %p3955_p2 = por %p3954_p1, %p3953_p0 }
  0x5b   :  { %p3956_p3 = pnand %p3955_p2, %p3949_p13 }
  0x5d   :  { %3959 = shalt.err (!%p3956_p3)
}
  0x5e   :  { %137 = dma.hbm_to_vmem [thread:$0]  %s5221_s12, 256, %s4372_s1, [#allocation15], %s5253_s2, %s5253_s2, %s4201_s0  }
  0x5f   :  { %s4204_s29 = smov [#allocation17]   ;;  %s4205_s30 = smov [#allocation2]  }
  0x60   :  { %s156_s25 = sshll.u32 %s4204_s29, 4  ;;  %s47_s26 = sshll.u32 %s4205_s30, 4  ;;  %s157_s25 = int_to_ptr.vmem [resolvable:$true] %s156_s25  ;;  %s4409_s26 = int_to_ptr.vmem [resolvable:$true] %s47_s26 }
  0x61   :  { %s3960_s3 = scalar_lea.hbm %s5224_s15, 16 }
  0x62   :  { %p3961_p4 = scmp.ne.s32.totalorder %s5224_s15, %s3960_s3  ;;  %p3964_p5 = scmp.lt.u32.totalorder %s3960_s3, %s5224_s15 }
  0x64   :  { %p3966_p6 = pnand %p3964_p5, %p3961_p4 }
  0x66   :  { %3969 = shalt.err (!%p3966_p6)
}
  0x67   :  { %s3970_s12 = scalar_lea.vmem %s157_s25, 16  ;;  %s3974_s1 = scalar_lea.vmem %s157_s25, 32 }
  0x68   :  { %p3971_p7 = scmp.ne.s32.totalorder %s157_s25, %s3970_s12  ;;  %p3975_p8 = scmp.lt.s32.totalorder %s157_s25, %s157_s25 }
  0x69   :  { %p3976_p9 = scmp.lt.s32.totalorder %s3974_s1, %s3970_s12 }
  0x6b   :  { %p3977_p10 = por %p3976_p9, %p3975_p8 }
  0x6d   :  { %p3978_p11 = pnand %p3977_p10, %p3971_p7 }
  0x6f   :  { %3981 = shalt.err (!%p3978_p11)
}
  0x70   :  { %159 = dma.hbm_to_vmem [thread:$0]  %s5224_s15, 16, %s157_s25, [#allocation18]  }
  0x71   :  { %s5254_s30 = sld [smem:[#allocation36_spill]] }
  0x77   :  { %s3982_s4 = scalar_lea.hbm %s5254_s30, 256 }
  0x78   :  { %p3983_p12 = scmp.ne.s32.totalorder %s5254_s30, %s3982_s4  ;;  %p3986_p13 = scmp.lt.u32.totalorder %s3982_s4, %s5254_s30 }
  0x7a   :  { %p3988_p0 = pnand %p3986_p13, %p3983_p12 }
  0x7c   :  { %3991 = shalt.err (!%p3988_p0)
}
  0x7d   :  { %s3992_s7 = scalar_lea.vmem %s4409_s26, 256  ;;  %p3997_p2 = scmp.lt.s32.totalorder %s4409_s26, %s4409_s26 }
  0x7e   :  { %p3993_p1 = scmp.ne.s32.totalorder %s4409_s26, %s3992_s7  ;;  %p3998_p3 = scmp.lt.s32.totalorder %s3992_s7, %s3992_s7 }
  0x80   :  { %p3999_p4 = por %p3998_p3, %p3997_p2 }
  0x82   :  { %p4000_p5 = pnand %p3999_p4, %p3993_p1 }
  0x84   :  { %4003 = shalt.err (!%p4000_p5)
}
  0x85   :  { %53 = dma.hbm_to_vmem [thread:$0]  %s5254_s30, 256, %s4409_s26, [#allocation3], %s5253_s2, %s5253_s2, %s4201_s0  }
  0x86   :  { %s4206_s28 = smov [#allocation7]   ;;  %s4207_s1 = smov [#allocation10]  }
  0x87   :  { %s73_s12 = sshll.u32 %s4206_s28, 4  ;;  %s100_s22 = sshll.u32 %s4207_s1, 4  ;;  %s74_s12 = int_to_ptr.vmem [resolvable:$true] %s73_s12  ;;  %s101_s22 = int_to_ptr.vmem [resolvable:$true] %s100_s22 }
  0x88   :  { %s5255_s29 = sld [smem:[#allocation39_spill]] }
  0x8e   :  { %s4004_s4 = scalar_lea.hbm %s5255_s29, 128 }
  0x8f   :  { %p4005_p6 = scmp.ne.s32.totalorder %s5255_s29, %s4004_s4  ;;  %p4008_p7 = scmp.lt.u32.totalorder %s4004_s4, %s5255_s29 }
  0x91   :  { %p4010_p8 = pnand %p4008_p7, %p4005_p6 }
  0x93   :  { %4013 = shalt.err (!%p4010_p8)
}
  0x94   :  { %s4014_s26 = scalar_lea.vmem %s74_s12, 128  ;;  %p4019_p10 = scmp.lt.s32.totalorder %s74_s12, %s74_s12 }
  0x95   :  { %p4015_p9 = scmp.ne.s32.totalorder %s74_s12, %s4014_s26  ;;  %p4020_p11 = scmp.lt.s32.totalorder %s4014_s26, %s4014_s26 }
  0x97   :  { %p4021_p12 = por %p4020_p11, %p4019_p10 }
  0x99   :  { %p4022_p13 = pnand %p4021_p12, %p4015_p9 }
  0x9b   :  { %4025 = shalt.err (!%p4022_p13)
}
  0x9c   :  { %79 = dma.hbm_to_vmem [thread:$0]  %s5255_s29, 128, %s74_s12, [#allocation6], %s5253_s2, %s5253_s2, %s4201_s0  }
  0x9d   :  { %s4026_s28 = scalar_lea.hbm %s5218_s9, 16 }
  0x9e   :  { %p4027_p0 = scmp.ne.s32.totalorder %s5218_s9, %s4026_s28  ;;  %p4030_p1 = scmp.lt.u32.totalorder %s4026_s28, %s5218_s9 }
  0xa0   :  { %p4032_p2 = pnand %p4030_p1, %p4027_p0 }
  0xa2   :  { %4035 = shalt.err (!%p4032_p2)
}
  0xa3   :  { %s4036_s5 = scalar_lea.vmem %s101_s22, 16  ;;  %s4040_s3 = scalar_lea.vmem %s101_s22, 32 }
  0xa4   :  { %p4037_p3 = scmp.ne.s32.totalorder %s101_s22, %s4036_s5  ;;  %p4041_p4 = scmp.lt.s32.totalorder %s101_s22, %s101_s22 }
  0xa5   :  { %p4042_p5 = scmp.lt.s32.totalorder %s4040_s3, %s4036_s5 }
  0xa7   :  { %p4043_p6 = por %p4042_p5, %p4041_p4 }
  0xa9   :  { %p4044_p7 = pnand %p4043_p6, %p4037_p3 }
  0xab   :  { %4047 = shalt.err (!%p4044_p7)
}
  0xac   :  { %103 = dma.hbm_to_vmem [thread:$0]  %s5218_s9, 16, %s101_s22, [#allocation9]  }
  0xad   :  { %s4208_s6 = smov [#allocation13]   ;;  %s4209_s26 = smov [#allocation16]  }
  0xae   :  { %s122_s27 = sshll.u32 %s4208_s6, 4  ;;  %s144_s30 = sshll.u32 %s4209_s26, 4  ;;  %s123_s27 = int_to_ptr.vmem [resolvable:$true] %s122_s27  ;;  %s145_s30 = int_to_ptr.vmem [resolvable:$true] %s144_s30 }
  0xaf   :  { %s4048_s25 = scalar_lea.hbm %s5220_s11, 16 }
  0xb0   :  { %p4049_p8 = scmp.ne.s32.totalorder %s5220_s11, %s4048_s25  ;;  %p4052_p9 = scmp.lt.u32.totalorder %s4048_s25, %s5220_s11 }
  0xb2   :  { %p4054_p10 = pnand %p4052_p9, %p4049_p8 }
  0xb4   :  { %4057 = shalt.err (!%p4054_p10)
}
  0xb5   :  { %s4058_s9 = scalar_lea.vmem %s123_s27, 16  ;;  %s4062_s22 = scalar_lea.vmem %s123_s27, 32 }
  0xb6   :  { %p4059_p11 = scmp.ne.s32.totalorder %s123_s27, %s4058_s9  ;;  %p4063_p12 = scmp.lt.s32.totalorder %s123_s27, %s123_s27 }
  0xb7   :  { %p4064_p13 = scmp.lt.s32.totalorder %s4062_s22, %s4058_s9 }
  0xb9   :  { %p4065_p0 = por %p4064_p13, %p4063_p12 }
  0xbb   :  { %p4066_p1 = pnand %p4065_p0, %p4059_p11 }
  0xbd   :  { %4069 = shalt.err (!%p4066_p1)
}
  0xbe   :  { %125 = dma.hbm_to_vmem [thread:$0]  %s5220_s11, 16, %s123_s27, [#allocation12]  }
  0xbf   :  { %s4070_s29 = scalar_lea.hbm %s5222_s13, 16 }
  0xc0   :  { %p4071_p2 = scmp.ne.s32.totalorder %s5222_s13, %s4070_s29  ;;  %p4074_p3 = scmp.lt.u32.totalorder %s4070_s29, %s5222_s13 }
  0xc2   :  { %p4076_p4 = pnand %p4074_p3, %p4071_p2 }
  0xc4   :  { %4079 = shalt.err (!%p4076_p4)
}
  0xc5   :  { %s4080_s25 = scalar_lea.vmem %s145_s30, 16  ;;  %s4084_s28 = scalar_lea.vmem %s145_s30, 32 }
  0xc6   :  { %p4081_p5 = scmp.ne.s32.totalorder %s145_s30, %s4080_s25  ;;  %p4085_p6 = scmp.lt.s32.totalorder %s145_s30, %s145_s30 }
  0xc7   :  { %p4086_p7 = scmp.lt.s32.totalorder %s4084_s28, %s4080_s25 }
  0xc9   :  { %p4087_p8 = por %p4086_p7, %p4085_p6 }
  0xcb   :  { %p4088_p9 = pnand %p4087_p8, %p4081_p5 }
  0xcd   :  { %4091 = shalt.err (!%p4088_p9)
}
  0xce   :  { %147 = dma.hbm_to_vmem [thread:$0]  %s5222_s13, 16, %s145_s30, [#allocation15]  }
  0xcf   :  { %s4210_s1 = smov [#allocation19]   ;;  %s4092_s22 = scalar_lea.hbm %s5226_s17, 128 }
  0xd0   :  { %s167_s10 = sshll.u32 %s4210_s1, 4  ;;  %p4093_p10 = scmp.ne.s32.totalorder %s5226_s17, %s4092_s22  ;;  %s168_s10 = int_to_ptr.vmem [resolvable:$true] %s167_s10 }
  0xd1   :  { %p4096_p11 = scmp.lt.u32.totalorder %s4092_s22, %s5226_s17 }
  0xd3   :  { %p4098_p12 = pnand %p4096_p11, %p4093_p10 }
  0xd5   :  { %4101 = shalt.err (!%p4098_p12)
}
  0xd6   :  { %s4102_s29 = scalar_lea.vmem %s168_s10, 128  ;;  %p4107_p0 = scmp.lt.s32.totalorder %s168_s10, %s168_s10 }
  0xd7   :  { %p4103_p13 = scmp.ne.s32.totalorder %s168_s10, %s4102_s29  ;;  %p4108_p1 = scmp.lt.s32.totalorder %s4102_s29, %s4102_s29 }
  0xd9   :  { %p4109_p2 = por %p4108_p1, %p4107_p0 }
  0xdb   :  { %p4110_p3 = pnand %p4109_p2, %p4103_p13 }
  0xdd   :  { %4113 = shalt.err (!%p4110_p3)
}
  0xde   :  { %s4211_s13 = smov 32   ;;  %s4212_s30 = smov 2  }
  0xdf   :  { %173 = dma.hbm_to_vmem [thread:$0]  %s5226_s17, 128, %s168_s10, [#allocation18], %s4211_s13, %s4211_s13, %s4212_s30  }
  0xe0   :  { %s4213_s7 = smov [#allocation20]   ;;  %s4114_s11 = scalar_lea.hbm %s5227_s18, 4096 }
  0xe1   :  { %s179_s15 = sshll.u32 %s4213_s7, 4  ;;  %p4115_p4 = scmp.ne.s32.totalorder %s5227_s18, %s4114_s11  ;;  %s180_s15 = int_to_ptr.vmem [resolvable:$true] %s179_s15 }
  0xe2   :  { %p4118_p5 = scmp.lt.u32.totalorder %s4114_s11, %s5227_s18 }
  0xe4   :  { %p4120_p6 = pnand %p4118_p5, %p4115_p4 }
  0xe6   :  { %4123 = shalt.err (!%p4120_p6)
}
  0xe7   :  { %s4124_s22 = scalar_lea.vmem %s180_s15, 4096  ;;  %p4129_p8 = scmp.lt.s32.totalorder %s180_s15, %s180_s15 }
  0xe8   :  { %p4125_p7 = scmp.ne.s32.totalorder %s180_s15, %s4124_s22  ;;  %p4130_p9 = scmp.lt.s32.totalorder %s4124_s22, %s4124_s22 }
  0xea   :  { %p4131_p10 = por %p4130_p9, %p4129_p8 }
  0xec   :  { %p4132_p11 = pnand %p4131_p10, %p4125_p7 }
  0xee   :  { %4135 = shalt.err (!%p4132_p11)
}
  0xef   :  { %185 = dma.hbm_to_vmem [thread:$0]  %s5227_s18, 4096, %s180_s15, [#allocation21], %s5253_s2, %s5253_s2, %s4201_s0  }
  0xf0   :  { %4180 = dma.done.wait [#allocation3], 256  }
  0xf1   :  { %4181 = vsyncadd [#allocation3], 4294967040 }
  0xf2   :  { %4182 = dma.done.wait [#allocation6], 384  }
  0xf3   :  { %4183 = vsyncadd [#allocation6], 4294966912 }
  0xf4   :  { %4184 = dma.done.wait [#allocation9], 80  }
  0xf5   :  { %4185 = vsyncadd [#allocation9], 4294967216 }
  0xf6   :  { %4186 = dma.done.wait [#allocation12], 272  }
  0xf7   :  { %4187 = vsyncadd [#allocation12], 4294967024 }
  0xf8   :  { %4188 = dma.done.wait [#allocation15], 272  }
  0xf9   :  { %4189 = vsyncadd [#allocation15], 4294967024 }
  0xfa   :  { %4190 = dma.done.wait [#allocation18], 144  }
  0xfb   :  { %4191 = vsyncadd [#allocation18], 4294967152 }
  0xfc   :  { %4192 = dma.done.wait [#allocation21], 4096  }
  0xfd   :  { %4193 = vsyncadd [#allocation21], 4294963200  ;;  %v4214_v0 = vmov 0.0   ;;  %vm4215_vm0 = vmmov 0   ;;  %v3684_v1 = vld [vmem:[%s5217_s8] sm:$0xff]   ;;  %v3685_v2 = vld [vmem:[%s5217_s8 + $0x8] sm:$0xff]   ;;  %v530_v32 = vlaneseq }
  0xfe   :  { %3372 = vmatprep.subr.bf16.mxu0 %v4214_v0  ;;  %3388 = vmatprep.mubr.msk.bf16.mxu0 %vm4215_vm0, %v4214_v0  ;;  %v3686_v3 = vld [vmem:[%s5217_s8 + $0x10] sm:$0xff]   ;;  %v3687_v6 = vld [vmem:[%s5217_s8 + $0x18] sm:$0xff]   ;;  %vm378_vm1 = vcmask 261120   ;;  %v3694_v7 = vld [vmem:[#allocation2] sm:$0xff]   ;;  %s5256_s27 = sld [smem:[#allocation38_spill]]  ;;  %s5257_s12 = sld [smem:[#allocation34_spill]] }
  0xff   :  { %3373 = vmatpush3.bf16.msra.mxu0 %v3684_v1  ;;  %v3691_v4 = vld [vmem:[#allocation11] sm:$0xff]   ;;  %v3693_v5 = vld [vmem:[#allocation11 + $0x8] sm:$0xff]   ;;  %3396 = vmatprep.mubr.msk.bf16.mxu1 %vm378_vm1, %v3694_v7  ;;  %v3696_v9 = vld [vmem:[#allocation14] sm:$0xff]   ;;  %v4216_v30 = vmov 1966171168   ;;  %v4595_v37 = vshrl.u32 %v530_v32, 7 }
 0x100   :  { %3374 = vmatprep.subr.bf16.mxu0 %v4214_v0  ;;  %3392 = vmatprep.subr.bf16.mxu1 %v3691_v4  ;;  %v3695_v8 = vld [vmem:[#allocation2 + $0x8] sm:$0xff]   ;;  %v3688_v10 = vld [vmem:[%s5217_s8 + $0x20] sm:$0xff]   ;;  %v3698_v12 = vld [vmem:[#allocation5] sm:$0xff]   ;;  %v528_v31 = vunpack.c.l.s4 %v4216_v30  ;;  %s5258_s24 = sld [smem:[#allocation40_spill]]  ;;  %vm690_vm2 = vcmask 130048   ;;  %s5259_s11 = sld [smem:[#allocation35_spill]] }
 0x101   :  { %3393 = vmatpush3.bf16.msra.mxu1 %v3691_v4  ;;  %v3697_v11 = vld [vmem:[#allocation14 + $0x8] sm:$0xff]   ;;  %v3690_v15 = vld [vmem:[%s5217_s8 + $0x30] sm:$0xff]   ;;  %v3699_v16 = vld [vmem:[#allocation5 + $0x8] sm:$0xff]   ;;  %v4601_v47 = vsub.s32 0, %v4595_v37  ;;  %vm952_vm3 = vcmask 1041409   ;;  %vm954_vm4 = vcmask 1042434  }
 0x102   :  { %3394 = vmatprep.subr.bf16.mxu1 %v3693_v5  ;;  %v3689_v13 = vld [vmem:[%s5217_s8 + $0x28] sm:$0xff]   ;;  %v3692_v18 = vld [vmem:[%s5217_s8 + $0x38] sm:$0xff]   ;;  %v529_v36 = vunpack.c.0.s8 %v528_v31  ;;  %vm956_vm5 = vcmask 1043459   ;;  %vm1118_vm6 = vcmask 523264   ;;  %vm1401_vm7 = vcmask 1043456  }
 0x103   :  { %3375 = vmatpush3.bf16.msra.mxu0 %v3685_v2  ;;  %v3003_v39 = vld [vmem:[#allocation10] ss:$0 sm:$0xff]  ;;  %v3012_v45 = vld [vmem:[#allocation13] ss:$0 sm:$0xff]  ;;  %vm1397_vm8 = vcmask 31744   ;;  %vm1523_vm9 = vcmask 326656  }
 0x104   :  { %3376 = vmatprep.subr.bf16.mxu0 %v4214_v0  ;;  %v3700_v14 = vld [vmem:[%s5256_s27] sm:$0xff]   ;;  %v3701_v17 = vld [vmem:[%s5256_s27 + $0x8] sm:$0xff]   ;;  %v3702_v19 = vld [vmem:[%s5256_s27 + $0x10] sm:$0xff]   ;;  %v532_v40 = vsub.s32 %v529_v36, %v4595_v37  ;;  %vm1525_vm10 = vcmask 359424  }
 0x105   :  { %3395 = vmatpush3.bf16.msra.mxu1 %v3693_v5  ;;  %v229_v20 = vld [vmem:[%s5257_s12] sm:$0x3]  ;;  %v3703_v21 = vld [vmem:[%s5256_s27 + $0x18] sm:$0xff]   ;;  %v3705_v23 = vld [vmem:[%s5256_s27 + $0x28] sm:$0xff]  }
 0x106   :  { %3400 = vmatprep.subr.bf16.mxu1 %v3696_v9  ;;  %v3704_v22 = vld [vmem:[%s5256_s27 + $0x20] sm:$0xff]   ;;  %v3706_v24 = vld [vmem:[%s5256_s27 + $0x30] sm:$0xff]   ;;  %v3707_v25 = vld [vmem:[%s5256_s27 + $0x38] sm:$0xff]   ;;  %s4219_s27 = smov 96  }
 0x107   :  { %3377 = vmatpush3.bf16.msra.mxu0 %v3686_v3  ;;  %v3708_v5 = vld [vmem:[%s5258_s24] sm:$0xff]   ;;  %s4222_s24 = smov 40  }
 0x108   :  { %3378 = vmatprep.subr.bf16.mxu0 %v4214_v0  ;;  %3397 = vmatmul.mubr.msk.bf16.vlgmr.msra.gmra.mrb[0].mxu1 %vm378_vm1, %v3695_v8 }
 0x109   :  { %3401 = vmatpush3.bf16.msra.mxu1 %v3696_v9  ;;  %3404 = vmatprep.mubr.msk.bf16.mxu1 %vm378_vm1, %v3698_v12 }
 0x10a   :  { %3402 = vmatprep.subr.bf16.mxu1 %v3697_v11 }
 0x10b   :  { %3379 = vmatpush3.bf16.msra.mxu0 %v3687_v6  ;;  %v4610_v6 = vld [vmem:[#allocation7] sm:$0xff]  }
 0x10c   :  { %3380 = vmatprep.subr.bf16.mxu0 %v4214_v0 }
 0x10d   :  { %3403 = vmatpush3.bf16.msra.mxu1 %v3697_v11 }
 0x10e   :  { %3408 = vmatprep.subr.bf16.mxu1 %v3700_v14 }
 0x10f   :  { %3381 = vmatpush3.bf16.msra.mxu0 %v3688_v10 }
 0x110   :  { %3382 = vmatprep.subr.bf16.mxu0 %v4214_v0  ;;  %3405 = vmatmul.mubr.msk.bf16.vlgmr.msra.gmra.mrb[4].mxu1 %vm378_vm1, %v3699_v16 }
 0x111   :  { %3409 = vmatpush3.bf16.msra.mxu1 %v3700_v14 }
 0x112   :  { %3410 = vmatprep.subr.bf16.mxu1 %v3701_v17 }
 0x113   :  { %3383 = vmatpush3.bf16.msra.mxu0 %v3689_v13 }
 0x114   :  { %3384 = vmatprep.subr.bf16.mxu0 %v4214_v0 }
 0x115   :  { %3411 = vmatpush3.bf16.msra.mxu1 %v3701_v17 }
 0x116   :  { %3412 = vmatprep.subr.bf16.mxu1 %v3702_v19 }
 0x117   :  { %3385 = vmatpush3.bf16.msra.mxu0 %v3690_v15 }
 0x118   :  { %3386 = vmatprep.subr.bf16.mxu0 %v4214_v0 }
 0x119   :  { %3413 = vmatpush3.bf16.msra.mxu1 %v3702_v19 }
 0x11a   :  { %3414 = vmatprep.subr.bf16.mxu1 %v3703_v21 }
 0x11b   :  { %3387 = vmatpush3.bf16.msra.mxu0 %v3692_v18 }
 0x11c   :  { %3428 = vmatprep.subr.bf16.mxu0 %v3708_v5 }
 0x11d   :  { %3415 = vmatpush3.bf16.msra.mxu1 %v3703_v21 }
 0x11e   :  { %3389 = vmatmul.mubr.bf16.vlgmr.msra.gmra.mrb[0].mxu0 %v229_v20  ;;  %3416 = vmatprep.subr.bf16.mxu1 %v3704_v22 }
 0x11f   :  { %3429 = vmatpush3.bf16.msra.mxu0 %v3708_v5 }
 0x120   :  { %3434 = vmatprep.subr.bf16.mxu0 %v4610_v6 }
 0x121   :  { %3417 = vmatpush3.bf16.msra.mxu1 %v3704_v22 }
 0x122   :  { %3418 = vmatprep.subr.bf16.mxu1 %v3705_v23 }
 0x125   :  { %3419 = vmatpush3.bf16.msra.mxu1 %v3705_v23 }
 0x126   :  { %3420 = vmatprep.subr.bf16.mxu1 %v3706_v24 }
 0x129   :  { %3421 = vmatpush3.bf16.msra.mxu1 %v3706_v24 }
 0x12a   :  { %3422 = vmatprep.subr.bf16.mxu1 %v3707_v25 }
 0x12d   :  { %3423 = vmatpush3.bf16.msra.mxu1 %v3707_v25 }
 0x1db   :  { %v3398_v26 = vpop.f32.mrb[0].mxu1 }
 0x1dc   :  { %v419_v27 = vpop.f32.mrb[1].mxu1  ;;  %v428_v55 = vadd.f32 %v3398_v26, %v3012_v45 }
 0x1dd   :  { %v3399_v28 = vpop.f32.mrb[2].mxu1  ;;  %v420_v51 = vadd.f32 %v3012_v45, %v419_v27 }
 0x1de   :  { %v422_v29 = vpop.f32.mrb[3].mxu1  ;;  %v431_v62 = vadd.f32 %v3399_v28, %v3012_v45 }
 0x1df   :  { %v423_v56 = vadd.f32 %v3012_v45, %v422_v29 }
 0x1e3   :  { %v4588_v33 = vpop.f32.mrb[4].mxu1 }
 0x1e4   :  { %v4590_v34 = vpop.f32.mrb[5].mxu1 }
 0x1e5   :  { %v4592_v35 = vpop.f32.mrb[6].mxu1 }
 0x1e6   :  { %v4597_v38 = vpop.f32.mrb[7].mxu1 }
 0x1f1   :  { %v335_v41 = vpop.f32.mrb[0].mxu0 }
 0x1f2   :  { %v336_v42 = vadd.f32 %v3003_v39, %v335_v41  ;;  %v3390_v43 = vpop.f32.mrb[1].mxu0 }
 0x1f3   :  { %v338_v44 = vpop.f32.mrb[2].mxu0 }
 0x1f4   :  { %v533_v46 = vrot.slane %v336_v42, %v532_v40  ;;  %v3391_v48 = vpop.f32.mrb[3].mxu0 }
 0x1f6   :  { %v534_v49 = vcombine.high %v533_v46, %v533_v46  ;;  %v541_v50 = vrot.slane %v533_v46, %v532_v40 }
 0x1f8   :  { %v548_v52 = vrot.slane %v534_v49, %v532_v40  ;;  %v549_v53 = vcombine.high %v541_v50, %v541_v50  ;;  %v554_v54 = vrot.slane %v541_v50, %v4601_v47 }
 0x1fa   :  { %v562_v57 = vrot.slane %v549_v53, %v4601_v47  ;;  %v571_v58 = vmul.f32 %v554_v54, %v420_v51  ;;  %v550_v59 = vcombine.high %v548_v52, %v548_v52  ;;  %v558_v60 = vrot.slane %v548_v52, %v4601_v47 }
 0x1fc   :  { %v573_v61 = vmul.f32 %v562_v57, %v428_v55  ;;  %v566_v63 = vrot.slane %v550_v59, %v4601_v47  ;;  %v572_v1 = vmul.f32 %v558_v60, %v423_v56 }
 0x1fe   :  { %v574_v2 = vmul.f32 %v566_v63, %v431_v62  ;;  %v575_v3 = vpack.c.bf16 %v572_v1, %v571_v58 }
 0x200   :  { %v576_v4 = vpack.c.bf16 %v574_v2, %v573_v61  ;;  %3424 = vmatprep.mubr.bf16.mxu1 %v575_v3 }
 0x202   :  { %3425 = vmatmul.mubr.bf16.vlgmr.msra.gmra.mrb[8].mxu1 %v576_v4 }
 0x2d5   :  { %v3426_v7 = vpop.f32.mrb[8].mxu1 }
 0x2d6   :  { %v705_v8 = vsel %vm690_vm2, %v3426_v7, -inf  ;;  %v675_v9 = vpop.f32.mrb[9].mxu1 }
 0x2d7   :  { %v706_v10 = vrot.slane %v705_v8, 4  ;;  %v691_v11 = vsel %vm690_vm2, %v675_v9, -inf  ;;  %v3427_v12 = vpop.f32.mrb[10].mxu1 }
 0x2d8   :  { %v692_v13 = vrot.slane %v691_v11, 4  ;;  %v712_v14 = vsel %vm690_vm2, %v3427_v12, -inf  ;;  %v678_v15 = vpop.f32.mrb[11].mxu1 }
 0x2d9   :  { %v707_v16 = vmax.f32 %v705_v8, %v706_v10  ;;  %v713_v17 = vrot.slane %v712_v14, 4  ;;  %v698_v18 = vsel %vm690_vm2, %v678_v15, -inf }
 0x2da   :  { %v693_v19 = vmax.f32 %v691_v11, %v692_v13  ;;  %v699_v20 = vrot.slane %v698_v18, 4 }
 0x2db   :  { %v708_v21 = vrot.slane %v707_v16, 2  ;;  %v714_v22 = vmax.f32 %v712_v14, %v713_v17 }
 0x2dc   :  { %v694_v23 = vrot.slane %v693_v19, 2  ;;  %v700_v24 = vmax.f32 %v698_v18, %v699_v20 }
 0x2dd   :  { %v709_v25 = vmax.f32 %v707_v16, %v708_v21  ;;  %v715_v26 = vrot.slane %v714_v22, 2 }
 0x2de   :  { %v695_v27 = vmax.f32 %v693_v19, %v694_v23  ;;  %v701_v28 = vrot.slane %v700_v24, 2 }
 0x2df   :  { %v710_v29 = vrot.slane %v709_v25, 1  ;;  %v716_v30 = vmax.f32 %v714_v22, %v715_v26 }
 0x2e0   :  { %v696_v31 = vrot.slane %v695_v27, 1  ;;  %v702_v36 = vmax.f32 %v700_v24, %v701_v28 }
 0x2e1   :  { %v711_v39 = vmax.f32 %v709_v25, %v710_v29  ;;  %v717_v40 = vrot.slane %v716_v30, 1 }
 0x2e2   :  { %v697_v41 = vmax.f32 %v695_v27, %v696_v31  ;;  %v703_v42 = vrot.slane %v702_v36, 1 }
 0x2e3   :  { %v721_v43 = vsub.f32 %v3426_v7, %v711_v39  ;;  %v718_v44 = vmax.f32 %v716_v30, %v717_v40  ;;  %v3710_v40 = vld [vmem:[%s5223_s14] sm:$0xff]  }
 0x2e4   :  { %v719_v45 = vsub.f32 %v675_v9, %v697_v41  ;;  %v704_v46 = vmax.f32 %v702_v36, %v703_v42  ;;  %v3712_v41 = vld [vmem:[%s5223_s14 + $0x10] sm:$0xff]   ;;  %v3713_v42 = vld [vmem:[%s5223_s14 + $0x18] sm:$0xff]  }
 0x2e5   :  { %v727_v48 = vmul.f32 1.442695, %v721_v43  ;;  %v722_v49 = vsub.f32 %v3427_v12, %v718_v44  ;;  %v3714_v43 = vld [vmem:[%s5223_s14 + $0x20] sm:$0xff]   ;;  %v3715_v44 = vld [vmem:[%s5223_s14 + $0x28] sm:$0xff]  }
 0x2e6   :  { %v723_v50 = vmul.f32 1.442695, %v719_v45  ;;  %v720_v51 = vsub.f32 %v678_v15, %v704_v46  ;;  %v3716_v45 = vld [vmem:[%s5223_s14 + $0x30] sm:$0xff]   ;;  %v3717_v46 = vld [vmem:[%s5223_s14 + $0x38] sm:$0xff]  }
 0x2e7   :  { %3830 = vpow2.f32 %v727_v48  ;;  %v729_v52 = vmul.f32 1.442695, %v722_v49  ;;  %v4664_v48 = vld [vmem:[%s5259_s11] sm:$0xf] }
 0x2e8   :  { %3832 = vpow2.f32 %v723_v50  ;;  %v725_v53 = vmul.f32 1.442695, %v720_v51  ;;  %v3718_v49 = vld [vmem:[%s5225_s16] ss:$8 sps:$4 sm:$0xff]   ;;  %v3720_v50 = vld [vmem:[%s5225_s16 + $0x4] ss:$8 sps:$4 sm:$0xff]  }
 0x2e9   :  { %3834 = vpow2.f32 %v729_v52  ;;  %v1051_v51 = vmax.f32 %v4664_v48, 0.0  ;;  %v3723_v52 = vld [vmem:[%s5225_s16 + $0x14] ss:$8 sps:$4 sm:$0xff]   ;;  %1122 = vmatprep.subr.bf16.mxu1 %v3720_v50  ;;  %v4706_v50 = vld [vmem:[%s5259_s11 + $0x4] sm:$0xf] }
 0x2ea   :  { %3836 = vpow2.f32 %v725_v53  ;;  %1123 = vmatpush1.bf16.msra.mxu1 %v3718_v49  ;;  %v3721_v53 = vld [vmem:[%s5225_s16 + $0x10] ss:$8 sps:$4 sm:$0xff]   ;;  %v3724_v49 = vld [vmem:[%s5225_s16 + $0x20] ss:$8 sps:$4 sm:$0xff]  }
 0x2eb   :  { %1053 = vrot.lane.b32.xlu0 %v1051_v51, %s5253_s2  ;;  %1124 = vmatprep.subr.bf16.mxu1 %v3723_v52  ;;  %v1530_v51 = vmax.f32 %v4706_v50, 0.0  ;;  %v3729_v52 = vld [vmem:[%s5225_s16 + $0x34] ss:$8 sps:$4 sm:$0xff]  }
 0x2ed   :  { %1536 = vrot.lane.b32.xlu1 %v1530_v51, %s5253_s2 }
 0x2ee   :  { %1125 = vmatpush1.bf16.msra.mxu1 %v3721_v53  ;;  %v3727_v53 = vld [vmem:[%s5225_s16 + $0x30] ss:$8 sps:$4 sm:$0xff]  }
 0x2f1   :  { %v3831_v54 = vpop.eup %3830 }
 0x2f2   :  { %v3833_v55 = vpop.eup %3832  ;;  %v745_v56 = vsel %vm690_vm2, %v3831_v54, 0.0 }
 0x2f3   :  { %v3835_v57 = vpop.eup %3834  ;;  %v746_v58 = vrot.slane %v745_v56, 4  ;;  %v731_v59 = vsel %vm690_vm2, %v3833_v55, 0.0 }
 0x2f4   :  { %v3837_v60 = vpop.eup %3836  ;;  %v732_v61 = vrot.slane %v731_v59, 4  ;;  %v752_v62 = vsel %vm690_vm2, %v3835_v57, 0.0 }
 0x2f5   :  { %v747_v63 = vadd.f32 %v746_v58, %v745_v56  ;;  %v753_v1 = vrot.slane %v752_v62, 4  ;;  %v738_v2 = vsel %vm690_vm2, %v3837_v60, 0.0  ;;  %v3019_v58 = vld [vmem:[#allocation16] ss:$0 sm:$0xff] }
 0x2f6   :  { %v733_v3 = vadd.f32 %v732_v61, %v731_v59  ;;  %v739_v4 = vrot.slane %v738_v2, 4  ;;  %v520_v59 = vadd.f32 %v4588_v33, %v3019_v58 }
 0x2f7   :  { %v748_v5 = vrot.slane %v747_v63, 2  ;;  %v754_v7 = vadd.f32 %v753_v1, %v752_v62  ;;  %v523_v62 = vadd.f32 %v4592_v35, %v3019_v58 }
 0x2f8   :  { %v734_v8 = vrot.slane %v733_v3, 2  ;;  %v740_v9 = vadd.f32 %v739_v4, %v738_v2  ;;  %v515_v2 = vadd.f32 %v3019_v58, %v4597_v38 }
 0x2f9   :  { %v749_v10 = vadd.f32 %v748_v5, %v747_v63  ;;  %v755_v11 = vrot.slane %v754_v7, 2 }
 0x2fa   :  { %v735_v12 = vadd.f32 %v734_v8, %v733_v3  ;;  %v741_v13 = vrot.slane %v740_v9, 2 }
 0x2fb   :  { %v750_v14 = vrot.slane %v749_v10, 1  ;;  %v756_v15 = vadd.f32 %v755_v11, %v754_v7 }
 0x2fc   :  { %v736_v16 = vrot.slane %v735_v12, 1  ;;  %v742_v17 = vadd.f32 %v741_v13, %v740_v9 }
 0x2fd   :  { %v751_v18 = vadd.f32 %v750_v14, %v749_v10  ;;  %v757_v19 = vrot.slane %v756_v15, 1 }
 0x2fe   :  { %v737_v20 = vadd.f32 %v736_v16, %v735_v12  ;;  %v743_v21 = vrot.slane %v742_v17, 1 }
 0x2ff   :  { %3838 = vrcp.f32 %v751_v18  ;;  %v758_v22 = vadd.f32 %v757_v19, %v756_v15 }
 0x300   :  { %3840 = vrcp.f32 %v737_v20  ;;  %v744_v23 = vadd.f32 %v743_v21, %v742_v17 }
 0x301   :  { %3842 = vrcp.f32 %v758_v22 }
 0x302   :  { %3844 = vrcp.f32 %v744_v23 }
 0x309   :  { %v3839_v24 = vpop.eup %3838 }
 0x30a   :  { %v3841_v25 = vpop.eup %3840  ;;  %v765_v28 = vmul.f32 %v3839_v24, %v3831_v54 }
 0x30b   :  { %v3843_v26 = vpop.eup %3842  ;;  %v763_v30 = vmul.f32 %v3841_v25, %v3833_v55 }
 0x30c   :  { %v3845_v27 = vpop.eup %3844  ;;  %v766_v29 = vmul.f32 %v3843_v26, %v3835_v57 }
 0x30d   :  { %v764_v31 = vmul.f32 %v3845_v27, %v3837_v60  ;;  %v512_v60 = vadd.f32 %v3019_v58, %v4590_v34  ;;  %v4217_v58 = vmov 0  }
 0x30e   :  { %v768_v36 = vpack.c.bf16 %v766_v29, %v765_v28  ;;  %1154 = vmatprep.mubr.bf16.mxu1 %v4217_v58  ;;  %3672 = vset.pattern.permute.xlu1 %v4217_v58 }
 0x30f   :  { %v767_v39 = vpack.c.bf16 %v764_v31, %v763_v30 }
 0x311   :  { %3430 = vmatprep.mubr.msk.bf16.mxu0 %vm690_vm2, %v767_v39 }
 0x312   :  { %3431 = vmatmul.mubr.msk.bf16.vlgmr.msra.gmra.mrb[4].mxu0 %vm690_vm2, %v768_v36 }
 0x313   :  { %3435 = vmatpush3.bf16.msra.mxu0 %v4610_v6  ;;  %3436 = vmatprep.mubr.msk.bf16.mxu0 %vm690_vm2, %v767_v39  ;;  %v3711_v6 = vld [vmem:[%s5223_s14 + $0x8] sm:$0xff]  }
 0x314   :  { %3440 = vmatprep.subr.bf16.mxu0 %v4214_v0 }
 0x31a   :  { %3437 = vmatmul.mubr.msk.bf16.vlgmr.msra.gmra.mrb[8].mxu0 %vm690_vm2, %v768_v36 }
 0x31b   :  { %3456 = vmatprep.mubr.msk.bf16.mxu0 %vm4215_vm0, %v4214_v0  ;;  %3441 = vmatpush3.bf16.msra.mxu0 %v3710_v40 }
 0x31c   :  { %3442 = vmatprep.subr.bf16.mxu0 %v4214_v0 }
 0x31f   :  { %3443 = vmatpush3.bf16.msra.mxu0 %v3711_v6 }
 0x320   :  { %3444 = vmatprep.subr.bf16.mxu0 %v4214_v0 }
 0x323   :  { %3445 = vmatpush3.bf16.msra.mxu0 %v3712_v41 }
 0x324   :  { %3446 = vmatprep.subr.bf16.mxu0 %v4214_v0 }
 0x327   :  { %3447 = vmatpush3.bf16.msra.mxu0 %v3713_v42 }
 0x328   :  { %3448 = vmatprep.subr.bf16.mxu0 %v4214_v0 }
 0x32b   :  { %3449 = vmatpush3.bf16.msra.mxu0 %v3714_v43 }
 0x32c   :  { %3450 = vmatprep.subr.bf16.mxu0 %v4214_v0 }
 0x32f   :  { %3451 = vmatpush3.bf16.msra.mxu0 %v3715_v44 }
 0x330   :  { %3452 = vmatprep.subr.bf16.mxu0 %v4214_v0 }
 0x333   :  { %3453 = vmatpush3.bf16.msra.mxu0 %v3716_v45 }
 0x334   :  { %3454 = vmatprep.subr.bf16.mxu0 %v4214_v0 }
 0x337   :  { %3455 = vmatpush3.bf16.msra.mxu0 %v3717_v46  ;;  %v3726_v46 = vld [vmem:[%s5225_s16 + $0x24] ss:$8 sps:$4 sm:$0xff]  }
 0x338   :  { %3480 = vmatprep.subr.bf16.mxu0 %v4214_v0  ;;  %1126 = vmatprep.subr.bf16.mxu1 %v3726_v46 }
 0x339   :  { %1127 = vmatpush1.bf16.msra.mxu1 %v3724_v49 }
 0x33a   :  { %1128 = vmatprep.subr.bf16.mxu1 %v3729_v52 }
 0x33d   :  { %1129 = vmatpush1.bf16.msra.mxu1 %v3727_v53 }
 0x33e   :  { %3460 = vmatprep.subr.bf16.mxu1 %v4214_v0 }
 0x3e5   :  { %v4680_v54 = vpop.f32.mrb[4].mxu0 }
 0x3e6   :  { %v4682_v55 = vpop.f32.mrb[5].mxu0 }
 0x3e7   :  { %v4684_v56 = vpop.f32.mrb[6].mxu0 }
 0x3e8   :  { %v4686_v57 = vpop.f32.mrb[7].mxu0 }
 0x3ed   :  { %v3438_v61 = vpop.f32.mrb[8].mxu0 }
 0x3ee   :  { %v891_v63 = vmul.f32 %v3438_v61, %v520_v59  ;;  %v874_v1 = vpop.f32.mrb[9].mxu0  ;;  %v4218_v59 = vmov 1   ;;  %v3136_v61 = vld [vmem:[%s5259_s11 + $0x8] sm:$0xf] }
 0x3ef   :  { %v889_v3 = vmul.f32 %v874_v1, %v512_v60  ;;  %v3439_v4 = vpop.f32.mrb[10].mxu0  ;;  %3674 = vset.pattern.permute.xlu0 %v4218_v59  ;;  %v3040_v60 = vld [vmem:[#allocation17] ss:$0 sm:$0xff] }
 0x3f0   :  { %v905_v5 = vrot.slane %v891_v63, 4  ;;  %v892_v7 = vmul.f32 %v3439_v4, %v523_v62  ;;  %v877_v8 = vpop.f32.mrb[11].mxu0  ;;  %v1054_v4 = vpop.permute.xlu0 %1053 }
 0x3f1   :  { %v893_v9 = vrot.slane %v889_v3, 4  ;;  %v890_v10 = vmul.f32 %v877_v8, %v515_v2  ;;  %v2010_v2 = vmax.f32 %v3136_v61, 0.0  ;;  %v3193_v8 = vld [vmem:[%s5259_s11 + $0xc] sm:$0xf] }
 0x3f2   :  { %v906_v11 = vadd.f32 %v905_v5, %v891_v63  ;;  %v911_v12 = vrot.slane %v892_v7, 4 }
 0x3f3   :  { %v894_v13 = vadd.f32 %v893_v9, %v889_v3  ;;  %v899_v33 = vrot.slane %v890_v10, 4 }
 0x3f4   :  { %v907_v14 = vrot.slane %v906_v11, 2  ;;  %v912_v34 = vadd.f32 %v911_v12, %v892_v7  ;;  %v2488_v12 = vmax.f32 %v3193_v8, 0.0 }
 0x3f5   :  { %v895_v15 = vrot.slane %v894_v13, 2  ;;  %v900_v16 = vadd.f32 %v899_v33, %v890_v10  ;;  %v4221_v33 = vmov 3  }
 0x3f6   :  { %v908_v35 = vadd.f32 %v907_v14, %v906_v11  ;;  %v913_v17 = vrot.slane %v912_v34, 2  ;;  %v3732_v14 = vld [vmem:[#allocation20 + $0x8] sm:$0xff]  }
 0x3f7   :  { %v896_v18 = vadd.f32 %v895_v15, %v894_v13  ;;  %v901_v19 = vrot.slane %v900_v16, 2  ;;  %v4220_v13 = vmov 2   ;;  %v3736_v15 = vld [vmem:[#allocation20 + $0x18] sm:$0xff]  }
 0x3f8   :  { %v909_v38 = vrot.slane %v908_v35, 1  ;;  %v914_v20 = vadd.f32 %v913_v17, %v912_v34  ;;  %v3735_v34 = vld [vmem:[%s5229_s20 + $0x10] sm:$0xff]   ;;  %v3739_v17 = vld [vmem:[%s5229_s20 + $0x20] sm:$0xff]  }
 0x3f9   :  { %v897_v21 = vrot.slane %v896_v18, 1  ;;  %v902_v22 = vadd.f32 %v901_v19, %v900_v16  ;;  %v3737_v16 = vld [vmem:[%s5229_s20 + $0x18] sm:$0xff]   ;;  %v3741_v19 = vld [vmem:[%s5229_s20 + $0x28] sm:$0xff]  }
 0x3fa   :  { %v910_v23 = vadd.f32 %v909_v38, %v908_v35  ;;  %v915_v24 = vrot.slane %v914_v20, 1  ;;  %v3738_v35 = vld [vmem:[#allocation20 + $0x20] sm:$0xff]   ;;  %v3742_v38 = vld [vmem:[#allocation20 + $0x30] sm:$0xff]  }
 0x3fb   :  { %v898_v25 = vadd.f32 %v897_v21, %v896_v18  ;;  %v903_v26 = vrot.slane %v902_v22, 1  ;;  %v3740_v18 = vld [vmem:[#allocation20 + $0x28] sm:$0xff]   ;;  %v3744_v21 = vld [vmem:[#allocation20 + $0x38] sm:$0xff]  }
 0x3fc   :  { %v916_v27 = vadd.f32 %v915_v24, %v914_v20  ;;  %v919_v30 = vpack.c.bf16 %v910_v23, %v910_v23  ;;  %v3743_v20 = vld [vmem:[%s5229_s20 + $0x30] sm:$0xff]   ;;  %v4800_v23 = vpop.permute.xlu1 %1536 }
 0x3fd   :  { %v917_v28 = vpack.c.bf16 %v898_v25, %v898_v25  ;;  %v904_v29 = vadd.f32 %v903_v26, %v902_v22  ;;  %v3745_v22 = vld [vmem:[%s5229_s20 + $0x38] sm:$0xff]  }
 0x3fe   :  { %v920_v31 = vpack.c.bf16 %v916_v27, %v916_v27  ;;  %v950_v6 = vunpack.c.l.b16 %v919_v30 }
 0x3ff   :  { %v918_v36 = vpack.c.bf16 %v904_v29, %v904_v29  ;;  %v948_v39 = vunpack.c.l.b16 %v917_v28  ;;  %v1497_v29 = vand.u32 127, %v530_v32 }
 0x400   :  { %v951_v41 = vunpack.c.l.b16 %v920_v31 }
 0x401   :  { %v949_v40 = vunpack.c.l.b16 %v918_v36  ;;  %v1498_v30 = vadd.s32 4294967264, %v1497_v29 }
 0x403   :  { %v953_v42 = vsel %vm952_vm3, %v949_v40, %v948_v39  ;;  %v4811_v31 = vsub.s32 %v1498_v30, %v4595_v37 }
 0x404   :  { %v955_v43 = vsel %vm954_vm4, %v950_v6, %v953_v42 }
 0x405   :  { %v957_v44 = vsel %vm956_vm5, %v951_v41, %v955_v43 }
 0x406   :  { %v958_v45 = vpack.c.b16 %v957_v44, %v957_v44 }
 0x408   :  { %3457 = vmatmul.mubr.bf16.vlgmr.msra.gmra.mrb[12].mxu0 %v958_v45 }
 0x409   :  { %3496 = vmatprep.mubr.msk.bf16.mxu0 %vm4215_vm0, %v4214_v0 }
 0x4db   :  { %v1042_v62 = vpop.f32.mrb[12].mxu0 }
 0x4dc   :  { %v4722_v63 = vadd.f32 %v3040_v60, %v1042_v62  ;;  %v3458_v1 = vpop.f32.mrb[13].mxu0 }
 0x4dd   :  { %v1045_v3 = vpop.f32.mrb[14].mxu0 }
 0x4de   :  { %v3459_v5 = vpop.f32.mrb[15].mxu0  ;;  %v1050_v7 = vmax.f32 %v4722_v63, 0.0 }
 0x4e0   :  { %v1056_v9 = vsel %vm378_vm1, %v1050_v7, %v1054_v4  ;;  %1532 = vrot.lane.b32.xlu0 %v1050_v7, %s4219_s27  ;;  %v3667_v10 = vpack.i.bf16 %v2010_v2, %v1050_v7 }
 0x4e1   :  { %v1057_v11 = vpack.c.bf16 %v1056_v9, %v1056_v9 }
 0x4e2   :  { %3668 = vrot.lane.b32.xlu1 %v3667_v10, %s5253_s2 }
 0x4e3   :  { %3057 = vmatmul.mubr.msk.bf16.vlgmr.msra.gmra.mrb[12].mxu1 %vm1118_vm6, %v1057_v11 }
 0x4e4   :  { %2489 = vrot.lane.b32.xlu0 %v1050_v7, %s4211_s13  ;;  %3476 = vmatprep.mubr.msk.bf16.mxu1 %vm4215_vm0, %v4214_v0 }
 0x4e6   :  { %2493 = vrot.lane.b32.xlu1 %v2488_v12, %s5253_s2 }
 0x4e8   :  { %1972 = vperm.xlu0 %3674, %v4686_v57  }
 0x4ea   :  { %1488 = vperm.xlu1 %3672, %v4686_v57  }
 0x4ec   :  { %1975 = vperm.xlu0 %3674, %v4680_v54  }
 0x4ee   :  { %3673 = vset.pattern.permute.xlu1 %v4218_v59 }
 0x4ef   :  { %1969 = vperm.xlu1 %3673, %v4682_v55  }
 0x4f0   :  { %3678 = vset.pattern.permute.xlu0 %v4217_v58 }
 0x4f1   :  { %1485 = vperm.xlu0 %3678, %v4682_v55  }
 0x4f3   :  { %3675 = vset.pattern.permute.xlu1 %v4220_v13 }
 0x4f4   :  { %2447 = vperm.xlu1 %3675, %v4682_v55  }
 0x4f5   :  { %1494 = vperm.xlu0 %3678, %v4684_v56  }
 0x4f8   :  { %2450 = vperm.xlu1 %3675, %v4686_v57  }
 0x4f9   :  { %3681 = vset.pattern.permute.xlu0 %v4221_v33 }
 0x4fa   :  { %2925 = vperm.xlu0 %3681, %v4682_v55   ;;  %v3730_v55 = vld [vmem:[#allocation20] sm:$0xff]  }
 0x4fb   :  { %3461 = vmatpush3.bf16.msra.mxu1 %v3730_v55 }
 0x4fc   :  { %3676 = vset.pattern.permute.xlu1 %v4221_v33  ;;  %3462 = vmatprep.subr.bf16.mxu1 %v4214_v0 }
 0x4fd   :  { %2928 = vperm.xlu1 %3676, %v4686_v57   ;;  %v3731_v57 = vld [vmem:[%s5229_s20] sm:$0xff]  }
 0x4fe   :  { %2934 = vperm.xlu0 %3681, %v4684_v56   ;;  %3481 = vmatpush3.bf16.msra.mxu0 %v3731_v57 }
 0x4ff   :  { %3482 = vmatprep.subr.bf16.mxu0 %v4214_v0  ;;  %3463 = vmatpush3.bf16.msra.mxu1 %v3732_v14 }
 0x500   :  { %3464 = vmatprep.subr.bf16.mxu1 %v4214_v0 }
 0x501   :  { %3677 = vset.pattern.permute.xlu1 %v4217_v58 }
 0x502   :  { %1491 = vperm.xlu1 %3677, %v4680_v54   ;;  %2921 = vrot.lane.b32.xlu0 %v4722_v63, %s4211_s13 }
 0x506   :  { %3679 = vset.pattern.permute.xlu1 %v4220_v13 }
 0x507   :  { %2453 = vperm.xlu1 %3679, %v4680_v54  }
 0x50b   :  { %3680 = vset.pattern.permute.xlu1 %v4221_v33 }
 0x50c   :  { %2931 = vperm.xlu1 %3680, %v4680_v54   ;;  %v3733_v54 = vld [vmem:[%s5229_s20 + $0x8] sm:$0xff]  }
 0x50d   :  { %3483 = vmatpush3.bf16.msra.mxu0 %v3733_v54 }
 0x50e   :  { %3484 = vmatprep.subr.bf16.mxu0 %v4214_v0 }
 0x510   :  { %3682 = vset.pattern.permute.xlu1 %v4218_v59 }
 0x511   :  { %1978 = vperm.xlu1 %3682, %v4684_v56   ;;  %3485 = vmatpush3.bf16.msra.mxu0 %v3735_v34 }
 0x512   :  { %3486 = vmatprep.subr.bf16.mxu0 %v4214_v0 }
 0x515   :  { %3683 = vset.pattern.permute.xlu1 %v4220_v13  ;;  %3487 = vmatpush3.bf16.msra.mxu0 %v3737_v16  ;;  %v1066_v16 = vld [vmem:[#allocation19] sm:$0x3] }
 0x516   :  { %2456 = vperm.xlu1 %3683, %v4684_v56   ;;  %v3734_v56 = vld [vmem:[#allocation20 + $0x10] sm:$0xff]   ;;  %3488 = vmatprep.subr.bf16.mxu0 %v4214_v0 }
 0x517   :  { %3465 = vmatpush3.bf16.msra.mxu1 %v3734_v56 }
 0x518   :  { %3466 = vmatprep.subr.bf16.mxu1 %v4214_v0 }
 0x519   :  { %3489 = vmatpush3.bf16.msra.mxu0 %v3739_v17  ;;  %v1071_v17 = vrot.slane %v1066_v16, %v4601_v47 }
 0x51a   :  { %1965 = vrot.lane.b32.xlu1 %v4722_v63, %s4219_s27  ;;  %3490 = vmatprep.subr.bf16.mxu0 %v4214_v0 }
 0x51b   :  { %3467 = vmatpush3.bf16.msra.mxu1 %v3736_v15 }
 0x51c   :  { %3468 = vmatprep.subr.bf16.mxu1 %v4214_v0 }
 0x51d   :  { %3491 = vmatpush3.bf16.msra.mxu0 %v3741_v19 }
 0x51e   :  { %2443 = vrot.lane.b32.xlu1 %v4722_v63, %s5253_s2  ;;  %3492 = vmatprep.subr.bf16.mxu0 %v4214_v0 }
 0x51f   :  { %3469 = vmatpush3.bf16.msra.mxu1 %v3738_v35  ;;  %v4850_v35 = vsub.s32 1, %v4595_v37  ;;  %v4858_v37 = vld [vmem:[#allocation8] sm:$0xf] }
 0x520   :  { %3470 = vmatprep.subr.bf16.mxu1 %v4214_v0 }
 0x521   :  { %3493 = vmatpush3.bf16.msra.mxu0 %v3743_v20 }
 0x522   :  { %3494 = vmatprep.subr.bf16.mxu0 %v4214_v0 }
 0x523   :  { %3471 = vmatpush3.bf16.msra.mxu1 %v3740_v18  ;;  %v1075_v18 = vrot.slane %v1066_v16, %v4850_v35  ;;  %v3767_v16 = vld [vmem:[%s5229_s20 + $0x60] sm:$0xff]  }
 0x524   :  { %3472 = vmatprep.subr.bf16.mxu1 %v4214_v0 }
 0x525   :  { %3495 = vmatpush3.bf16.msra.mxu0 %v3745_v22 }
 0x526   :  { %3505 = vmatprep.subr.bf16.mxu0 %v4214_v0 }
 0x527   :  { %3473 = vmatpush3.bf16.msra.mxu1 %v3742_v38 }
 0x528   :  { %3474 = vmatprep.subr.bf16.mxu1 %v4214_v0 }
 0x52b   :  { %3475 = vmatpush3.bf16.msra.mxu1 %v3744_v21 }
 0x52c   :  { %3500 = vmatprep.subr.mxu1 %v4214_v0 }
 0x552   :  { %v4802_v24 = vpop.permute.xlu0 %1532 }
 0x554   :  { %v4804_v25 = vpop.permute.xlu1 %3668 }
 0x556   :  { %v2490_v26 = vpop.permute.xlu0 %2489 }
 0x558   :  { %v2494_v27 = vpop.permute.xlu1 %2493 }
 0x559   :  { %v4807_v28 = vsel %vm378_vm1, %v2490_v26, %v2494_v27 }
 0x567   :  { %v1973_v36 = vpop.permute.xlu0 %1972 }
 0x568   :  { %v1987_v39 = vrot.slane %v1973_v36, %v4811_v31 }
 0x569   :  { %v4814_v40 = vpop.permute.xlu1 %1488 }
 0x56b   :  { %v1976_v6 = vpop.permute.xlu0 %1975 }
 0x56c   :  { %v1991_v41 = vrot.slane %v1976_v6, %v4811_v31  ;;  %v3067_v6 = vld [vmem:[%s5230_s21] ss:$0 sm:$0xff] }
 0x56e   :  { %v1970_v42 = vpop.permute.xlu1 %1969 }
 0x56f   :  { %v1983_v43 = vrot.slane %v1970_v42, %v4811_v31 }
 0x570   :  { %v4818_v44 = vpop.permute.xlu0 %1485 }
 0x571   :  { %v1996_v45 = vsel %vm952_vm3, %v1987_v39, %v1983_v43  ;;  %v3748_v39 = vld [vmem:[%s5225_s16 + $0x44] ss:$8 sps:$4 sm:$0xff]  }
 0x572   :  { %v1997_v32 = vsel %vm954_vm4, %v1991_v41, %v1996_v45 }
 0x573   :  { %v2448_v46 = vpop.permute.xlu1 %2447 }
 0x574   :  { %v2461_v49 = vrot.slane %v2448_v46, %v4811_v31  ;;  %v4823_v51 = vpop.permute.xlu0 %1494 }
 0x577   :  { %v2451_v52 = vpop.permute.xlu1 %2450 }
 0x578   :  { %v2465_v53 = vrot.slane %v2451_v52, %v4811_v31 }
 0x579   :  { %v2926_v59 = vpop.permute.xlu0 %2925 }
 0x57a   :  { %v2474_v60 = vsel %vm952_vm3, %v2465_v53, %v2461_v49  ;;  %v2939_v61 = vrot.slane %v2926_v59, %v4811_v31 }
 0x57c   :  { %v2929_v62 = vpop.permute.xlu1 %2928 }
 0x57d   :  { %v2943_v1 = vrot.slane %v2929_v62, %v4811_v31  ;;  %v2935_v2 = vpop.permute.xlu0 %2934  ;;  %v3758_v62 = vld [vmem:[#allocation20 + $0x40] sm:$0xff]  }
 0x57e   :  { %v2951_v3 = vrot.slane %v2935_v2, %v4811_v31  ;;  %v3762_v2 = vld [vmem:[#allocation20 + $0x50] sm:$0xff]  }
 0x57f   :  { %v2952_v4 = vsel %vm952_vm3, %v2943_v1, %v2939_v61  ;;  %v3760_v1 = vld [vmem:[#allocation20 + $0x48] sm:$0xff]  }
 0x581   :  { %v4831_v5 = vpop.permute.xlu1 %1491 }
 0x586   :  { %v2454_v7 = vpop.permute.xlu1 %2453 }
 0x587   :  { %v2469_v8 = vrot.slane %v2454_v7, %v4811_v31 }
 0x589   :  { %v2475_v9 = vsel %vm954_vm4, %v2469_v8, %v2474_v60  ;;  %v3749_v8 = vld [vmem:[%s5225_s16 + $0x50] ss:$8 sps:$4 sm:$0xff]  }
 0x58b   :  { %v2932_v10 = vpop.permute.xlu1 %2931 }
 0x58c   :  { %v2947_v11 = vrot.slane %v2932_v10, %v4811_v31  ;;  %v3752_v10 = vld [vmem:[%s5225_s16 + $0x60] ss:$8 sps:$4 sm:$0xff]  }
 0x58e   :  { %v2953_v12 = vsel %vm954_vm4, %v2947_v11, %v2952_v4  ;;  %v3751_v4 = vld [vmem:[%s5225_s16 + $0x54] ss:$8 sps:$4 sm:$0xff]  }
 0x58f   :  { %v4838_v13 = vsel %vm956_vm5, %v2951_v3, %v2953_v12  ;;  %v3746_v3 = vld [vmem:[%s5225_s16 + $0x40] ss:$8 sps:$4 sm:$0xff]   ;;  %v3757_v11 = vld [vmem:[%s5225_s16 + $0x74] ss:$8 sps:$4 sm:$0xff]   ;;  %v3755_v12 = vld [vmem:[%s5225_s16 + $0x70] ss:$8 sps:$4 sm:$0xff]  }
 0x590   :  { %v1979_v33 = vpop.permute.xlu1 %1978 }
 0x591   :  { %v1995_v55 = vrot.slane %v1979_v33, %v4811_v31  ;;  %v1539_v33 = vsel %vm378_vm1, %v4802_v24, %v4800_v23  ;;  %v3763_v23 = vld [vmem:[%s5229_s20 + $0x50] sm:$0xff]  }
 0x592   :  { %v3764_v24 = vld [vmem:[#allocation20 + $0x58] sm:$0xff]  }
 0x593   :  { %v1998_v57 = vsel %vm956_vm5, %v1995_v55, %v1997_v32  ;;  %v3759_v55 = vld [vmem:[%s5229_s20 + $0x40] sm:$0xff]  }
 0x595   :  { %v2457_v14 = vpop.permute.xlu1 %2456 }
 0x596   :  { %v2473_v54 = vrot.slane %v2457_v14, %v4811_v31  ;;  %v3761_v14 = vld [vmem:[%s5229_s20 + $0x48] sm:$0xff]  }
 0x598   :  { %v4844_v56 = vsel %vm956_vm5, %v2473_v54, %v2475_v9  ;;  %v3754_v9 = vld [vmem:[%s5225_s16 + $0x64] ss:$8 sps:$4 sm:$0xff]   ;;  %v3765_v54 = vld [vmem:[%s5229_s20 + $0x58] sm:$0xff]  }
 0x599   :  { %v1966_v34 = vpop.permute.xlu1 %1965 }
 0x59a   :  { %v4847_v15 = vsel %vm378_vm1, %v1966_v34, %v1998_v57  ;;  %v1540_v57 = vpack.c.bf16 %v1539_v33, %v1539_v33  ;;  %v3766_v34 = vld [vmem:[#allocation20 + $0x60] sm:$0xff]  }
 0x5b6   :  { %v1156_v19 = vpop.f32.mrb[12].mxu1 }
 0x5b7   :  { %v1157_v38 = vadd.f32 %v1156_v19, %v1071_v17  ;;  %v1158_v20 = vpop.f32.mrb[13].mxu1  ;;  %v3768_v17 = vld [vmem:[#allocation20 + $0x68] sm:$0xff]   ;;  %v3770_v19 = vld [vmem:[#allocation20 + $0x70] sm:$0xff]  }
 0x5b8   :  { %v1159_v21 = vadd.f32 %v1158_v20, %v1075_v18  ;;  %v1160_v22 = vpop.f32.mrb[14].mxu1  ;;  %v3769_v18 = vld [vmem:[%s5229_s20 + $0x68] sm:$0xff]   ;;  %v3772_v20 = vld [vmem:[#allocation20 + $0x78] sm:$0xff]  }
 0x5b9   :  { %v1163_v26 = vmax.f32 %v1157_v38, 0.0  ;;  %v1161_v27 = vpop.f32.mrb[15].mxu1  ;;  %v3771_v38 = vld [vmem:[%s5229_s20 + $0x70] sm:$0xff]   ;;  %v1502_v22 = vrot.slane %v4818_v44, %v4811_v31  ;;  %v4951_v44 = vpop.permute.xlu1 %2443 }
 0x5ba   :  { %v1164_v29 = vmax.f32 %v1159_v21, 0.0  ;;  %v3773_v21 = vld [vmem:[%s5229_s20 + $0x78] sm:$0xff]   ;;  %v1506_v27 = vrot.slane %v4814_v40, %v4811_v31 }
 0x5bb   :  { %v1165_v30 = vpack.c.bf16 %v1163_v26, %v1163_v26  ;;  %v1510_v26 = vrot.slane %v4831_v5, %v4811_v31 }
 0x5bc   :  { %v1279_v36 = vpack.c.bf16 %v1164_v29, %v1164_v29  ;;  %v1515_v29 = vsel %vm952_vm3, %v1506_v27, %v1502_v22  ;;  %v3779_v22 = vld [vmem:[%s5225_s16 + $0x94] ss:$8 sps:$4 sm:$0xff]   ;;  %v3777_v27 = vld [vmem:[%s5225_s16 + $0x90] ss:$8 sps:$4 sm:$0xff]  }
 0x5bd   :  { %3477 = vmatmul.mubr.bf16.vlgmr.msra.gmra.mrb[16].mxu1 %v1165_v30  ;;  %v1516_v30 = vsel %vm954_vm4, %v1510_v26, %v1515_v29  ;;  %v3782_v29 = vld [vmem:[%s5225_s16 + $0xa4] ss:$8 sps:$4 sm:$0xff]  }
 0x5be   :  { %3497 = vmatmul.mubr.bf16.vlgmr.msra.gmra.mrb[16].mxu0 %v1279_v36  ;;  %3502 = vmatprep.mubr.msk.f32.mxu1 %vm4215_vm0, %v4214_v0  ;;  %v1514_v36 = vrot.slane %v4823_v51, %v4811_v31 }
 0x5bf   :  { %3521 = vmatprep.mubr.msk.bf16.mxu0 %vm4215_vm0, %v4214_v0  ;;  %3501 = vmatpush3.msk.msra.mxu1 %vm1401_vm7, %v4858_v37 }
 0x5c0   :  { %1606 = vmatprep.subr.bf16.mxu1 %v3748_v39  ;;  %3506 = vmatpush3.bf16.msra.mxu0 %v3758_v62  ;;  %v1517_v39 = vsel %vm956_vm5, %v1514_v36, %v1516_v30  ;;  %v3780_v30 = vld [vmem:[%s5225_s16 + $0xa0] ss:$8 sps:$4 sm:$0xff]   ;;  %v3785_v36 = vld [vmem:[%s5225_s16 + $0xb4] ss:$8 sps:$4 sm:$0xff]  }
 0x5c1   :  { %3507 = vmatprep.subr.bf16.mxu0 %v4214_v0  ;;  %v1522_v5 = vsel %vm378_vm1, %v4722_v63, %v1517_v39  ;;  %v3671_v39 = vunpack.i.h.bf16 %v4804_v25 }
 0x5c4   :  { %3508 = vmatpush3.bf16.msra.mxu0 %v3760_v1 }
 0x5c5   :  { %3509 = vmatprep.subr.bf16.mxu0 %v4214_v0 }
 0x5c8   :  { %3510 = vmatpush3.bf16.msra.mxu0 %v3762_v2 }
 0x5c9   :  { %3511 = vmatprep.subr.bf16.mxu0 %v4214_v0 }
 0x5cc   :  { %3512 = vmatpush3.bf16.msra.mxu0 %v3764_v24 }
 0x5cd   :  { %3513 = vmatprep.subr.bf16.mxu0 %v4214_v0 }
 0x5d0   :  { %3514 = vmatpush3.bf16.msra.mxu0 %v3766_v34 }
 0x5d1   :  { %3515 = vmatprep.subr.bf16.mxu0 %v4214_v0 }
 0x5d4   :  { %3516 = vmatpush3.bf16.msra.mxu0 %v3768_v17 }
 0x5d5   :  { %3517 = vmatprep.subr.bf16.mxu0 %v4214_v0 }
 0x5d8   :  { %3518 = vmatpush3.bf16.msra.mxu0 %v3770_v19  ;;  %v3786_v19 = vld [vmem:[#allocation20 + $0x80] sm:$0xff]  }
 0x5d9   :  { %3519 = vmatprep.subr.bf16.mxu0 %v4214_v0 }
 0x5dc   :  { %3520 = vmatpush3.bf16.msra.mxu0 %v3772_v20  ;;  %v3790_v20 = vld [vmem:[#allocation20 + $0x90] sm:$0xff]  }
 0x5dd   :  { %3545 = vmatprep.subr.mxu0 %v4214_v0 }
 0x690   :  { %v4868_v41 = vpop.f32.mrb[16].mxu1 }
 0x691   :  { %v3478_v42 = vpop.f32.mrb[17].mxu1  ;;  %v1385_v43 = vpop.f32.mrb[16].mxu0 }
 0x692   :  { %v1386_v45 = vadd.f32 %v3067_v6, %v1385_v43  ;;  %v1274_v32 = vpop.f32.mrb[18].mxu1  ;;  %v3498_v46 = vpop.f32.mrb[17].mxu0  ;;  %v3058_v43 = vld [vmem:[%s5228_s19] ss:$0 sm:$0xff] }
 0x693   :  { %v3479_v49 = vpop.f32.mrb[19].mxu1  ;;  %v1388_v52 = vpop.f32.mrb[18].mxu0  ;;  %v1272_v31 = vadd.f32 %v3058_v43, %v4868_v41 }
 0x694   :  { %v3076_v53 = vmul.f32 -1.442695, %v1386_v45  ;;  %v3499_v59 = vpop.f32.mrb[19].mxu0 }
 0x695   :  { %v1277_v51 = vmax.f32 %v1272_v31, 0.0  ;;  %v1551_v59 = vld [vmem:[#allocation19 + $0x2] sm:$0x3] }
 0x696   :  { %3846 = vpow2.f32 %v3076_v53  ;;  %v3791_v31 = vld [vmem:[%s5229_s20 + $0x90] sm:$0xff]  }
 0x6a0   :  { %v3847_v60 = vpop.eup %3846 }
 0x6a1   :  { %v1394_v61 = vadd.f32 1.0, %v3847_v60  ;;  %v1556_v60 = vrot.slane %v1551_v59, %v4601_v47 }
 0x6a3   :  { %3848 = vrcp.f32 %v1394_v61  ;;  %v1560_v61 = vrot.slane %v1551_v59, %v4850_v35  ;;  %v3800_v59 = vld [vmem:[#allocation20 + $0xb8] sm:$0xff]  }
 0x6a4   :  { %3850 = vtanh.f32 %v1277_v51  ;;  %v3792_v51 = vld [vmem:[#allocation20 + $0x98] sm:$0xff]  }
 0x6ad   :  { %v3849_v7 = vpop.eup %3848 }
 0x6ae   :  { %1519 = vrot.lane.b32.xlu1 %v3849_v7, %s4222_s24  ;;  %3503 = vmatmul.mubr.msk.f32.vlgmr.msra.gmra.mrb[20].mxu1 %vm1397_vm8, %v3849_v7  ;;  %v3851_v45 = vpop.eup %3850 }
 0x6af   :  { %1607 = vmatpush1.bf16.msra.mxu1 %v3746_v3  ;;  %1638 = vmatprep.mubr.bf16.mxu1 %v4217_v58 }
 0x6b0   :  { %1608 = vmatprep.subr.bf16.mxu1 %v3751_v4 }
 0x6b3   :  { %1609 = vmatpush1.bf16.msra.mxu1 %v3749_v8 }
 0x6b4   :  { %1610 = vmatprep.subr.bf16.mxu1 %v3754_v9 }
 0x6b7   :  { %1611 = vmatpush1.bf16.msra.mxu1 %v3752_v10 }
 0x6b8   :  { %1612 = vmatprep.subr.bf16.mxu1 %v3757_v11  ;;  %v3124_v11 = vld [vmem:[%s5230_s21 + $0x1] ss:$0 sm:$0xff] }
 0x6bb   :  { %1613 = vmatpush1.bf16.msra.mxu1 %v3755_v12 }
 0x6bc   :  { %3525 = vmatprep.subr.bf16.mxu1 %v4214_v0 }
 0x6be   :  { %3096 = vmatmul.mubr.msk.bf16.vlgmr.msra.gmra.mrb[24].mxu1 %vm1118_vm6, %v1540_v57 }
 0x6bf   :  { %3526 = vmatpush3.bf16.msra.mxu1 %v3759_v55  ;;  %3541 = vmatprep.mubr.msk.bf16.mxu1 %vm4215_vm0, %v4214_v0 }
 0x6c0   :  { %3527 = vmatprep.subr.bf16.mxu1 %v4214_v0 }
 0x6c3   :  { %3528 = vmatpush3.bf16.msra.mxu1 %v3761_v14 }
 0x6c4   :  { %3529 = vmatprep.subr.bf16.mxu1 %v4214_v0 }
 0x6c7   :  { %3530 = vmatpush3.bf16.msra.mxu1 %v3763_v23 }
 0x6c8   :  { %3531 = vmatprep.subr.bf16.mxu1 %v4214_v0 }
 0x6cb   :  { %3532 = vmatpush3.bf16.msra.mxu1 %v3765_v54 }
 0x6cc   :  { %3533 = vmatprep.subr.bf16.mxu1 %v4214_v0 }
 0x6cf   :  { %3534 = vmatpush3.bf16.msra.mxu1 %v3767_v16 }
 0x6d0   :  { %3535 = vmatprep.subr.bf16.mxu1 %v4214_v0 }
 0x6d3   :  { %3536 = vmatpush3.bf16.msra.mxu1 %v3769_v18 }
 0x6d4   :  { %3537 = vmatprep.subr.bf16.mxu1 %v4214_v0 }
 0x6d7   :  { %3538 = vmatpush3.bf16.msra.mxu1 %v3771_v38  ;;  %v3788_v38 = vld [vmem:[#allocation20 + $0x88] sm:$0xff]  }
 0x6d8   :  { %3539 = vmatprep.subr.bf16.mxu1 %v4214_v0 }
 0x6db   :  { %3540 = vmatpush3.bf16.msra.mxu1 %v3773_v21  ;;  %v3774_v21 = vld [vmem:[%s5225_s16 + $0x80] ss:$8 sps:$4 sm:$0xff]  }
 0x6dc   :  { %3550 = vmatprep.subr.bf16.mxu1 %v4214_v0 }
 0x720   :  { %v1520_v6 = vpop.permute.xlu1 %1519 }
 0x721   :  { %v1524_v40 = vsel %vm1523_vm9, %v1522_v5, %v1520_v6  ;;  %v3670_v5 = vunpack.i.l.bf16 %v4804_v25  ;;  %v3783_v6 = vld [vmem:[%s5225_s16 + $0xb0] ss:$8 sps:$4 sm:$0xff]   ;;  %v3789_v25 = vld [vmem:[%s5229_s20 + $0x88] sm:$0xff]  }
 0x722   :  { %v1526_v42 = vsel %vm1525_vm10, %v1524_v40, 0.0 }
 0x723   :  { %1527 = vst [vmem:[#allocation23] sm:$0xf] %v1526_v42  ;;  %v2018_v40 = vsel %vm378_vm1, %v3670_v5, %v3671_v39  ;;  %v3787_v42 = vld [vmem:[%s5229_s20 + $0x80] sm:$0xff]  }
 0x724   :  { %v2019_v43 = vpack.c.bf16 %v2018_v40, %v2018_v40 }
 0x781   :  { %v1471_v32 = vpop.f32.mrb[20].mxu1 }
 0x782   :  { %v1475_v46 = vmul.f32 %v3851_v45, %v1471_v32  ;;  %v1476_v49 = vsub.f32 1.0, %v1471_v32  ;;  %v3504_v52 = vpop.f32.mrb[21].mxu1  ;;  %v3793_v45 = vld [vmem:[%s5229_s20 + $0x98] sm:$0xff]  }
 0x783   :  { %v3794_v32 = vld [vmem:[#allocation20 + $0xa0] sm:$0xff]   ;;  %v3797_v52 = vld [vmem:[%s5229_s20 + $0xa8] sm:$0xff]  }
 0x784   :  { %v1477_v63 = vmul.f32 %v1476_v49, %v4664_v48  ;;  %v3776_v48 = vld [vmem:[%s5225_s16 + $0x84] ss:$8 sps:$4 sm:$0xff]  }
 0x785   :  { %v3796_v49 = vld [vmem:[#allocation20 + $0xa8] sm:$0xff]  }
 0x786   :  { %v1478_v53 = vadd.f32 %v1477_v63, %v1475_v46  ;;  %v3795_v46 = vld [vmem:[%s5229_s20 + $0xa0] sm:$0xff]   ;;  %v3798_v63 = vld [vmem:[#allocation20 + $0xb0] sm:$0xff]  }
 0x788   :  { %1479 = vst [vmem:[#allocation22] sm:$0xf] %v1478_v53  ;;  %v3799_v53 = vld [vmem:[%s5229_s20 + $0xb0] sm:$0xff]  }
 0x791   :  { %v1640_v62 = vpop.f32.mrb[24].mxu1 }
 0x792   :  { %v1641_v1 = vadd.f32 %v1640_v62, %v1556_v60  ;;  %v1642_v2 = vpop.f32.mrb[25].mxu1  ;;  %v3801_v60 = vld [vmem:[%s5229_s20 + $0xb8] sm:$0xff]  }
 0x793   :  { %v1643_v41 = vadd.f32 %v1642_v2, %v1560_v61  ;;  %v1644_v3 = vpop.f32.mrb[26].mxu1  ;;  %v5050_v61 = vpop.permute.xlu0 %2921 }
 0x794   :  { %v1647_v4 = vmax.f32 %v1641_v1, 0.0  ;;  %v1645_v7 = vpop.f32.mrb[27].mxu1 }
 0x795   :  { %v1648_v8 = vmax.f32 %v1643_v41, 0.0  ;;  %v3098_v41 = vld [vmem:[%s5228_s19 + $0x1] ss:$0 sm:$0xff] }
 0x796   :  { %v1649_v9 = vpack.c.bf16 %v1647_v4, %v1647_v4 }
 0x797   :  { %v1765_v10 = vpack.c.bf16 %v1648_v8, %v1648_v8 }
 0x798   :  { %3522 = vmatmul.mubr.bf16.vlgmr.msra.gmra.mrb[20].mxu0 %v1649_v9 }
 0x799   :  { %3542 = vmatmul.mubr.bf16.vlgmr.msra.gmra.mrb[28].mxu1 %v1765_v10  ;;  %3546 = vmatpush3.msk.msra.mxu0 %vm1401_vm7, %v4858_v37 }
 0x79a   :  { %3547 = vmatprep.mubr.msk.f32.mxu0 %vm4215_vm0, %v4214_v0  ;;  %3566 = vmatprep.mubr.msk.bf16.mxu1 %vm4215_vm0, %v4214_v0 }
 0x79b   :  { %2085 = vmatprep.subr.bf16.mxu0 %v3776_v48  ;;  %3551 = vmatpush3.bf16.msra.mxu1 %v3786_v19 }
 0x79c   :  { %3552 = vmatprep.subr.bf16.mxu1 %v4214_v0 }
 0x79f   :  { %3553 = vmatpush3.bf16.msra.mxu1 %v3788_v38  ;;  %v3181_v38 = vld [vmem:[%s5230_s21 + $0x2] ss:$0 sm:$0xff] }
 0x7a0   :  { %3554 = vmatprep.subr.bf16.mxu1 %v4214_v0 }
 0x7a3   :  { %3555 = vmatpush3.bf16.msra.mxu1 %v3790_v20 }
 0x7a4   :  { %3556 = vmatprep.subr.bf16.mxu1 %v4214_v0 }
 0x7a7   :  { %3557 = vmatpush3.bf16.msra.mxu1 %v3792_v51  ;;  %v3807_v51 = vld [vmem:[%s5225_s16 + $0xd4] ss:$8 sps:$4 sm:$0xff]  }
 0x7a8   :  { %3558 = vmatprep.subr.bf16.mxu1 %v4214_v0 }
 0x7ab   :  { %3559 = vmatpush3.bf16.msra.mxu1 %v3794_v32  ;;  %v3805_v32 = vld [vmem:[%s5225_s16 + $0xd0] ss:$8 sps:$4 sm:$0xff]  }
 0x7ac   :  { %3560 = vmatprep.subr.bf16.mxu1 %v4214_v0 }
 0x7af   :  { %3561 = vmatpush3.bf16.msra.mxu1 %v3796_v49  ;;  %v3808_v49 = vld [vmem:[%s5225_s16 + $0xe0] ss:$8 sps:$4 sm:$0xff]  }
 0x7b0   :  { %3562 = vmatprep.subr.bf16.mxu1 %v4214_v0 }
 0x7b3   :  { %3563 = vmatpush3.bf16.msra.mxu1 %v3798_v63  ;;  %v3815_v63 = vld [vmem:[%s5229_s20 + $0xc0] sm:$0xff]  }
 0x7b4   :  { %3564 = vmatprep.subr.bf16.mxu1 %v4214_v0 }
 0x7b7   :  { %3565 = vmatpush3.bf16.msra.mxu1 %v3800_v59  ;;  %v3817_v59 = vld [vmem:[%s5229_s20 + $0xc8] sm:$0xff]  }
 0x7b8   :  { %3590 = vmatprep.subr.mxu1 %v4214_v0 }
 0x86b   :  { %v4977_v12 = vpop.f32.mrb[20].mxu0 }
 0x86c   :  { %v3523_v33 = vpop.f32.mrb[21].mxu0  ;;  %v1873_v55 = vpop.f32.mrb[28].mxu1  ;;  %v1758_v3 = vadd.f32 %v3098_v41, %v4977_v12  ;;  %v3824_v41 = vld [vmem:[#allocation20 + $0xe8] sm:$0xff]  }
 0x86d   :  { %v1874_v57 = vadd.f32 %v3124_v11, %v1873_v55  ;;  %v1760_v14 = vpop.f32.mrb[22].mxu0  ;;  %v3543_v23 = vpop.f32.mrb[29].mxu1 }
 0x86e   :  { %v3524_v24 = vpop.f32.mrb[23].mxu0  ;;  %v1876_v54 = vpop.f32.mrb[30].mxu1  ;;  %v1763_v4 = vmax.f32 %v1758_v3, 0.0  ;;  %v3825_v3 = vld [vmem:[%s5229_s20 + $0xe8] sm:$0xff]  }
 0x86f   :  { %v3133_v34 = vmul.f32 -1.442695, %v1874_v57  ;;  %v3544_v16 = vpop.f32.mrb[31].mxu1 }
 0x871   :  { %3852 = vpow2.f32 %v3133_v34 }
 0x87b   :  { %v3853_v17 = vpop.eup %3852 }
 0x87c   :  { %v1882_v18 = vadd.f32 1.0, %v3853_v17 }
 0x87e   :  { %3854 = vrcp.f32 %v1882_v18 }
 0x87f   :  { %3856 = vtanh.f32 %v1763_v4  ;;  %v3826_v4 = vld [vmem:[#allocation20 + $0xf0] sm:$0xff]  }
 0x888   :  { %v3855_v26 = vpop.eup %3854 }
 0x889   :  { %2000 = vrot.lane.b32.xlu0 %v3855_v26, %s4222_s24  ;;  %3548 = vmatmul.mubr.msk.f32.vlgmr.msra.gmra.mrb[24].mxu0 %vm1397_vm8, %v3855_v26  ;;  %v3857_v7 = vpop.eup %3856 }
 0x88a   :  { %2086 = vmatpush1.bf16.msra.mxu0 %v3774_v21  ;;  %2117 = vmatprep.mubr.bf16.mxu0 %v4217_v58 }
 0x88b   :  { %2087 = vmatprep.subr.bf16.mxu0 %v3779_v22 }
 0x88e   :  { %2088 = vmatpush1.bf16.msra.mxu0 %v3777_v27 }
 0x88f   :  { %2089 = vmatprep.subr.bf16.mxu0 %v3782_v29 }
 0x892   :  { %2090 = vmatpush1.bf16.msra.mxu0 %v3780_v30 }
 0x893   :  { %2091 = vmatprep.subr.bf16.mxu0 %v3785_v36 }
 0x896   :  { %2092 = vmatpush1.bf16.msra.mxu0 %v3783_v6 }
 0x897   :  { %3570 = vmatprep.subr.bf16.mxu0 %v4214_v0 }
 0x899   :  { %3153 = vmatmul.mubr.msk.bf16.vlgmr.msra.gmra.mrb[28].mxu0 %vm1118_vm6, %v2019_v43  ;;  %v3816_v43 = vld [vmem:[#allocation20 + $0xc8] sm:$0xff]  }
 0x89a   :  { %3571 = vmatpush3.bf16.msra.mxu0 %v3787_v42  ;;  %3586 = vmatprep.mubr.msk.bf16.mxu0 %vm4215_vm0, %v4214_v0  ;;  %v3814_v42 = vld [vmem:[#allocation20 + $0xc0] sm:$0xff]  }
 0x89b   :  { %3572 = vmatprep.subr.bf16.mxu0 %v4214_v0 }
 0x89e   :  { %3573 = vmatpush3.bf16.msra.mxu0 %v3789_v25  ;;  %v3818_v25 = vld [vmem:[#allocation20 + $0xd0] sm:$0xff]  }
 0x89f   :  { %3574 = vmatprep.subr.bf16.mxu0 %v4214_v0 }
 0x8a2   :  { %3575 = vmatpush3.bf16.msra.mxu0 %v3791_v31  ;;  %v3802_v31 = vld [vmem:[%s5225_s16 + $0xc0] ss:$8 sps:$4 sm:$0xff]  }
 0x8a3   :  { %3576 = vmatprep.subr.bf16.mxu0 %v4214_v0 }
 0x8a6   :  { %3577 = vmatpush3.bf16.msra.mxu0 %v3793_v45 }
 0x8a7   :  { %3578 = vmatprep.subr.bf16.mxu0 %v4214_v0 }
 0x8aa   :  { %3579 = vmatpush3.bf16.msra.mxu0 %v3795_v46  ;;  %v3810_v46 = vld [vmem:[%s5225_s16 + $0xe4] ss:$8 sps:$4 sm:$0xff]  }
 0x8ab   :  { %3580 = vmatprep.subr.bf16.mxu0 %v4214_v0 }
 0x8ae   :  { %3581 = vmatpush3.bf16.msra.mxu0 %v3797_v52  ;;  %v3813_v52 = vld [vmem:[%s5225_s16 + $0xf4] ss:$8 sps:$4 sm:$0xff]  }
 0x8af   :  { %3582 = vmatprep.subr.bf16.mxu0 %v4214_v0 }
 0x8b2   :  { %3583 = vmatpush3.bf16.msra.mxu0 %v3799_v53  ;;  %v2497_v53 = vpack.c.bf16 %v4807_v28, %v4807_v28  ;;  %v3819_v28 = vld [vmem:[%s5229_s20 + $0xd0] sm:$0xff]  }
 0x8b3   :  { %3584 = vmatprep.subr.bf16.mxu0 %v4214_v0 }
 0x8b6   :  { %3585 = vmatpush3.bf16.msra.mxu0 %v3801_v60  ;;  %v3820_v60 = vld [vmem:[#allocation20 + $0xd8] sm:$0xff]  }
 0x8b7   :  { %3595 = vmatprep.subr.bf16.mxu0 %v4214_v0 }
 0x8fb   :  { %v2001_v62 = vpop.permute.xlu0 %2000 }
 0x8fc   :  { %v2004_v1 = vsel %vm1523_vm9, %v4847_v15, %v2001_v62  ;;  %v2030_v15 = vld [vmem:[#allocation19 + $0x4] sm:$0x3] }
 0x8fd   :  { %v2005_v2 = vsel %vm1525_vm10, %v2004_v1, 0.0  ;;  %v2035_v55 = vrot.slane %v2030_v15, %v4601_v47  ;;  %v2039_v57 = vrot.slane %v2030_v15, %v4850_v35  ;;  %v3821_v62 = vld [vmem:[%s5229_s20 + $0xd8] sm:$0xff]   ;;  %v3155_v15 = vld [vmem:[%s5228_s19 + $0x2] ss:$0 sm:$0xff] }
 0x8fe   :  { %2007 = vst [vmem:[#allocation23 + $0x4] sm:$0xf] %v2005_v2  ;;  %v3822_v1 = vld [vmem:[#allocation20 + $0xe0] sm:$0xff]  }
 0x8ff   :  { %v3823_v2 = vld [vmem:[%s5229_s20 + $0xe0] sm:$0xff]  }
 0x95c   :  { %v1954_v8 = vpop.f32.mrb[24].mxu0 }
 0x95d   :  { %v1958_v9 = vmul.f32 %v3857_v7, %v1954_v8  ;;  %v1959_v10 = vsub.f32 1.0, %v1954_v8  ;;  %v3549_v48 = vpop.f32.mrb[25].mxu0  ;;  %v3827_v7 = vld [vmem:[%s5229_s20 + $0xf0] sm:$0xff]  }
 0x95e   :  { %v3828_v8 = vld [vmem:[#allocation20 + $0xf8] sm:$0xff]  }
 0x95f   :  { %v1960_v11 = vmul.f32 %v4706_v50, %v1959_v10  ;;  %v3804_v50 = vld [vmem:[%s5225_s16 + $0xc4] ss:$8 sps:$4 sm:$0xff]   ;;  %v2481_v10 = vsel %vm378_vm1, %v4951_v44, %v4844_v56  ;;  %v3870_v56 = vld [vmem:[%s5259_s11 + $0x8] sm:$0xf] }
 0x961   :  { %v1961_v33 = vadd.f32 %v1960_v11, %v1958_v9  ;;  %v3829_v9 = vld [vmem:[%s5229_s20 + $0xf8] sm:$0xff]  }
 0x963   :  { %1963 = vst [vmem:[#allocation22 + $0x4] sm:$0xf] %v1961_v33 }
 0x96c   :  { %v2119_v14 = vpop.f32.mrb[28].mxu0 }
 0x96d   :  { %v2120_v23 = vadd.f32 %v2119_v14, %v2035_v55  ;;  %v2121_v24 = vpop.f32.mrb[29].mxu0 }
 0x96e   :  { %v2122_v12 = vadd.f32 %v2121_v24, %v2039_v57  ;;  %v2123_v54 = vpop.f32.mrb[30].mxu0 }
 0x96f   :  { %v2126_v34 = vmax.f32 %v2120_v23, 0.0  ;;  %v2124_v16 = vpop.f32.mrb[31].mxu0 }
 0x970   :  { %v2127_v17 = vmax.f32 %v2122_v12, 0.0  ;;  %v2508_v16 = vld [vmem:[#allocation19 + $0x6] sm:$0x3] }
 0x971   :  { %v2128_v18 = vpack.c.bf16 %v2126_v34, %v2126_v34 }
 0x972   :  { %v2244_v19 = vpack.c.bf16 %v2127_v17, %v2127_v17  ;;  %v2513_v17 = vrot.slane %v2508_v16, %v4601_v47  ;;  %v3238_v47 = vld [vmem:[%s5230_s21 + $0x3] ss:$0 sm:$0xff]  ;;  %s4223_s21 = smov [#allocation23]  }
 0x973   :  { %3567 = vmatmul.mubr.bf16.vlgmr.msra.gmra.mrb[32].mxu1 %v2128_v18  ;;  %v2517_v18 = vrot.slane %v2508_v16, %v4850_v35  ;;  %s2981_s6 = sshll.u32 %s4223_s21, 4  ;;  %s2982_s6 = int_to_ptr.vmem [resolvable:$true] %s2981_s6 }
 0x974   :  { %3587 = vmatmul.mubr.bf16.vlgmr.msra.gmra.mrb[32].mxu0 %v2244_v19  ;;  %3591 = vmatpush3.msk.msra.mxu1 %vm1401_vm7, %v4858_v37  ;;  %s4136_s26 = scalar_lea.vmem %s2982_s6, 256  ;;  %p4141_p13 = scmp.lt.s32.totalorder %s2982_s6, %s2982_s6 }
 0x975   :  { %3592 = vmatprep.mubr.msk.f32.mxu1 %vm4215_vm0, %v4214_v0  ;;  %3611 = vmatprep.mubr.msk.bf16.mxu0 %vm4215_vm0, %v4214_v0  ;;  %p4137_p12 = scmp.ne.s32.totalorder %s2982_s6, %s4136_s26  ;;  %p4142_p0 = scmp.lt.s32.totalorder %s4136_s26, %s4136_s26 }
 0x976   :  { %2563 = vmatprep.subr.bf16.mxu1 %v3804_v50  ;;  %3596 = vmatpush3.bf16.msra.mxu0 %v3814_v42 }
 0x977   :  { %3597 = vmatprep.subr.bf16.mxu0 %v4214_v0  ;;  %p4143_p1 = por %p4142_p0, %p4141_p13 }
 0x979   :  { %p4144_p2 = pnand %p4143_p1, %p4137_p12 }
 0x97a   :  { %3598 = vmatpush3.bf16.msra.mxu0 %v3816_v43 }
 0x97b   :  { %3599 = vmatprep.subr.bf16.mxu0 %v4214_v0 }
 0x97e   :  { %3600 = vmatpush3.bf16.msra.mxu0 %v3818_v25 }
 0x97f   :  { %3601 = vmatprep.subr.bf16.mxu0 %v4214_v0 }
 0x982   :  { %3602 = vmatpush3.bf16.msra.mxu0 %v3820_v60 }
 0x983   :  { %3603 = vmatprep.subr.bf16.mxu0 %v4214_v0 }
 0x986   :  { %3604 = vmatpush3.bf16.msra.mxu0 %v3822_v1 }
 0x987   :  { %3605 = vmatprep.subr.bf16.mxu0 %v4214_v0 }
 0x98a   :  { %3606 = vmatpush3.bf16.msra.mxu0 %v3824_v41 }
 0x98b   :  { %3607 = vmatprep.subr.bf16.mxu0 %v4214_v0 }
 0x98e   :  { %3608 = vmatpush3.bf16.msra.mxu0 %v3826_v4 }
 0x98f   :  { %3609 = vmatprep.subr.bf16.mxu0 %v4214_v0 }
 0x992   :  { %3610 = vmatpush3.bf16.msra.mxu0 %v3828_v8 }
 0x993   :  { %3635 = vmatprep.subr.mxu0 %v4214_v0 }
 0xa46   :  { %v5074_v20 = vpop.f32.mrb[32].mxu1 }
 0xa47   :  { %v3568_v21 = vpop.f32.mrb[33].mxu1  ;;  %v2352_v22 = vpop.f32.mrb[32].mxu0  ;;  %v2237_v55 = vadd.f32 %v3155_v15, %v5074_v20 }
 0xa48   :  { %v2353_v26 = vadd.f32 %v3181_v38, %v2352_v22  ;;  %v2239_v27 = vpop.f32.mrb[34].mxu1  ;;  %v3588_v29 = vpop.f32.mrb[33].mxu0 }
 0xa49   :  { %v3569_v30 = vpop.f32.mrb[35].mxu1  ;;  %v2355_v36 = vpop.f32.mrb[34].mxu0  ;;  %v2242_v57 = vmax.f32 %v2237_v55, 0.0 }
 0xa4a   :  { %v3190_v39 = vmul.f32 -1.442695, %v2353_v26  ;;  %v3589_v5 = vpop.f32.mrb[35].mxu0 }
 0xa4c   :  { %3858 = vpow2.f32 %v3190_v39 }
 0xa56   :  { %v3859_v6 = vpop.eup %3858 }
 0xa57   :  { %v2361_v40 = vadd.f32 1.0, %v3859_v6 }
 0xa59   :  { %3860 = vrcp.f32 %v2361_v40 }
 0xa5a   :  { %3862 = vtanh.f32 %v2242_v57 }
 0xa63   :  { %v3861_v45 = vpop.eup %3860 }
 0xa64   :  { %2478 = vrot.lane.b32.xlu1 %v3861_v45, %s4222_s24  ;;  %3593 = vmatmul.mubr.msk.f32.vlgmr.msra.gmra.mrb[22].mxu1 %vm1397_vm8, %v3861_v45  ;;  %v3863_v14 = vpop.eup %3862 }
 0xa65   :  { %2564 = vmatpush1.bf16.msra.mxu1 %v3802_v31  ;;  %2595 = vmatprep.mubr.bf16.mxu1 %v4217_v58  ;;  %v3811_v58 = vld [vmem:[%s5225_s16 + $0xf0] ss:$8 sps:$4 sm:$0xff]  }
 0xa66   :  { %2565 = vmatprep.subr.bf16.mxu1 %v3807_v51 }
 0xa69   :  { %2566 = vmatpush1.bf16.msra.mxu1 %v3805_v32 }
 0xa6a   :  { %2567 = vmatprep.subr.bf16.mxu1 %v3810_v46 }
 0xa6d   :  { %2568 = vmatpush1.bf16.msra.mxu1 %v3808_v49 }
 0xa6e   :  { %2569 = vmatprep.subr.bf16.mxu1 %v3813_v52 }
 0xa71   :  { %2570 = vmatpush1.bf16.msra.mxu1 %v3811_v58 }
 0xa72   :  { %3615 = vmatprep.subr.bf16.mxu1 %v4214_v0 }
 0xa74   :  { %3210 = vmatmul.mubr.msk.bf16.vlgmr.msra.gmra.mrb[36].mxu1 %vm1118_vm6, %v2497_v53 }
 0xa75   :  { %3616 = vmatpush3.bf16.msra.mxu1 %v3815_v63  ;;  %3631 = vmatprep.mubr.msk.bf16.mxu1 %vm4215_vm0, %v4214_v0 }
 0xa76   :  { %3617 = vmatprep.subr.bf16.mxu1 %v4214_v0 }
 0xa79   :  { %3618 = vmatpush3.bf16.msra.mxu1 %v3817_v59 }
 0xa7a   :  { %3619 = vmatprep.subr.bf16.mxu1 %v4214_v0 }
 0xa7d   :  { %3620 = vmatpush3.bf16.msra.mxu1 %v3819_v28 }
 0xa7e   :  { %3621 = vmatprep.subr.bf16.mxu1 %v4214_v0 }
 0xa81   :  { %3622 = vmatpush3.bf16.msra.mxu1 %v3821_v62 }
 0xa82   :  { %3623 = vmatprep.subr.bf16.mxu1 %v4214_v0 }
 0xa85   :  { %3624 = vmatpush3.bf16.msra.mxu1 %v3823_v2 }
 0xa86   :  { %3625 = vmatprep.subr.bf16.mxu1 %v4214_v0 }
 0xa89   :  { %3626 = vmatpush3.bf16.msra.mxu1 %v3825_v3 }
 0xa8a   :  { %3627 = vmatprep.subr.bf16.mxu1 %v4214_v0 }
 0xa8d   :  { %3628 = vmatpush3.bf16.msra.mxu1 %v3827_v7 }
 0xa8e   :  { %3629 = vmatprep.subr.bf16.mxu1 %v4214_v0 }
 0xa91   :  { %3630 = vmatpush3.bf16.msra.mxu1 %v3829_v9 }
 0xad6   :  { %v2479_v48 = vpop.permute.xlu1 %2478 }
 0xad7   :  { %v2482_v11 = vsel %vm1523_vm9, %v2481_v10, %v2479_v48 }
 0xad8   :  { %v2483_v33 = vsel %vm1525_vm10, %v2482_v11, 0.0 }
 0xad9   :  { %2485 = vst [vmem:[#allocation23 + $0x8] sm:$0xf] %v2483_v33 }
 0xb37   :  { %v2433_v23 = vpop.f32.mrb[22].mxu1 }
 0xb38   :  { %v2437_v24 = vmul.f32 %v3863_v14, %v2433_v23  ;;  %v2438_v12 = vsub.f32 1.0, %v2433_v23  ;;  %v3594_v54 = vpop.f32.mrb[23].mxu1 }
 0xb3a   :  { %v2439_v44 = vmul.f32 %v3870_v56, %v2438_v12 }
 0xb3c   :  { %v2440_v34 = vadd.f32 %v2439_v44, %v2437_v24 }
 0xb3e   :  { %2442 = vst [vmem:[#allocation22 + $0x8] sm:$0xf] %v2440_v34 }
 0xb47   :  { %v2597_v19 = vpop.f32.mrb[36].mxu1 }
 0xb48   :  { %v2598_v50 = vadd.f32 %v2597_v19, %v2513_v17  ;;  %v2599_v38 = vpop.f32.mrb[37].mxu1 }
 0xb49   :  { %v2600_v20 = vadd.f32 %v2599_v38, %v2517_v18  ;;  %v2601_v21 = vpop.f32.mrb[38].mxu1 }
 0xb4a   :  { %v2604_v22 = vmax.f32 %v2598_v50, 0.0  ;;  %v2602_v26 = vpop.f32.mrb[39].mxu1 }
 0xb4b   :  { %v2605_v27 = vmax.f32 %v2600_v20, 0.0 }
 0xb4c   :  { %v2606_v29 = vpack.c.bf16 %v2604_v22, %v2604_v22 }
 0xb4d   :  { %v2722_v30 = vpack.c.bf16 %v2605_v27, %v2605_v27 }
 0xb4e   :  { %3612 = vmatmul.mubr.bf16.vlgmr.msra.gmra.mrb[36].mxu0 %v2606_v29 }
 0xb4f   :  { %3632 = vmatmul.mubr.bf16.vlgmr.msra.gmra.mrb[40].mxu1 %v2722_v30  ;;  %3636 = vmatpush3.msk.msra.mxu0 %vm1401_vm7, %v4858_v37 }
 0xb50   :  { %3637 = vmatprep.mubr.msk.f32.mxu0 %vm4215_vm0, %v4214_v0  ;;  %v2959_v0 = vsel %vm378_vm1, %v5050_v61, %v4838_v13 }
 0xc21   :  { %v2714_v35 = vpop.f32.mrb[36].mxu0 }
 0xc22   :  { %v3613_v36 = vpop.f32.mrb[37].mxu0  ;;  %v2830_v39 = vpop.f32.mrb[40].mxu1 }
 0xc23   :  { %v2831_v5 = vadd.f32 %v3238_v47, %v2830_v39  ;;  %v2717_v6 = vpop.f32.mrb[38].mxu0  ;;  %v3633_v40 = vpop.f32.mrb[41].mxu1 }
 0xc24   :  { %v3614_v42 = vpop.f32.mrb[39].mxu0  ;;  %v2833_v43 = vpop.f32.mrb[42].mxu1 }
 0xc25   :  { %v3247_v25 = vmul.f32 -1.442695, %v2831_v5  ;;  %v3634_v31 = vpop.f32.mrb[43].mxu1 }
 0xc27   :  { %3864 = vpow2.f32 %v3247_v25 }
 0xc31   :  { %v3865_v51 = vpop.eup %3864 }
 0xc32   :  { %v2839_v37 = vadd.f32 1.0, %v3865_v51 }
 0xc34   :  { %3866 = vrcp.f32 %v2839_v37 }
 0xc3e   :  { %v3867_v45 = vpop.eup %3866 }
 0xc3f   :  { %2956 = vrot.lane.b32.xlu0 %v3867_v45, %s4222_s24  ;;  %3638 = vmatmul.mubr.msk.f32.vlgmr.msra.gmra.mrb[26].mxu0 %vm1397_vm8, %v3867_v45 }
 0xcb1   :  { %v2957_v32 = vpop.permute.xlu0 %2956 }
 0xcb2   :  { %v2960_v46 = vsel %vm1523_vm9, %v2959_v0, %v2957_v32 }
 0xcb3   :  { %v2961_v49 = vsel %vm1525_vm10, %v2960_v46, 0.0 }
 0xcb4   :  { %2963 = vst [vmem:[#allocation23 + $0xc] sm:$0xf] %v2961_v49 }
 0xcb5   :  { %4147 = shalt.err (!%p4144_p2)
}
 0xcb6   :  { %s4148_s15 = scalar_lea.hbm %s5232_s23, 256 }
 0xcb7   :  { %p4149_p3 = scmp.ne.s32.totalorder %s5232_s23, %s4148_s15  ;;  %p4152_p4 = scmp.lt.u32.totalorder %s4148_s15, %s5232_s23 }
 0xcb9   :  { %p4154_p5 = pnand %p4152_p4, %p4149_p3 }
 0xcbb   :  { %4157 = shalt.err (!%p4154_p5)
}
 0xcbc   :  { %2987 = dma.vmem_to_hbm [thread:$0]  %s2982_s6, 256, %s5232_s23, [#allocation24], %s5253_s2, %s5253_s2, %s4201_s0  }
 0xcbd   :  { %v3212_v13 = vld [vmem:[%s5228_s19 + $0x3] ss:$0 sm:$0xff]  ;;  %s4224_s14 = smov [#allocation22]   ;;  %v3871_v60 = vld [vmem:[%s5259_s11 + $0xc] sm:$0xf] }
 0xcbe   :  { %v2715_v61 = vadd.f32 %v3212_v13, %v2714_v35  ;;  %s2969_s17 = sshll.u32 %s4224_s14, 4  ;;  %s2970_s17 = int_to_ptr.vmem [resolvable:$true] %s2969_s17 }
 0xcbf   :  { %s4158_s23 = scalar_lea.vmem %s2970_s17, 256  ;;  %p4163_p7 = scmp.lt.s32.totalorder %s2970_s17, %s2970_s17 }
 0xcc0   :  { %v2720_v52 = vmax.f32 %v2715_v61, 0.0  ;;  %p4159_p6 = scmp.ne.s32.totalorder %s2970_s17, %s4158_s23  ;;  %p4164_p8 = scmp.lt.s32.totalorder %s4158_s23, %s4158_s23 }
 0xcc2   :  { %3868 = vtanh.f32 %v2720_v52  ;;  %p4165_p9 = por %p4164_p8, %p4163_p7 }
 0xcc4   :  { %p4166_p10 = pnand %p4165_p9, %p4159_p6 }
 0xccc   :  { %v3869_v58 = vpop.eup %3868 }
 0xd12   :  { %v2911_v63 = vpop.f32.mrb[26].mxu0 }
 0xd13   :  { %v2915_v53 = vmul.f32 %v3869_v58, %v2911_v63  ;;  %v2916_v59 = vsub.f32 1.0, %v2911_v63  ;;  %v3639_v28 = vpop.f32.mrb[27].mxu0 }
 0xd15   :  { %v2917_v62 = vmul.f32 %v3871_v60, %v2916_v59 }
 0xd17   :  { %v2918_v1 = vadd.f32 %v2917_v62, %v2915_v53 }
 0xd19   :  { %2920 = vst [vmem:[#allocation22 + $0xc] sm:$0xf] %v2918_v1 }
 0xd1a   :  { %4169 = shalt.err (!%p4166_p10)
}
 0xd1b   :  { %s5260_s5 = sld [smem:[#allocation42_spill]] }
 0xd21   :  { %s4170_s3 = scalar_lea.hbm %s5260_s5, 256 }
 0xd22   :  { %p4171_p11 = scmp.ne.s32.totalorder %s5260_s5, %s4170_s3  ;;  %p4174_p12 = scmp.lt.u32.totalorder %s4170_s3, %s5260_s5 }
 0xd24   :  { %p4176_p13 = pnand %p4174_p12, %p4171_p11 }
 0xd26   :  { %4179 = shalt.err (!%p4176_p13)
}
 0xd27   :  { %2975 = dma.vmem_to_hbm [thread:$0]  %s2970_s17, 256, %s5260_s5, [#allocation4], %s5253_s2, %s5253_s2, %s4201_s0  }
 0xd28   :  { %4194 = dma.done.wait [#allocation4], 256  }
 0xd29   :  { %4195 = vsyncadd [#allocation4], 4294967040 }
 0xd2a   :  { %4196 = dma.done.wait [#allocation24], 256  }
 0xd2b   :  { %4197 = vsyncadd [#allocation24], 4294967040 }
 0xd2c   :  { %2994 = vsyncpa [#allocation3], 1 }
 0xd2d   :  { %2995 = vsyncpa [#allocation6], 1 }
 0xd2e   :  { %2996 = vsyncpa [#allocation9], 1 }
 0xd2f   :  { %2997 = vsyncpa [#allocation12], 1 }
 0xd30   :  { %2998 = vsyncpa [#allocation15], 1 }
 0xd31   :  { %2999 = vsyncpa [#allocation18], 1 }
 0xd32   :  { %3000 = vsyncpa [#allocation21], 1 }
 0xd33   :  { %3001 = vsyncpa [#allocation4], 1 }
 0xd34   :  { %3002 = vsyncpa [#allocation24], 1 }

</bundles_post_ra>
